<compile_context>
chip_gen: v6e
topology: v6e:2x2x1
jax: 0.10.0
libtpu: 0.0.40
codegen_flags: <defaults>
</compile_context>

<pallas_src>
import math
import functools
import numpy as np

import jax
import jax.numpy as jnp
from jax import lax
from jax.experimental import pallas as pl
from jax.experimental.pallas import tpu as pltpu


# ----------------------------- static (numpy) helpers -----------------------------

def get_mask(input_size, window_size, inner_size):
    """PAM attention mask (1.0 = disallowed) and pyramid level sizes."""
    all_size = [input_size]
    for w in window_size:
        all_size.append(int(math.floor(all_size[-1] / w)))
    seq_length = sum(all_size)
    mask = np.zeros((seq_length, seq_length), dtype=np.float32)

    inner_window = inner_size // 2
    for layer_idx in range(len(all_size)):
        start = sum(all_size[:layer_idx])
        for i in range(start, start + all_size[layer_idx]):
            left = max(i - inner_window, start)
            right = min(i + inner_window + 1, start + all_size[layer_idx])
            mask[i, left:right] = 1

    for layer_idx in range(1, len(all_size)):
        start = sum(all_size[:layer_idx])
        for i in range(start, start + all_size[layer_idx]):
            left = (start - all_size[layer_idx - 1]) + (i - start) * window_size[layer_idx - 1]
            if i == (start + all_size[layer_idx] - 1):
                right = start
            else:
                right = (start - all_size[layer_idx - 1]) + (i - start + 1) * window_size[layer_idx - 1]
            mask[i, left:right] = 1
            mask[left:right, i] = 1

    mask = 1.0 - mask  # 1.0 -> masked
    return mask, all_size


def refer_points(all_sizes, window_size):
    input_size = all_sizes[0]
    indexes = np.zeros((input_size, len(all_sizes)), dtype=np.int32)
    for i in range(input_size):
        indexes[i, 0] = i
        former = i
        for j in range(1, len(all_sizes)):
            start = sum(all_sizes[:j])
            inner_idx = former - (start - all_sizes[j - 1])
            former = start + min(inner_idx // window_size[j - 1], all_sizes[j] - 1)
            indexes[i, j] = former
    return indexes


def positional_embedding(L, d_model):
    pe = np.zeros((L, d_model), dtype=np.float32)
    position = np.arange(L, dtype=np.float32)[:, None]
    div_term = np.exp(np.arange(0, d_model, 2, dtype=np.float32)
                      * -(math.log(10000.0) / d_model))
    pe[:, 0::2] = np.sin(position * div_term)
    pe[:, 1::2] = np.cos(position * div_term)
    return pe


# ----------------------------- parameters -----------------------------

def init_params(key, cfg):
    d_model = cfg['d_model']
    C = cfg['enc_in']
    d_b = cfg['d_bottleneck']
    d_ffn = cfg['d_inner']
    H, dk, dv = cfg['n_head'], cfg['d_k'], cfg['d_v']

    keys = iter(jax.random.split(key, 64))

    def nrm(shape, fan_in):
        return (1.0 / math.sqrt(fan_in)) * jax.random.normal(
            next(keys), shape, dtype=jnp.float32)

    p = {}
    # DataEmbedding
    p['tok_w'] = nrm((d_model, C, 3), C * 3)            # Conv1d(C, d_model, 3, circular)
    p['tok_b'] = jnp.zeros((d_model,), jnp.float32)
    p['temp_w'] = nrm((cfg['n_mark'], d_model), cfg['n_mark'])
    p['temp_b'] = jnp.zeros((d_model,), jnp.float32)
    # Bottleneck_Construct
    p['down_w'] = nrm((d_model, d_b), d_model)
    p['down_b'] = jnp.zeros((d_b,), jnp.float32)
    for i, w in enumerate(cfg['window_size']):
        p[f'conv{i}_w'] = nrm((d_b, d_b, w), d_b * w)   # Conv1d(d_b, d_b, k=w, stride=w)
        p[f'conv{i}_b'] = jnp.zeros((d_b,), jnp.float32)
        p[f'conv{i}_bn_g'] = jnp.ones((d_b,), jnp.float32)
        p[f'conv{i}_bn_b'] = jnp.zeros((d_b,), jnp.float32)
        p[f'conv{i}_bn_mean'] = jnp.zeros((d_b,), jnp.float32)
        p[f'conv{i}_bn_var'] = jnp.ones((d_b,), jnp.float32)
    p['up_w'] = nrm((d_b, d_model), d_b)
    p['up_b'] = jnp.zeros((d_model,), jnp.float32)
    p['cscm_ln_g'] = jnp.ones((d_model,), jnp.float32)
    p['cscm_ln_b'] = jnp.zeros((d_model,), jnp.float32)
    # Encoder layers
    layers = []
    for _ in range(cfg['n_layer']):
        layers.append({
            'wq': nrm((d_model, H * dk), d_model),
            'wk': nrm((d_model, H * dk), d_model),
            'wv': nrm((d_model, H * dv), d_model),
            'fc_w': nrm((H * dv, d_model), H * dv),
            'fc_b': jnp.zeros((d_model,), jnp.float32),
            'ln1_g': jnp.ones((d_model,), jnp.float32),
            'ln1_b': jnp.zeros((d_model,), jnp.float32),
            'w1': nrm((d_model, d_ffn), d_model),
            'b1': jnp.zeros((d_ffn,), jnp.float32),
            'w2': nrm((d_ffn, d_model), d_ffn),
            'b2': jnp.zeros((d_model,), jnp.float32),
            'ln2_g': jnp.ones((d_model,), jnp.float32),
            'ln2_b': jnp.zeros((d_model,), jnp.float32),
        })
    p['layers'] = layers
    # Predictor (FC decoder): Linear(levels*d_model, predict_step*enc_in, bias=False)
    pred_in = (len(cfg['window_size']) + 1) * d_model
    p['pred_w'] = nrm((pred_in, cfg['predict_step'] * C), pred_in)
    return p


def pack_params(p, pos_emb, cfg):
    """One-time packing: fold biases/BN/attention-scale into affines,
    pre-transpose conv taps, stack per-layer weights, tile the embedding bias
    for the batch-folded row layout."""
    d_model = cfg['d_model']
    C = cfg['enc_in']
    ws = cfg['window_size']
    Bt = cfg['batch_tile']

    tok_w = jnp.transpose(p['tok_w'], (1, 2, 0)).reshape(C * 3, d_model)
    # positional emb + token-conv bias + temporal-linear bias folded; tiled Bt x
    emb_bias = pos_emb + p['tok_b'][None, :] + p['temp_b'][None, :]
    emb_bias = jnp.tile(emb_bias, (Bt, 1))

    conv_taps, conv_scale, conv_shift = [], [], []
    for i, w in enumerate(ws):
        W = p[f'conv{i}_w']                               # (d_b_out, d_b_in, w)
        for j in range(w):
            conv_taps.append(W[:, :, j].T)                # (d_b_in, d_b_out)
        # TODO(synk): BatchNorm1d reproduced in eval mode (running stats only).
        s = p[f'conv{i}_bn_g'] / jnp.sqrt(p[f'conv{i}_bn_var'] + 1e-5)
        conv_scale.append(s[None, :])
        conv_shift.append(((p[f'conv{i}_b'] - p[f'conv{i}_bn_mean']) * s
                           + p[f'conv{i}_bn_b'])[None, :])

    inv_temp = 1.0 / math.sqrt(cfg['d_k'])                # folded into wq (exact)
    L = p['layers']
    return dict(
        tok_w=tok_w,
        temp_w=p['temp_w'],
        emb_bias=emb_bias,                                # (Bt*Lx, d_model)
        down_w=p['down_w'],
        down_b=p['down_b'][None, :],
        conv_w=jnp.stack(conv_taps),                      # (sum(ws), d_b, d_b)
        conv_scale=jnp.stack(conv_scale),                 # (n_lvl, 1, d_b)
        conv_shift=jnp.stack(conv_shift),                 # (n_lvl, 1, d_b)
        up_w=p['up_w'],
        up_b=p['up_b'][None, :],
        cscm_g=p['cscm_ln_g'][None, :],
        cscm_b=p['cscm_ln_b'][None, :],
        wqkv=jnp.stack([jnp.concatenate(
            [l['wq'] * inv_temp, l['wk'], l['wv']], axis=1) for l in L]),
        fc_w=jnp.stack([l['fc_w'] for l in L]),
        fc_b=jnp.stack([l['fc_b'][None, :] for l in L]),
        ln1_g=jnp.stack([l['ln1_g'][None, :] for l in L]),
        ln1_b=jnp.stack([l['ln1_b'][None, :] for l in L]),
        w1=jnp.stack([l['w1'] for l in L]),
        b1=jnp.stack([l['b1'][None, :] for l in L]),
        w2=jnp.stack([l['w2'] for l in L]),
        b2=jnp.stack([l['b2'][None, :] for l in L]),
        ln2_g=jnp.stack([l['ln2_g'][None, :] for l in L]),
        ln2_b=jnp.stack([l['ln2_b'][None, :] for l in L]),
        pred_w=p['pred_w'],
    )


# ----------------------------- in-kernel helpers -----------------------------

def _layer_norm(x, g, b, eps):
    mu = jnp.mean(x, axis=-1, keepdims=True)
    var = jnp.mean(jnp.square(x - mu), axis=-1, keepdims=True)
    return (x - mu) * lax.rsqrt(var + eps) * g + b


def _gelu_tanh(x):
    # TODO(synk): tanh-form GELU (single EUP tanh) instead of PyTorch's
    # exact-erf F.gelu; deviation ~1e-3, accepted per perf review.
    c = 0.7978845608028654
    return 0.5 * x * (1.0 + jnp.tanh(c * (x + 0.044715 * x * x * x)))


# ----------------------------- fused forward kernel -----------------------------

def _pyraformer_kernel(
        x_patch_ref, x_mark_ref, mask_ref, emb_bias_ref,
        tok_w_ref, temp_w_ref,
        down_w_ref, down_b_ref, conv_w_ref, conv_scale_ref, conv_shift_ref,
        up_w_ref, up_b_ref, cscm_g_ref, cscm_b_ref,
        wqkv_ref, fc_w_ref, fc_b_ref, ln1_g_ref, ln1_b_ref,
        w1_ref, b1_ref, w2_ref, b2_ref, ln2_g_ref, ln2_b_ref,
        pred_w_ref,
        pred_ref,
        seq_scr, x_scr, heads_scr, gather_scr,
        *, window_size, tap_offsets, seg_bases, n_layer, n_head, d_k, d_v,
        d_model, lx, bt, gather_rows):
    f32 = jnp.float32

    # -------- DataEmbedding (batch block folded into matmul rows) --------
    emb = (jnp.dot(x_patch_ref[...], tok_w_ref[...], preferred_element_type=f32)
           + jnp.dot(x_mark_ref[...], temp_w_ref[...], preferred_element_type=f32)
           + emb_bias_ref[...])                                   # (bt*lx, d_model)
    seq_scr[0:bt * lx, :] = emb                                   # level-0 segment

    # -------- Bottleneck_Construct (CSCM): down, stride-w convs + BN(eval)
    # -------- + ELU, up, LayerNorm.  Tap rows read via strided pl.ds loads.
    x_scr[...] = (jnp.dot(emb, down_w_ref[...], preferred_element_type=f32)
                  + down_b_ref[...])                              # (bt*lx, d_b)
    rows_in = bt * lx
    for lvl, w in enumerate(window_size):
        rows_out = rows_in // w
        acc = None
        for j in range(w):
            xj = x_scr[pl.ds(j, rows_out, stride=w), :]           # rows j, j+w, ...
            yj = jnp.dot(xj, conv_w_ref[tap_offsets[lvl] + j],
                         preferred_element_type=f32)
            acc = yj if acc is None else acc + yj
        y = acc * conv_scale_ref[lvl] + conv_shift_ref[lvl]       # conv bias + BN folded
        y = jnp.where(y > 0.0, y, jnp.exp(y) - 1.0)               # ELU(alpha=1)
        if lvl + 1 < len(window_size):
            x_scr[0:rows_out, :] = y                              # next level input
        up_y = jnp.dot(y, up_w_ref[...], preferred_element_type=f32) + up_b_ref[...]
        seq_scr[seg_bases[lvl + 1]:seg_bases[lvl + 1] + rows_out, :] = up_y
        rows_in = rows_out

    seq = _layer_norm(seq_scr[...], cscm_g_ref[...], cscm_b_ref[...], 1e-5)

    # -------- Encoder layers: post-norm MHA (block-diag across samples) + FFN -----
    mask_bias = mask_ref[...]                # additive, -1e9 = masked / cross-sample
    H = n_head
    for l in range(n_layer):
        residual = seq
        qkv = jnp.dot(seq, wqkv_ref[l], preferred_element_type=f32)
        for h in range(H):
            q = qkv[:, h * d_k:(h + 1) * d_k]                     # pre-scaled by 1/sqrt(dk)
            k = qkv[:, H * d_k + h * d_k:H * d_k + (h + 1) * d_k]
            v = qkv[:, 2 * H * d_k + h * d_v:2 * H * d_k + (h + 1) * d_v]
            s = lax.dot_general(q, k, (((1,), (1,)), ((), ())),
                                preferred_element_type=f32)       # (rows, rows)
            s = s + mask_bias
            s = s - jnp.max(s, axis=-1, keepdims=True)
            p = jnp.exp(s)
            p = p * pl.reciprocal(jnp.sum(p, axis=-1, keepdims=True), approx=True)
            heads_scr[:, h * d_v:(h + 1) * d_v] = jnp.dot(
                p, v, preferred_element_type=f32)
        attn = (jnp.dot(heads_scr[...], fc_w_ref[l], preferred_element_type=f32)
                + fc_b_ref[l])
        out = _layer_norm(attn + residual, ln1_g_ref[l], ln1_b_ref[l], 1e-6)
        res2 = out
        hdn = jnp.dot(out, w1_ref[l], preferred_element_type=f32) + b1_ref[l]
        hdn = _gelu_tanh(hdn)
        hdn = jnp.dot(hdn, w2_ref[l], preferred_element_type=f32) + b2_ref[l]
        seq = _layer_norm(hdn + res2, ln2_g_ref[l], ln2_b_ref[l], 1e-6)

    # -------- FC decoder: gather last step across pyramid levels + Predictor ------
    for b in range(bt):
        for j in range(len(gather_rows[b])):
            r = gather_rows[b][j]
            gather_scr[b:b + 1, j * d_model:(j + 1) * d_model] = seq[r:r + 1, :]
    pred_ref[...] = jnp.dot(gather_scr[...], pred_w_ref[...],
                            preferred_element_type=f32)


# ----------------------------- wrapper -----------------------------

def make_forward(cfg, mask_np, indexes_np, all_size):
    Lx = all_size[0]
    Ltot = sum(all_size)
    levels = len(all_size)
    Bt = cfg['batch_tile']
    d_model, C, d_b = cfg['d_model'], cfg['enc_in'], cfg['d_bottleneck']
    d_ffn = cfg['d_inner']
    n_mark = cfg['n_mark']
    H, dk, dv = cfg['n_head'], cfg['d_k'], cfg['d_v']
    n_layer = cfg['n_layer']
    pred_n = cfg['predict_step'] * C
    ws = tuple(cfg['window_size'])
    tap_offsets = tuple(int(v) for v in np.cumsum((0,) + ws)[:-1])

    cum = [0]
    for s in all_size:
        cum.append(cum[-1] + s)
    # level-major row layout: rows grouped by pyramid level, sample-major inside
    # each level -> all segment bases are Bt*cum[j] (8-aligned static slices).
    seg_bases = tuple(Bt * cum[j] for j in range(levels))

    rows_b, rows_pos = [], []
    for j in range(levels):
        for b in range(Bt):
            for i in range(all_size[j]):
                rows_b.append(b)
                rows_pos.append(cum[j] + i)
    rows_b = np.asarray(rows_b)
    rows_pos = np.asarray(rows_pos)
    same = rows_b[:, None] == rows_b[None, :]
    disallowed = mask_np[np.ix_(rows_pos, rows_pos)] > 0.5
    mask_bt = jnp.asarray(np.where(same & ~disallowed, 0.0, -1e9)
                          .astype(np.float32))              # (Bt*Ltot, Bt*Ltot)

    last_idx = indexes_np[-1]                                # FC decoder: last step only
    gather_rows = tuple(
        tuple(int(Bt * cum[j] + b * all_size[j] + (int(last_idx[j]) - cum[j]))
              for j in range(levels))
        for b in range(Bt))

    kernel = functools.partial(
        _pyraformer_kernel,
        window_size=ws, tap_offsets=tap_offsets, seg_bases=seg_bases,
        n_layer=n_layer, n_head=H, d_k=dk, d_v=dv, d_model=d_model,
        lx=Lx, bt=Bt, gather_rows=gather_rows)

    rows_x = Bt * Lx
    rows_seq = Bt * Ltot

    def _bcast_spec(a):
        nd = a.ndim
        return pl.BlockSpec(tuple(a.shape), lambda g, _n=nd: (0,) * _n)

    def _cost(n_blocks, weight_bytes):
        mm = 2 * rows_x * (3 * C + n_mark) * d_model + 2 * rows_x * d_model * d_b
        r = rows_x
        for w in ws:
            r //= w
            mm += 2 * w * r * d_b * d_b + 2 * r * d_b * d_model
        mm += n_layer * (2 * rows_seq * d_model * (H * (2 * dk + dv))
                         + 2 * H * rows_seq * rows_seq * (dk + dv)
                         + 2 * rows_seq * (H * dv) * d_model
                         + 4 * rows_seq * d_model * d_ffn)
        mm += 2 * Bt * levels * d_model * pred_n
        trans = n_layer * rows_seq * (H * rows_seq + d_ffn) + rows_x * d_b
        io = n_blocks * (rows_x * (3 * C + n_mark) + Bt * pred_n) * 4 + weight_bytes
        return pl.CostEstimate(flops=int(n_blocks * mm),
                               transcendentals=int(n_blocks * trans),
                               bytes_accessed=int(io))

    def forward(packed, x_enc, x_mark_enc):
        B = x_enc.shape[0]
        x_enc = x_enc.astype(jnp.float32)
        x_mark = x_mark_enc.astype(jnp.float32)
        pad = (-B) % Bt
        if pad:
            x_enc = jnp.concatenate(
                [x_enc, jnp.zeros((pad, Lx, C), jnp.float32)], axis=0)
            x_mark = jnp.concatenate(
                [x_mark, jnp.zeros((pad, Lx, n_mark), jnp.float32)], axis=0)
        Bp = B + pad
        n_blocks = Bp // Bt

        # circular Conv1d(k=3, pad=1) taps (t-1, t, t+1), rows flattened so the
        # kernel folds the whole batch block into one matmul row dimension.
        x_patch = jnp.stack(
            [jnp.roll(x_enc, 1, axis=1), x_enc, jnp.roll(x_enc, -1, axis=1)],
            axis=-1).reshape(Bp * Lx, C * 3)
        x_mark = x_mark.reshape(Bp * Lx, n_mark)

        w_inputs = (
            packed['emb_bias'], packed['tok_w'], packed['temp_w'],
            packed['down_w'], packed['down_b'], packed['conv_w'],
            packed['conv_scale'], packed['conv_shift'],
            packed['up_w'], packed['up_b'], packed['cscm_g'], packed['cscm_b'],
            packed['wqkv'], packed['fc_w'], packed['fc_b'],
            packed['ln1_g'], packed['ln1_b'],
            packed['w1'], packed['b1'], packed['w2'], packed['b2'],
            packed['ln2_g'], packed['ln2_b'],
            packed['pred_w'],
        )
        weight_bytes = (sum(int(np.prod(a.shape)) * 4 for a in w_inputs)
                        + int(mask_bt.size) * 4)

        in_specs = (
            [pl.BlockSpec((rows_x, C * 3), lambda g: (g, 0)),
             pl.BlockSpec((rows_x, n_mark), lambda g: (g, 0)),
             _bcast_spec(mask_bt)]
            + [_bcast_spec(a) for a in w_inputs])

        out = pl.pallas_call(
            kernel,
            out_shape=jax.ShapeDtypeStruct((n_blocks, Bt, pred_n), jnp.float32),
            grid=(n_blocks,),
            in_specs=in_specs,
            out_specs=pl.BlockSpec((None, Bt, pred_n), lambda g: (g, 0, 0)),
            scratch_shapes=[
                pltpu.VMEM((rows_seq, d_model), jnp.float32),    # pyramid seq assembly
                pltpu.VMEM((rows_x, d_b), jnp.float32),          # CSCM working buffer
                pltpu.VMEM((rows_seq, H * dv), jnp.float32),     # head-concat buffer
                pltpu.VMEM((Bt, levels * d_model), jnp.float32), # decoder gather
            ],
            compiler_params=pltpu.CompilerParams(
                dimension_semantics=("parallel",)),   # v7x: batch blocks split across 2 TCs
            cost_estimate=_cost(n_blocks, weight_bytes),
        )(x_patch, x_mark, mask_bt, *w_inputs)

        out = out.reshape(Bp, pred_n)[:B]
        return out.reshape(B, cfg['predict_step'], C)

    return jax.jit(forward)


def model_forward(fwd_fn, packed, x_enc, x_mark_enc, x_dec, x_mark_dec, pretrain):
    # FC-decoder path of Pyraformer_LR.Model.forward: x_dec / x_mark_dec /
    # pretrain are unused in that branch.
    del x_dec, x_mark_dec, pretrain
    return fwd_fn(packed, x_enc, x_mark_enc)


# ----------------------------- main -----------------------------

if __name__ == "__main__":
    cfg = dict(
        input_size=15,        # FC decoder => encoder sees input_size + 1 tokens
        enc_in=4,
        n_mark=4,
        d_model=32,
        d_bottleneck=16,
        d_inner=64,
        n_head=2,
        d_k=16,
        d_v=16,
        n_layer=2,
        window_size=[2, 2, 2],
        inner_size=3,
        predict_step=4,
        batch_tile=2,         # samples folded per grid step (keeps >=2 steps for v7x)
    )

    # static structures, built once at init
    mask_np, all_size = get_mask(cfg['input_size'] + 1, cfg['window_size'], cfg['inner_size'])
    indexes_np = refer_points(all_size, cfg['window_size'])
    pos_np = positional_embedding(all_size[0], cfg['d_model'])

    params = init_params(jax.random.PRNGKey(42), cfg)
    packed = pack_params(params, jnp.asarray(pos_np), cfg)
    fwd = make_forward(cfg, mask_np, indexes_np, all_size)

    key = jax.random.PRNGKey(0)
    k1, k2, k3, k4 = jax.random.split(key, 4)
    B = 4
    Lx = cfg['input_size'] + 1   # predict token appended for the FC decoder
    x_enc = jax.random.normal(k1, (B, Lx, cfg['enc_in']), dtype=jnp.float32)
    x_mark_enc = jax.random.normal(k2, (B, Lx, cfg['n_mark']), dtype=jnp.float32)
    x_dec = jax.random.normal(k3, (B, cfg['predict_step'], cfg['enc_in']), dtype=jnp.float32)
    x_mark_dec = jax.random.normal(k4, (B, cfg['predict_step'], cfg['n_mark']), dtype=jnp.float32)

    pred = model_forward(fwd, packed, x_enc, x_mark_enc, x_dec, x_mark_dec, False)
    pred = jax.block_until_ready(pred)
    assert pred.shape == (B, cfg['predict_step'], cfg['enc_in'])
    assert bool(jnp.all(jnp.isfinite(pred)))
    print("KERNEL_OK")
</pallas_src>

<mosaic_0001>
module attributes {stable_mosaic.version = 11 : i64} {
  func.func @_pyraformer_kernel(%arg0: i32, %arg1: memref<32x12xf32, #tpu.memory_space<vmem>>, %arg2: memref<32x4xf32, #tpu.memory_space<vmem>>, %arg3: memref<60x60xf32, #tpu.memory_space<vmem>>, %arg4: memref<32x32xf32, #tpu.memory_space<vmem>>, %arg5: memref<12x32xf32, #tpu.memory_space<vmem>>, %arg6: memref<4x32xf32, #tpu.memory_space<vmem>>, %arg7: memref<32x16xf32, #tpu.memory_space<vmem>>, %arg8: memref<1x16xf32, #tpu.memory_space<vmem>>, %arg9: memref<6x16x16xf32, #tpu.memory_space<vmem>>, %arg10: memref<3x1x16xf32, #tpu.memory_space<vmem>>, %arg11: memref<3x1x16xf32, #tpu.memory_space<vmem>>, %arg12: memref<16x32xf32, #tpu.memory_space<vmem>>, %arg13: memref<1x32xf32, #tpu.memory_space<vmem>>, %arg14: memref<1x32xf32, #tpu.memory_space<vmem>>, %arg15: memref<1x32xf32, #tpu.memory_space<vmem>>, %arg16: memref<2x32x96xf32, #tpu.memory_space<vmem>>, %arg17: memref<2x32x32xf32, #tpu.memory_space<vmem>>, %arg18: memref<2x1x32xf32, #tpu.memory_space<vmem>>, %arg19: memref<2x1x32xf32, #tpu.memory_space<vmem>>, %arg20: memref<2x1x32xf32, #tpu.memory_space<vmem>>, %arg21: memref<2x32x64xf32, #tpu.memory_space<vmem>>, %arg22: memref<2x1x64xf32, #tpu.memory_space<vmem>>, %arg23: memref<2x64x32xf32, #tpu.memory_space<vmem>>, %arg24: memref<2x1x32xf32, #tpu.memory_space<vmem>>, %arg25: memref<2x1x32xf32, #tpu.memory_space<vmem>>, %arg26: memref<2x1x32xf32, #tpu.memory_space<vmem>>, %arg27: memref<128x16xf32, #tpu.memory_space<vmem>>, %arg28: memref<1x2x16xf32, #tpu.memory_space<vmem>>, %arg29: memref<60x32xf32, #tpu.memory_space<vmem>>, %arg30: memref<32x16xf32, #tpu.memory_space<vmem>>, %arg31: memref<60x32xf32, #tpu.memory_space<vmem>>, %arg32: memref<2x128xf32, #tpu.memory_space<vmem>>) attributes {dimension_semantics = [#tpu.dimension_semantics<parallel>], iteration_bounds = array<i64: 2>, scalar_prefetch = 0 : i64, scratch_operands = 4 : i64, tpu.core_type = #tpu.core_type<tc>, window_params = [{transform_indices = @transform_0, window_bounds = array<i64: 32, 12>}, {transform_indices = @transform_1, window_bounds = array<i64: 32, 4>}, {pipeline_mode = #tpu.pipeline_mode<synchronous>, transform_indices = @transform_2, window_bounds = array<i64: 60, 60>}, {pipeline_mode = #tpu.pipeline_mode<synchronous>, transform_indices = @transform_3, window_bounds = array<i64: 32, 32>}, {pipeline_mode = #tpu.pipeline_mode<synchronous>, transform_indices = @transform_4, window_bounds = array<i64: 12, 32>}, {pipeline_mode = #tpu.pipeline_mode<synchronous>, transform_indices = @transform_5, window_bounds = array<i64: 4, 32>}, {pipeline_mode = #tpu.pipeline_mode<synchronous>, transform_indices = @transform_6, window_bounds = array<i64: 32, 16>}, {pipeline_mode = #tpu.pipeline_mode<synchronous>, transform_indices = @transform_7, window_bounds = array<i64: 1, 16>}, {pipeline_mode = #tpu.pipeline_mode<synchronous>, transform_indices = @transform_8, window_bounds = array<i64: 6, 16, 16>}, {pipeline_mode = #tpu.pipeline_mode<synchronous>, transform_indices = @transform_9, window_bounds = array<i64: 3, 1, 16>}, {pipeline_mode = #tpu.pipeline_mode<synchronous>, transform_indices = @transform_10, window_bounds = array<i64: 3, 1, 16>}, {pipeline_mode = #tpu.pipeline_mode<synchronous>, transform_indices = @transform_11, window_bounds = array<i64: 16, 32>}, {pipeline_mode = #tpu.pipeline_mode<synchronous>, transform_indices = @transform_12, window_bounds = array<i64: 1, 32>}, {pipeline_mode = #tpu.pipeline_mode<synchronous>, transform_indices = @transform_13, window_bounds = array<i64: 1, 32>}, {pipeline_mode = #tpu.pipeline_mode<synchronous>, transform_indices = @transform_14, window_bounds = array<i64: 1, 32>}, {pipeline_mode = #tpu.pipeline_mode<synchronous>, transform_indices = @transform_15, window_bounds = array<i64: 2, 32, 96>}, {pipeline_mode = #tpu.pipeline_mode<synchronous>, transform_indices = @transform_16, window_bounds = array<i64: 2, 32, 32>}, {pipeline_mode = #tpu.pipeline_mode<synchronous>, transform_indices = @transform_17, window_bounds = array<i64: 2, 1, 32>}, {pipeline_mode = #tpu.pipeline_mode<synchronous>, transform_indices = @transform_18, window_bounds = array<i64: 2, 1, 32>}, {pipeline_mode = #tpu.pipeline_mode<synchronous>, transform_indices = @transform_19, window_bounds = array<i64: 2, 1, 32>}, {pipeline_mode = #tpu.pipeline_mode<synchronous>, transform_indices = @transform_20, window_bounds = array<i64: 2, 32, 64>}, {pipeline_mode = #tpu.pipeline_mode<synchronous>, transform_indices = @transform_21, window_bounds = array<i64: 2, 1, 64>}, {pipeline_mode = #tpu.pipeline_mode<synchronous>, transform_indices = @transform_22, window_bounds = array<i64: 2, 64, 32>}, {pipeline_mode = #tpu.pipeline_mode<synchronous>, transform_indices = @transform_23, window_bounds = array<i64: 2, 1, 32>}, {pipeline_mode = #tpu.pipeline_mode<synchronous>, transform_indices = @transform_24, window_bounds = array<i64: 2, 1, 32>}, {pipeline_mode = #tpu.pipeline_mode<synchronous>, transform_indices = @transform_25, window_bounds = array<i64: 2, 1, 32>}, {pipeline_mode = #tpu.pipeline_mode<synchronous>, transform_indices = @transform_26, window_bounds = array<i64: 128, 16>}, {transform_indices = @transform_27, window_bounds = array<i64: 1, 2, 16>}]} {
    %c0 = arith.constant 0 : index
    %c0_0 = arith.constant 0 : index
    %0 = vector.load %arg1[%c0, %c0_0] : memref<32x12xf32, #tpu.memory_space<vmem>>, vector<32x12xf32>
    %c0_1 = arith.constant 0 : index
    %c0_2 = arith.constant 0 : index
    %1 = vector.load %arg5[%c0_1, %c0_2] : memref<12x32xf32, #tpu.memory_space<vmem>>, vector<12x32xf32>
    %cst = arith.constant dense<0.000000e+00> : vector<32x32xf32>
    %2 = tpu.matmul %0, %1, %cst {dimension_numbers = #tpu.dot_dimension_numbers<[1], [0], [0], [1], [0, 0, 1, 1], [], []>} : vector<32x12xf32>, vector<12x32xf32>, vector<32x32xf32> -> vector<32x32xf32>
    %c0_3 = arith.constant 0 : index
    %c0_4 = arith.constant 0 : index
    %3 = vector.load %arg2[%c0_3, %c0_4] : memref<32x4xf32, #tpu.memory_space<vmem>>, vector<32x4xf32>
    %c0_5 = arith.constant 0 : index
    %c0_6 = arith.constant 0 : index
    %4 = vector.load %arg6[%c0_5, %c0_6] : memref<4x32xf32, #tpu.memory_space<vmem>>, vector<4x32xf32>
    %cst_7 = arith.constant dense<0.000000e+00> : vector<32x32xf32>
    %5 = tpu.matmul %3, %4, %cst_7 {dimension_numbers = #tpu.dot_dimension_numbers<[1], [0], [0], [1], [0, 0, 1, 1], [], []>} : vector<32x4xf32>, vector<4x32xf32>, vector<32x32xf32> -> vector<32x32xf32>
    %6 = arith.addf %2, %5 : vector<32x32xf32>
    %c0_8 = arith.constant 0 : index
    %c0_9 = arith.constant 0 : index
    %7 = vector.load %arg4[%c0_8, %c0_9] : memref<32x32xf32, #tpu.memory_space<vmem>>, vector<32x32xf32>
    %8 = arith.addf %6, %7 : vector<32x32xf32>
    %c0_10 = arith.constant 0 : index
    %c0_11 = arith.constant 0 : index
    %9 = vector.load %arg29[%c0_10, %c0_11] : memref<60x32xf32, #tpu.memory_space<vmem>>, vector<32x32xf32>
    tpu.vector_store %arg29[%c0_10, %c0_11], %8 {strides = array<i32>} : memref<60x32xf32, #tpu.memory_space<vmem>>, vector<32x32xf32>,
    %c0_12 = arith.constant 0 : index
    %c0_13 = arith.constant 0 : index
    %10 = vector.load %arg7[%c0_12, %c0_13] : memref<32x16xf32, #tpu.memory_space<vmem>>, vector<32x16xf32>
    %cst_14 = arith.constant dense<0.000000e+00> : vector<32x16xf32>
    %11 = tpu.matmul %8, %10, %cst_14 {dimension_numbers = #tpu.dot_dimension_numbers<[1], [0], [0], [1], [0, 0, 1, 1], [], []>} : vector<32x32xf32>, vector<32x16xf32>, vector<32x16xf32> -> vector<32x16xf32>
    %c0_15 = arith.constant 0 : index
    %c0_16 = arith.constant 0 : index
    %12 = vector.load %arg8[%c0_15, %c0_16] : memref<1x16xf32, #tpu.memory_space<vmem>>, vector<1x16xf32>
    %13 = vector.broadcast %12 : vector<1x16xf32> to vector<32x16xf32>
    %14 = arith.addf %11, %13 : vector<32x16xf32>
    %c0_17 = arith.constant 0 : index
    %c0_18 = arith.constant 0 : index
    %15 = vector.load %arg30[%c0_17, %c0_18] : memref<32x16xf32, #tpu.memory_space<vmem>>, vector<32x16xf32>
    tpu.vector_store %arg30[%c0_17, %c0_18], %14 {strides = array<i32>} : memref<32x16xf32, #tpu.memory_space<vmem>>, vector<32x16xf32>,
    %c0_19 = arith.constant 0 : index
    %c0_20 = arith.constant 0 : index
    %16 = tpu.strided_load %arg30[%c0_19, %c0_20] {strides = array<i32: 2, 1>} : memref<32x16xf32, #tpu.memory_space<vmem>>, vector<16x16xf32>
    %c0_21 = arith.constant 0 : index
    %c0_22 = arith.constant 0 : index
    %c0_23 = arith.constant 0 : index
    %17 = vector.load %arg9[%c0_21, %c0_22, %c0_23] : memref<6x16x16xf32, #tpu.memory_space<vmem>>, vector<1x16x16xf32>
    %18 = vector.shape_cast %17 : vector<1x16x16xf32> to vector<16x16xf32>
    %cst_24 = arith.constant dense<0.000000e+00> : vector<16x16xf32>
    %19 = tpu.matmul %16, %18, %cst_24 {dimension_numbers = #tpu.dot_dimension_numbers<[1], [0], [0], [1], [0, 0, 1, 1], [], []>} : vector<16x16xf32>, vector<16x16xf32>, vector<16x16xf32> -> vector<16x16xf32>
    %c1 = arith.constant 1 : index
    %c0_25 = arith.constant 0 : index
    %20 = tpu.strided_load %arg30[%c1, %c0_25] {strides = array<i32: 2, 1>} : memref<32x16xf32, #tpu.memory_space<vmem>>, vector<16x16xf32>
    %c1_26 = arith.constant 1 : index
    %c0_27 = arith.constant 0 : index
    %c0_28 = arith.constant 0 : index
    %21 = vector.load %arg9[%c1_26, %c0_27, %c0_28] : memref<6x16x16xf32, #tpu.memory_space<vmem>>, vector<1x16x16xf32>
    %22 = vector.shape_cast %21 : vector<1x16x16xf32> to vector<16x16xf32>
    %cst_29 = arith.constant dense<0.000000e+00> : vector<16x16xf32>
    %23 = tpu.matmul %20, %22, %cst_29 {dimension_numbers = #tpu.dot_dimension_numbers<[1], [0], [0], [1], [0, 0, 1, 1], [], []>} : vector<16x16xf32>, vector<16x16xf32>, vector<16x16xf32> -> vector<16x16xf32>
    %24 = arith.addf %19, %23 : vector<16x16xf32>
    %c0_30 = arith.constant 0 : index
    %c0_31 = arith.constant 0 : index
    %c0_32 = arith.constant 0 : index
    %25 = vector.load %arg10[%c0_30, %c0_31, %c0_32] : memref<3x1x16xf32, #tpu.memory_space<vmem>>, vector<1x1x16xf32>
    %26 = vector.shape_cast %25 : vector<1x1x16xf32> to vector<1x16xf32>
    %27 = vector.broadcast %26 : vector<1x16xf32> to vector<16x16xf32>
    %28 = arith.mulf %24, %27 : vector<16x16xf32>
    %c0_33 = arith.constant 0 : index
    %c0_34 = arith.constant 0 : index
    %c0_35 = arith.constant 0 : index
    %29 = vector.load %arg11[%c0_33, %c0_34, %c0_35] : memref<3x1x16xf32, #tpu.memory_space<vmem>>, vector<1x1x16xf32>
    %30 = vector.shape_cast %29 : vector<1x1x16xf32> to vector<1x16xf32>
    %31 = vector.broadcast %30 : vector<1x16xf32> to vector<16x16xf32>
    %32 = arith.addf %28, %31 : vector<16x16xf32>
    %cst_36 = arith.constant 0.000000e+00 : f32
    %33 = vector.broadcast %cst_36 : f32 to vector<16x16xf32>
    %34 = arith.cmpf ogt, %32, %33 : vector<16x16xf32>
    %35 = math.exp %32 : vector<16x16xf32>
    %cst_37 = arith.constant 1.000000e+00 : f32
    %36 = vector.broadcast %cst_37 : f32 to vector<16x16xf32>
    %37 = arith.subf %35, %36 : vector<16x16xf32>
    %38 = arith.select %34, %32, %37 : vector<16x16xi1>, vector<16x16xf32>
    %c0_38 = arith.constant 0 : index
    %c0_39 = arith.constant 0 : index
    %39 = vector.load %arg30[%c0_38, %c0_39] : memref<32x16xf32, #tpu.memory_space<vmem>>, vector<16x16xf32>
    tpu.vector_store %arg30[%c0_38, %c0_39], %38 {strides = array<i32>} : memref<32x16xf32, #tpu.memory_space<vmem>>, vector<16x16xf32>,
    %c0_40 = arith.constant 0 : index
    %c0_41 = arith.constant 0 : index
    %40 = vector.load %arg12[%c0_40, %c0_41] : memref<16x32xf32, #tpu.memory_space<vmem>>, vector<16x32xf32>
    %cst_42 = arith.constant dense<0.000000e+00> : vector<16x32xf32>
    %41 = tpu.matmul %38, %40, %cst_42 {dimension_numbers = #tpu.dot_dimension_numbers<[1], [0], [0], [1], [0, 0, 1, 1], [], []>} : vector<16x16xf32>, vector<16x32xf32>, vector<16x32xf32> -> vector<16x32xf32>
    %c0_43 = arith.constant 0 : index
    %c0_44 = arith.constant 0 : index
    %42 = vector.load %arg13[%c0_43, %c0_44] : memref<1x32xf32, #tpu.memory_space<vmem>>, vector<1x32xf32>
    %43 = vector.broadcast %42 : vector<1x32xf32> to vector<16x32xf32>
    %44 = arith.addf %41, %43 : vector<16x32xf32>
    %c32 = arith.constant 32 : index
    %c0_45 = arith.constant 0 : index
    %45 = vector.load %arg29[%c32, %c0_45] : memref<60x32xf32, #tpu.memory_space<vmem>>, vector<16x32xf32>
    tpu.vector_store %arg29[%c32, %c0_45], %44 {strides = array<i32>} : memref<60x32xf32, #tpu.memory_space<vmem>>, vector<16x32xf32>,
    %c0_46 = arith.constant 0 : index
    %c0_47 = arith.constant 0 : index
    %46 = tpu.strided_load %arg30[%c0_46, %c0_47] {strides = array<i32: 2, 1>} : memref<32x16xf32, #tpu.memory_space<vmem>>, vector<8x16xf32>
    %c2 = arith.constant 2 : index
    %c0_48 = arith.constant 0 : index
    %c0_49 = arith.constant 0 : index
    %47 = vector.load %arg9[%c2, %c0_48, %c0_49] : memref<6x16x16xf32, #tpu.memory_space<vmem>>, vector<1x16x16xf32>
    %48 = vector.shape_cast %47 : vector<1x16x16xf32> to vector<16x16xf32>
    %cst_50 = arith.constant dense<0.000000e+00> : vector<8x16xf32>
    %49 = tpu.matmul %46, %48, %cst_50 {dimension_numbers = #tpu.dot_dimension_numbers<[1], [0], [0], [1], [0, 0, 1, 1], [], []>} : vector<8x16xf32>, vector<16x16xf32>, vector<8x16xf32> -> vector<8x16xf32>
    %c1_51 = arith.constant 1 : index
    %c0_52 = arith.constant 0 : index
    %50 = tpu.strided_load %arg30[%c1_51, %c0_52] {strides = array<i32: 2, 1>} : memref<32x16xf32, #tpu.memory_space<vmem>>, vector<8x16xf32>
    %c3 = arith.constant 3 : index
    %c0_53 = arith.constant 0 : index
    %c0_54 = arith.constant 0 : index
    %51 = vector.load %arg9[%c3, %c0_53, %c0_54] : memref<6x16x16xf32, #tpu.memory_space<vmem>>, vector<1x16x16xf32>
    %52 = vector.shape_cast %51 : vector<1x16x16xf32> to vector<16x16xf32>
    %cst_55 = arith.constant dense<0.000000e+00> : vector<8x16xf32>
    %53 = tpu.matmul %50, %52, %cst_55 {dimension_numbers = #tpu.dot_dimension_numbers<[1], [0], [0], [1], [0, 0, 1, 1], [], []>} : vector<8x16xf32>, vector<16x16xf32>, vector<8x16xf32> -> vector<8x16xf32>
    %54 = arith.addf %49, %53 : vector<8x16xf32>
    %c1_56 = arith.constant 1 : index
    %c0_57 = arith.constant 0 : index
    %c0_58 = arith.constant 0 : index
    %55 = vector.load %arg10[%c1_56, %c0_57, %c0_58] : memref<3x1x16xf32, #tpu.memory_space<vmem>>, vector<1x1x16xf32>
    %56 = vector.shape_cast %55 : vector<1x1x16xf32> to vector<1x16xf32>
    %57 = vector.broadcast %56 : vector<1x16xf32> to vector<8x16xf32>
    %58 = arith.mulf %54, %57 : vector<8x16xf32>
    %c1_59 = arith.constant 1 : index
    %c0_60 = arith.constant 0 : index
    %c0_61 = arith.constant 0 : index
    %59 = vector.load %arg11[%c1_59, %c0_60, %c0_61] : memref<3x1x16xf32, #tpu.memory_space<vmem>>, vector<1x1x16xf32>
    %60 = vector.shape_cast %59 : vector<1x1x16xf32> to vector<1x16xf32>
    %61 = vector.broadcast %60 : vector<1x16xf32> to vector<8x16xf32>
    %62 = arith.addf %58, %61 : vector<8x16xf32>
    %cst_62 = arith.constant 0.000000e+00 : f32
    %63 = vector.broadcast %cst_62 : f32 to vector<8x16xf32>
    %64 = arith.cmpf ogt, %62, %63 : vector<8x16xf32>
    %65 = math.exp %62 : vector<8x16xf32>
    %cst_63 = arith.constant 1.000000e+00 : f32
    %66 = vector.broadcast %cst_63 : f32 to vector<8x16xf32>
    %67 = arith.subf %65, %66 : vector<8x16xf32>
    %68 = arith.select %64, %62, %67 : vector<8x16xi1>, vector<8x16xf32>
    %c0_64 = arith.constant 0 : index
    %c0_65 = arith.constant 0 : index
    %69 = vector.load %arg30[%c0_64, %c0_65] : memref<32x16xf32, #tpu.memory_space<vmem>>, vector<8x16xf32>
    tpu.vector_store %arg30[%c0_64, %c0_65], %68 {strides = array<i32>} : memref<32x16xf32, #tpu.memory_space<vmem>>, vector<8x16xf32>,
    %c0_66 = arith.constant 0 : index
    %c0_67 = arith.constant 0 : index
    %70 = vector.load %arg12[%c0_66, %c0_67] : memref<16x32xf32, #tpu.memory_space<vmem>>, vector<16x32xf32>
    %cst_68 = arith.constant dense<0.000000e+00> : vector<8x32xf32>
    %71 = tpu.matmul %68, %70, %cst_68 {dimension_numbers = #tpu.dot_dimension_numbers<[1], [0], [0], [1], [0, 0, 1, 1], [], []>} : vector<8x16xf32>, vector<16x32xf32>, vector<8x32xf32> -> vector<8x32xf32>
    %c0_69 = arith.constant 0 : index
    %c0_70 = arith.constant 0 : index
    %72 = vector.load %arg13[%c0_69, %c0_70] : memref<1x32xf32, #tpu.memory_space<vmem>>, vector<1x32xf32>
    %73 = vector.broadcast %72 : vector<1x32xf32> to vector<8x32xf32>
    %74 = arith.addf %71, %73 : vector<8x32xf32>
    %c48 = arith.constant 48 : index
    %c0_71 = arith.constant 0 : index
    %75 = vector.load %arg29[%c48, %c0_71] : memref<60x32xf32, #tpu.memory_space<vmem>>, vector<8x32xf32>
    tpu.vector_store %arg29[%c48, %c0_71], %74 {strides = array<i32>} : memref<60x32xf32, #tpu.memory_space<vmem>>, vector<8x32xf32>,
    %c0_72 = arith.constant 0 : index
    %c0_73 = arith.constant 0 : index
    %76 = tpu.strided_load %arg30[%c0_72, %c0_73] {strides = array<i32: 2, 1>} : memref<32x16xf32, #tpu.memory_space<vmem>>, vector<4x16xf32>
    %c4 = arith.constant 4 : index
    %c0_74 = arith.constant 0 : index
    %c0_75 = arith.constant 0 : index
    %77 = vector.load %arg9[%c4, %c0_74, %c0_75] : memref<6x16x16xf32, #tpu.memory_space<vmem>>, vector<1x16x16xf32>
    %78 = vector.shape_cast %77 : vector<1x16x16xf32> to vector<16x16xf32>
    %cst_76 = arith.constant dense<0.000000e+00> : vector<4x16xf32>
    %79 = tpu.matmul %76, %78, %cst_76 {dimension_numbers = #tpu.dot_dimension_numbers<[1], [0], [0], [1], [0, 0, 1, 1], [], []>} : vector<4x16xf32>, vector<16x16xf32>, vector<4x16xf32> -> vector<4x16xf32>
    %c1_77 = arith.constant 1 : index
    %c0_78 = arith.constant 0 : index
    %80 = tpu.strided_load %arg30[%c1_77, %c0_78] {strides = array<i32: 2, 1>} : memref<32x16xf32, #tpu.memory_space<vmem>>, vector<4x16xf32>
    %c5 = arith.constant 5 : index
    %c0_79 = arith.constant 0 : index
    %c0_80 = arith.constant 0 : index
    %81 = vector.load %arg9[%c5, %c0_79, %c0_80] : memref<6x16x16xf32, #tpu.memory_space<vmem>>, vector<1x16x16xf32>
    %82 = vector.shape_cast %81 : vector<1x16x16xf32> to vector<16x16xf32>
    %cst_81 = arith.constant dense<0.000000e+00> : vector<4x16xf32>
    %83 = tpu.matmul %80, %82, %cst_81 {dimension_numbers = #tpu.dot_dimension_numbers<[1], [0], [0], [1], [0, 0, 1, 1], [], []>} : vector<4x16xf32>, vector<16x16xf32>, vector<4x16xf32> -> vector<4x16xf32>
    %84 = arith.addf %79, %83 : vector<4x16xf32>
    %c2_82 = arith.constant 2 : index
    %c0_83 = arith.constant 0 : index
    %c0_84 = arith.constant 0 : index
    %85 = vector.load %arg10[%c2_82, %c0_83, %c0_84] : memref<3x1x16xf32, #tpu.memory_space<vmem>>, vector<1x1x16xf32>
    %86 = vector.shape_cast %85 : vector<1x1x16xf32> to vector<1x16xf32>
    %87 = vector.broadcast %86 : vector<1x16xf32> to vector<4x16xf32>
    %88 = arith.mulf %84, %87 : vector<4x16xf32>
    %c2_85 = arith.constant 2 : index
    %c0_86 = arith.constant 0 : index
    %c0_87 = arith.constant 0 : index
    %89 = vector.load %arg11[%c2_85, %c0_86, %c0_87] : memref<3x1x16xf32, #tpu.memory_space<vmem>>, vector<1x1x16xf32>
    %90 = vector.shape_cast %89 : vector<1x1x16xf32> to vector<1x16xf32>
    %91 = vector.broadcast %90 : vector<1x16xf32> to vector<4x16xf32>
    %92 = arith.addf %88, %91 : vector<4x16xf32>
    %cst_88 = arith.constant 0.000000e+00 : f32
    %93 = vector.broadcast %cst_88 : f32 to vector<4x16xf32>
    %94 = arith.cmpf ogt, %92, %93 : vector<4x16xf32>
    %95 = math.exp %92 : vector<4x16xf32>
    %cst_89 = arith.constant 1.000000e+00 : f32
    %96 = vector.broadcast %cst_89 : f32 to vector<4x16xf32>
    %97 = arith.subf %95, %96 : vector<4x16xf32>
    %98 = arith.select %94, %92, %97 : vector<4x16xi1>, vector<4x16xf32>
    %c0_90 = arith.constant 0 : index
    %c0_91 = arith.constant 0 : index
    %99 = vector.load %arg12[%c0_90, %c0_91] : memref<16x32xf32, #tpu.memory_space<vmem>>, vector<16x32xf32>
    %cst_92 = arith.constant dense<0.000000e+00> : vector<4x32xf32>
    %100 = tpu.matmul %98, %99, %cst_92 {dimension_numbers = #tpu.dot_dimension_numbers<[1], [0], [0], [1], [0, 0, 1, 1], [], []>} : vector<4x16xf32>, vector<16x32xf32>, vector<4x32xf32> -> vector<4x32xf32>
    %c0_93 = arith.constant 0 : index
    %c0_94 = arith.constant 0 : index
    %101 = vector.load %arg13[%c0_93, %c0_94] : memref<1x32xf32, #tpu.memory_space<vmem>>, vector<1x32xf32>
    %102 = vector.broadcast %101 : vector<1x32xf32> to vector<4x32xf32>
    %103 = arith.addf %100, %102 : vector<4x32xf32>
    %c56 = arith.constant 56 : index
    %c0_95 = arith.constant 0 : index
    %104 = vector.load %arg29[%c56, %c0_95] : memref<60x32xf32, #tpu.memory_space<vmem>>, vector<4x32xf32>
    tpu.vector_store %arg29[%c56, %c0_95], %103 {strides = array<i32>} : memref<60x32xf32, #tpu.memory_space<vmem>>, vector<4x32xf32>,
    %c0_96 = arith.constant 0 : index
    %c0_97 = arith.constant 0 : index
    %105 = vector.load %arg29[%c0_96, %c0_97] : memref<60x32xf32, #tpu.memory_space<vmem>>, vector<60x32xf32>
    %c0_98 = arith.constant 0 : index
    %c0_99 = arith.constant 0 : index
    %106 = vector.load %arg14[%c0_98, %c0_99] : memref<1x32xf32, #tpu.memory_space<vmem>>, vector<1x32xf32>
    %c0_100 = arith.constant 0 : index
    %c0_101 = arith.constant 0 : index
    %107 = vector.load %arg15[%c0_100, %c0_101] : memref<1x32xf32, #tpu.memory_space<vmem>>, vector<1x32xf32>
    %cst_102 = arith.constant dense<0.000000e+00> : vector<60xf32>
    %108 = vector.multi_reduction <add>, %105, %cst_102 [1] : vector<60x32xf32> to vector<60xf32>
    %109 = vector.shape_cast %108 : vector<60xf32> to vector<60x1xf32>
    %cst_103 = arith.constant 3.200000e+01 : f32
    %110 = vector.broadcast %cst_103 : f32 to vector<60x1xf32>
    %111 = arith.divf %109, %110 : vector<60x1xf32>
    %112 = vector.broadcast %111 : vector<60x1xf32> to vector<60x32xf32>
    %113 = arith.subf %105, %112 : vector<60x32xf32>
    %114 = arith.mulf %113, %113 : vector<60x32xf32>
    %cst_104 = arith.constant dense<0.000000e+00> : vector<60xf32>
    %115 = vector.multi_reduction <add>, %114, %cst_104 [1] : vector<60x32xf32> to vector<60xf32>
    %116 = vector.shape_cast %115 : vector<60xf32> to vector<60x1xf32>
    %cst_105 = arith.constant 3.200000e+01 : f32
    %117 = vector.broadcast %cst_105 : f32 to vector<60x1xf32>
    %118 = arith.divf %116, %117 : vector<60x1xf32>
    %119 = vector.broadcast %111 : vector<60x1xf32> to vector<60x32xf32>
    %120 = arith.subf %105, %119 : vector<60x32xf32>
    %cst_106 = arith.constant 9.99999974E-6 : f32
    %121 = vector.broadcast %cst_106 : f32 to vector<60x1xf32>
    %122 = arith.addf %118, %121 : vector<60x1xf32>
    %123 = math.rsqrt %122 : vector<60x1xf32>
    %124 = vector.broadcast %123 : vector<60x1xf32> to vector<60x32xf32>
    %125 = arith.mulf %120, %124 : vector<60x32xf32>
    %126 = vector.broadcast %106 : vector<1x32xf32> to vector<60x32xf32>
    %127 = arith.mulf %125, %126 : vector<60x32xf32>
    %128 = vector.broadcast %107 : vector<1x32xf32> to vector<60x32xf32>
    %129 = arith.addf %127, %128 : vector<60x32xf32>
    %c0_107 = arith.constant 0 : index
    %c0_108 = arith.constant 0 : index
    %130 = vector.load %arg3[%c0_107, %c0_108] : memref<60x60xf32, #tpu.memory_space<vmem>>, vector<60x60xf32>
    %c0_109 = arith.constant 0 : index
    %c0_110 = arith.constant 0 : index
    %c0_111 = arith.constant 0 : index
    %131 = vector.load %arg16[%c0_109, %c0_110, %c0_111] : memref<2x32x96xf32, #tpu.memory_space<vmem>>, vector<1x32x96xf32>
    %132 = vector.shape_cast %131 : vector<1x32x96xf32> to vector<32x96xf32>
    %cst_112 = arith.constant dense<0.000000e+00> : vector<60x96xf32>
    %133 = tpu.matmul %129, %132, %cst_112 {dimension_numbers = #tpu.dot_dimension_numbers<[1], [0], [0], [1], [0, 0, 1, 1], [], []>} : vector<60x32xf32>, vector<32x96xf32>, vector<60x96xf32> -> vector<60x96xf32>
    %134 = vector.extract_strided_slice %133 {offsets = [0, 0], sizes = [60, 16], strides = [1, 1]} : vector<60x96xf32> to vector<60x16xf32>
    %135 = vector.extract_strided_slice %133 {offsets = [0, 32], sizes = [60, 16], strides = [1, 1]} : vector<60x96xf32> to vector<60x16xf32>
    %136 = vector.extract_strided_slice %133 {offsets = [0, 64], sizes = [60, 16], strides = [1, 1]} : vector<60x96xf32> to vector<60x16xf32>
    %cst_113 = arith.constant dense<0.000000e+00> : vector<60x60xf32>
    %137 = tpu.matmul %134, %135, %cst_113 {dimension_numbers = #tpu.dot_dimension_numbers<[1], [1], [0], [0], [0, 0, 1, 0], [], []>} : vector<60x16xf32>, vector<60x16xf32>, vector<60x60xf32> -> vector<60x60xf32>
    %138 = arith.addf %137, %130 : vector<60x60xf32>
    %cst_114 = arith.constant dense<0xFF800000> : vector<60xf32>
    %139 = vector.multi_reduction <maximumf>, %138, %cst_114 [1] : vector<60x60xf32> to vector<60xf32>
    %140 = vector.shape_cast %139 : vector<60xf32> to vector<60x1xf32>
    %141 = vector.broadcast %140 : vector<60x1xf32> to vector<60x60xf32>
    %142 = arith.subf %138, %141 : vector<60x60xf32>
    %143 = math.exp %142 : vector<60x60xf32>
    %cst_115 = arith.constant dense<0.000000e+00> : vector<60xf32>
    %144 = vector.multi_reduction <add>, %143, %cst_115 [1] : vector<60x60xf32> to vector<60xf32>
    %145 = vector.shape_cast %144 : vector<60xf32> to vector<60x1xf32>
    %146 = tpu.reciprocal %145 {approx = true} : vector<60x1xf32> -> vector<60x1xf32>
    %147 = vector.broadcast %146 : vector<60x1xf32> to vector<60x60xf32>
    %148 = arith.mulf %143, %147 : vector<60x60xf32>
    %cst_116 = arith.constant dense<0.000000e+00> : vector<60x16xf32>
    %149 = tpu.matmul %148, %136, %cst_116 {dimension_numbers = #tpu.dot_dimension_numbers<[1], [0], [0], [1], [0, 0, 1, 1], [], []>} : vector<60x60xf32>, vector<60x16xf32>, vector<60x16xf32> -> vector<60x16xf32>
    %c0_117 = arith.constant 0 : index
    %c0_118 = arith.constant 0 : index
    %150 = vector.load %arg31[%c0_117, %c0_118] : memref<60x32xf32, #tpu.memory_space<vmem>>, vector<60x16xf32>
    tpu.vector_store %arg31[%c0_117, %c0_118], %149 {strides = array<i32>} : memref<60x32xf32, #tpu.memory_space<vmem>>, vector<60x16xf32>,
    %151 = vector.extract_strided_slice %133 {offsets = [0, 16], sizes = [60, 16], strides = [1, 1]} : vector<60x96xf32> to vector<60x16xf32>
    %152 = vector.extract_strided_slice %133 {offsets = [0, 48], sizes = [60, 16], strides = [1, 1]} : vector<60x96xf32> to vector<60x16xf32>
    %153 = vector.extract_strided_slice %133 {offsets = [0, 80], sizes = [60, 16], strides = [1, 1]} : vector<60x96xf32> to vector<60x16xf32>
    %cst_119 = arith.constant dense<0.000000e+00> : vector<60x60xf32>
    %154 = tpu.matmul %151, %152, %cst_119 {dimension_numbers = #tpu.dot_dimension_numbers<[1], [1], [0], [0], [0, 0, 1, 0], [], []>} : vector<60x16xf32>, vector<60x16xf32>, vector<60x60xf32> -> vector<60x60xf32>
    %155 = arith.addf %154, %130 : vector<60x60xf32>
    %cst_120 = arith.constant dense<0xFF800000> : vector<60xf32>
    %156 = vector.multi_reduction <maximumf>, %155, %cst_120 [1] : vector<60x60xf32> to vector<60xf32>
    %157 = vector.shape_cast %156 : vector<60xf32> to vector<60x1xf32>
    %158 = vector.broadcast %157 : vector<60x1xf32> to vector<60x60xf32>
    %159 = arith.subf %155, %158 : vector<60x60xf32>
    %160 = math.exp %159 : vector<60x60xf32>
    %cst_121 = arith.constant dense<0.000000e+00> : vector<60xf32>
    %161 = vector.multi_reduction <add>, %160, %cst_121 [1] : vector<60x60xf32> to vector<60xf32>
    %162 = vector.shape_cast %161 : vector<60xf32> to vector<60x1xf32>
    %163 = tpu.reciprocal %162 {approx = true} : vector<60x1xf32> -> vector<60x1xf32>
    %164 = vector.broadcast %163 : vector<60x1xf32> to vector<60x60xf32>
    %165 = arith.mulf %160, %164 : vector<60x60xf32>
    %cst_122 = arith.constant dense<0.000000e+00> : vector<60x16xf32>
    %166 = tpu.matmul %165, %153, %cst_122 {dimension_numbers = #tpu.dot_dimension_numbers<[1], [0], [0], [1], [0, 0, 1, 1], [], []>} : vector<60x60xf32>, vector<60x16xf32>, vector<60x16xf32> -> vector<60x16xf32>
    %c0_123 = arith.constant 0 : index
    %c16 = arith.constant 16 : index
    %167 = vector.load %arg31[%c0_123, %c16] : memref<60x32xf32, #tpu.memory_space<vmem>>, vector<60x16xf32>
    tpu.vector_store %arg31[%c0_123, %c16], %166 {strides = array<i32>} : memref<60x32xf32, #tpu.memory_space<vmem>>, vector<60x16xf32>,
    %c0_124 = arith.constant 0 : index
    %c0_125 = arith.constant 0 : index
    %168 = vector.load %arg31[%c0_124, %c0_125] : memref<60x32xf32, #tpu.memory_space<vmem>>, vector<60x32xf32>
    %c0_126 = arith.constant 0 : index
    %c0_127 = arith.constant 0 : index
    %c0_128 = arith.constant 0 : index
    %169 = vector.load %arg17[%c0_126, %c0_127, %c0_128] : memref<2x32x32xf32, #tpu.memory_space<vmem>>, vector<1x32x32xf32>
    %170 = vector.shape_cast %169 : vector<1x32x32xf32> to vector<32x32xf32>
    %cst_129 = arith.constant dense<0.000000e+00> : vector<60x32xf32>
    %171 = tpu.matmul %168, %170, %cst_129 {dimension_numbers = #tpu.dot_dimension_numbers<[1], [0], [0], [1], [0, 0, 1, 1], [], []>} : vector<60x32xf32>, vector<32x32xf32>, vector<60x32xf32> -> vector<60x32xf32>
    %c0_130 = arith.constant 0 : index
    %c0_131 = arith.constant 0 : index
    %c0_132 = arith.constant 0 : index
    %172 = vector.load %arg18[%c0_130, %c0_131, %c0_132] : memref<2x1x32xf32, #tpu.memory_space<vmem>>, vector<1x1x32xf32>
    %173 = vector.shape_cast %172 : vector<1x1x32xf32> to vector<1x32xf32>
    %174 = vector.broadcast %173 : vector<1x32xf32> to vector<60x32xf32>
    %175 = arith.addf %171, %174 : vector<60x32xf32>
    %176 = arith.addf %175, %129 : vector<60x32xf32>
    %c0_133 = arith.constant 0 : index
    %c0_134 = arith.constant 0 : index
    %c0_135 = arith.constant 0 : index
    %177 = vector.load %arg19[%c0_133, %c0_134, %c0_135] : memref<2x1x32xf32, #tpu.memory_space<vmem>>, vector<1x1x32xf32>
    %178 = vector.shape_cast %177 : vector<1x1x32xf32> to vector<1x32xf32>
    %c0_136 = arith.constant 0 : index
    %c0_137 = arith.constant 0 : index
    %c0_138 = arith.constant 0 : index
    %179 = vector.load %arg20[%c0_136, %c0_137, %c0_138] : memref<2x1x32xf32, #tpu.memory_space<vmem>>, vector<1x1x32xf32>
    %180 = vector.shape_cast %179 : vector<1x1x32xf32> to vector<1x32xf32>
    %cst_139 = arith.constant dense<0.000000e+00> : vector<60xf32>
    %181 = vector.multi_reduction <add>, %176, %cst_139 [1] : vector<60x32xf32> to vector<60xf32>
    %182 = vector.shape_cast %181 : vector<60xf32> to vector<60x1xf32>
    %cst_140 = arith.constant 3.200000e+01 : f32
    %183 = vector.broadcast %cst_140 : f32 to vector<60x1xf32>
    %184 = arith.divf %182, %183 : vector<60x1xf32>
    %185 = vector.broadcast %184 : vector<60x1xf32> to vector<60x32xf32>
    %186 = arith.subf %176, %185 : vector<60x32xf32>
    %187 = arith.mulf %186, %186 : vector<60x32xf32>
    %cst_141 = arith.constant dense<0.000000e+00> : vector<60xf32>
    %188 = vector.multi_reduction <add>, %187, %cst_141 [1] : vector<60x32xf32> to vector<60xf32>
    %189 = vector.shape_cast %188 : vector<60xf32> to vector<60x1xf32>
    %cst_142 = arith.constant 3.200000e+01 : f32
    %190 = vector.broadcast %cst_142 : f32 to vector<60x1xf32>
    %191 = arith.divf %189, %190 : vector<60x1xf32>
    %192 = vector.broadcast %184 : vector<60x1xf32> to vector<60x32xf32>
    %193 = arith.subf %176, %192 : vector<60x32xf32>
    %cst_143 = arith.constant 9.99999997E-7 : f32
    %194 = vector.broadcast %cst_143 : f32 to vector<60x1xf32>
    %195 = arith.addf %191, %194 : vector<60x1xf32>
    %196 = math.rsqrt %195 : vector<60x1xf32>
    %197 = vector.broadcast %196 : vector<60x1xf32> to vector<60x32xf32>
    %198 = arith.mulf %193, %197 : vector<60x32xf32>
    %199 = vector.broadcast %178 : vector<1x32xf32> to vector<60x32xf32>
    %200 = arith.mulf %198, %199 : vector<60x32xf32>
    %201 = vector.broadcast %180 : vector<1x32xf32> to vector<60x32xf32>
    %202 = arith.addf %200, %201 : vector<60x32xf32>
    %c0_144 = arith.constant 0 : index
    %c0_145 = arith.constant 0 : index
    %c0_146 = arith.constant 0 : index
    %203 = vector.load %arg21[%c0_144, %c0_145, %c0_146] : memref<2x32x64xf32, #tpu.memory_space<vmem>>, vector<1x32x64xf32>
    %204 = vector.shape_cast %203 : vector<1x32x64xf32> to vector<32x64xf32>
    %cst_147 = arith.constant dense<0.000000e+00> : vector<60x64xf32>
    %205 = tpu.matmul %202, %204, %cst_147 {dimension_numbers = #tpu.dot_dimension_numbers<[1], [0], [0], [1], [0, 0, 1, 1], [], []>} : vector<60x32xf32>, vector<32x64xf32>, vector<60x64xf32> -> vector<60x64xf32>
    %c0_148 = arith.constant 0 : index
    %c0_149 = arith.constant 0 : index
    %c0_150 = arith.constant 0 : index
    %206 = vector.load %arg22[%c0_148, %c0_149, %c0_150] : memref<2x1x64xf32, #tpu.memory_space<vmem>>, vector<1x1x64xf32>
    %207 = vector.shape_cast %206 : vector<1x1x64xf32> to vector<1x64xf32>
    %208 = vector.broadcast %207 : vector<1x64xf32> to vector<60x64xf32>
    %209 = arith.addf %205, %208 : vector<60x64xf32>
    %cst_151 = arith.constant 5.000000e-01 : f32
    %210 = vector.broadcast %cst_151 : f32 to vector<60x64xf32>
    %211 = arith.mulf %210, %209 : vector<60x64xf32>
    %cst_152 = arith.constant 4.471500e-02 : f32
    %212 = vector.broadcast %cst_152 : f32 to vector<60x64xf32>
    %213 = arith.mulf %212, %209 : vector<60x64xf32>
    %214 = arith.mulf %213, %209 : vector<60x64xf32>
    %215 = arith.mulf %214, %209 : vector<60x64xf32>
    %216 = arith.addf %209, %215 : vector<60x64xf32>
    %cst_153 = arith.constant 0.797884583 : f32
    %217 = vector.broadcast %cst_153 : f32 to vector<60x64xf32>
    %218 = arith.mulf %217, %216 : vector<60x64xf32>
    %219 = math.tanh %218 : vector<60x64xf32>
    %cst_154 = arith.constant 1.000000e+00 : f32
    %220 = vector.broadcast %cst_154 : f32 to vector<60x64xf32>
    %221 = arith.addf %220, %219 : vector<60x64xf32>
    %222 = arith.mulf %211, %221 : vector<60x64xf32>
    %c0_155 = arith.constant 0 : index
    %c0_156 = arith.constant 0 : index
    %c0_157 = arith.constant 0 : index
    %223 = vector.load %arg23[%c0_155, %c0_156, %c0_157] : memref<2x64x32xf32, #tpu.memory_space<vmem>>, vector<1x64x32xf32>
    %224 = vector.shape_cast %223 : vector<1x64x32xf32> to vector<64x32xf32>
    %cst_158 = arith.constant dense<0.000000e+00> : vector<60x32xf32>
    %225 = tpu.matmul %222, %224, %cst_158 {dimension_numbers = #tpu.dot_dimension_numbers<[1], [0], [0], [1], [0, 0, 1, 1], [], []>} : vector<60x64xf32>, vector<64x32xf32>, vector<60x32xf32> -> vector<60x32xf32>
    %c0_159 = arith.constant 0 : index
    %c0_160 = arith.constant 0 : index
    %c0_161 = arith.constant 0 : index
    %226 = vector.load %arg24[%c0_159, %c0_160, %c0_161] : memref<2x1x32xf32, #tpu.memory_space<vmem>>, vector<1x1x32xf32>
    %227 = vector.shape_cast %226 : vector<1x1x32xf32> to vector<1x32xf32>
    %228 = vector.broadcast %227 : vector<1x32xf32> to vector<60x32xf32>
    %229 = arith.addf %225, %228 : vector<60x32xf32>
    %230 = arith.addf %229, %202 : vector<60x32xf32>
    %c0_162 = arith.constant 0 : index
    %c0_163 = arith.constant 0 : index
    %c0_164 = arith.constant 0 : index
    %231 = vector.load %arg25[%c0_162, %c0_163, %c0_164] : memref<2x1x32xf32, #tpu.memory_space<vmem>>, vector<1x1x32xf32>
    %232 = vector.shape_cast %231 : vector<1x1x32xf32> to vector<1x32xf32>
    %c0_165 = arith.constant 0 : index
    %c0_166 = arith.constant 0 : index
    %c0_167 = arith.constant 0 : index
    %233 = vector.load %arg26[%c0_165, %c0_166, %c0_167] : memref<2x1x32xf32, #tpu.memory_space<vmem>>, vector<1x1x32xf32>
    %234 = vector.shape_cast %233 : vector<1x1x32xf32> to vector<1x32xf32>
    %cst_168 = arith.constant dense<0.000000e+00> : vector<60xf32>
    %235 = vector.multi_reduction <add>, %230, %cst_168 [1] : vector<60x32xf32> to vector<60xf32>
    %236 = vector.shape_cast %235 : vector<60xf32> to vector<60x1xf32>
    %cst_169 = arith.constant 3.200000e+01 : f32
    %237 = vector.broadcast %cst_169 : f32 to vector<60x1xf32>
    %238 = arith.divf %236, %237 : vector<60x1xf32>
    %239 = vector.broadcast %238 : vector<60x1xf32> to vector<60x32xf32>
    %240 = arith.subf %230, %239 : vector<60x32xf32>
    %241 = arith.mulf %240, %240 : vector<60x32xf32>
    %cst_170 = arith.constant dense<0.000000e+00> : vector<60xf32>
    %242 = vector.multi_reduction <add>, %241, %cst_170 [1] : vector<60x32xf32> to vector<60xf32>
    %243 = vector.shape_cast %242 : vector<60xf32> to vector<60x1xf32>
    %cst_171 = arith.constant 3.200000e+01 : f32
    %244 = vector.broadcast %cst_171 : f32 to vector<60x1xf32>
    %245 = arith.divf %243, %244 : vector<60x1xf32>
    %246 = vector.broadcast %238 : vector<60x1xf32> to vector<60x32xf32>
    %247 = arith.subf %230, %246 : vector<60x32xf32>
    %cst_172 = arith.constant 9.99999997E-7 : f32
    %248 = vector.broadcast %cst_172 : f32 to vector<60x1xf32>
    %249 = arith.addf %245, %248 : vector<60x1xf32>
    %250 = math.rsqrt %249 : vector<60x1xf32>
    %251 = vector.broadcast %250 : vector<60x1xf32> to vector<60x32xf32>
    %252 = arith.mulf %247, %251 : vector<60x32xf32>
    %253 = vector.broadcast %232 : vector<1x32xf32> to vector<60x32xf32>
    %254 = arith.mulf %252, %253 : vector<60x32xf32>
    %255 = vector.broadcast %234 : vector<1x32xf32> to vector<60x32xf32>
    %256 = arith.addf %254, %255 : vector<60x32xf32>
    %c1_173 = arith.constant 1 : index
    %c0_174 = arith.constant 0 : index
    %c0_175 = arith.constant 0 : index
    %257 = vector.load %arg16[%c1_173, %c0_174, %c0_175] : memref<2x32x96xf32, #tpu.memory_space<vmem>>, vector<1x32x96xf32>
    %258 = vector.shape_cast %257 : vector<1x32x96xf32> to vector<32x96xf32>
    %cst_176 = arith.constant dense<0.000000e+00> : vector<60x96xf32>
    %259 = tpu.matmul %256, %258, %cst_176 {dimension_numbers = #tpu.dot_dimension_numbers<[1], [0], [0], [1], [0, 0, 1, 1], [], []>} : vector<60x32xf32>, vector<32x96xf32>, vector<60x96xf32> -> vector<60x96xf32>
    %260 = vector.extract_strided_slice %259 {offsets = [0, 0], sizes = [60, 16], strides = [1, 1]} : vector<60x96xf32> to vector<60x16xf32>
    %261 = vector.extract_strided_slice %259 {offsets = [0, 32], sizes = [60, 16], strides = [1, 1]} : vector<60x96xf32> to vector<60x16xf32>
    %262 = vector.extract_strided_slice %259 {offsets = [0, 64], sizes = [60, 16], strides = [1, 1]} : vector<60x96xf32> to vector<60x16xf32>
    %cst_177 = arith.constant dense<0.000000e+00> : vector<60x60xf32>
    %263 = tpu.matmul %260, %261, %cst_177 {dimension_numbers = #tpu.dot_dimension_numbers<[1], [1], [0], [0], [0, 0, 1, 0], [], []>} : vector<60x16xf32>, vector<60x16xf32>, vector<60x60xf32> -> vector<60x60xf32>
    %264 = arith.addf %263, %130 : vector<60x60xf32>
    %cst_178 = arith.constant dense<0xFF800000> : vector<60xf32>
    %265 = vector.multi_reduction <maximumf>, %264, %cst_178 [1] : vector<60x60xf32> to vector<60xf32>
    %266 = vector.shape_cast %265 : vector<60xf32> to vector<60x1xf32>
    %267 = vector.broadcast %266 : vector<60x1xf32> to vector<60x60xf32>
    %268 = arith.subf %264, %267 : vector<60x60xf32>
    %269 = math.exp %268 : vector<60x60xf32>
    %cst_179 = arith.constant dense<0.000000e+00> : vector<60xf32>
    %270 = vector.multi_reduction <add>, %269, %cst_179 [1] : vector<60x60xf32> to vector<60xf32>
    %271 = vector.shape_cast %270 : vector<60xf32> to vector<60x1xf32>
    %272 = tpu.reciprocal %271 {approx = true} : vector<60x1xf32> -> vector<60x1xf32>
    %273 = vector.broadcast %272 : vector<60x1xf32> to vector<60x60xf32>
    %274 = arith.mulf %269, %273 : vector<60x60xf32>
    %cst_180 = arith.constant dense<0.000000e+00> : vector<60x16xf32>
    %275 = tpu.matmul %274, %262, %cst_180 {dimension_numbers = #tpu.dot_dimension_numbers<[1], [0], [0], [1], [0, 0, 1, 1], [], []>} : vector<60x60xf32>, vector<60x16xf32>, vector<60x16xf32> -> vector<60x16xf32>
    %c0_181 = arith.constant 0 : index
    %c0_182 = arith.constant 0 : index
    %276 = vector.load %arg31[%c0_181, %c0_182] : memref<60x32xf32, #tpu.memory_space<vmem>>, vector<60x16xf32>
    tpu.vector_store %arg31[%c0_181, %c0_182], %275 {strides = array<i32>} : memref<60x32xf32, #tpu.memory_space<vmem>>, vector<60x16xf32>,
    %277 = vector.extract_strided_slice %259 {offsets = [0, 16], sizes = [60, 16], strides = [1, 1]} : vector<60x96xf32> to vector<60x16xf32>
    %278 = vector.extract_strided_slice %259 {offsets = [0, 48], sizes = [60, 16], strides = [1, 1]} : vector<60x96xf32> to vector<60x16xf32>
    %279 = vector.extract_strided_slice %259 {offsets = [0, 80], sizes = [60, 16], strides = [1, 1]} : vector<60x96xf32> to vector<60x16xf32>
    %cst_183 = arith.constant dense<0.000000e+00> : vector<60x60xf32>
    %280 = tpu.matmul %277, %278, %cst_183 {dimension_numbers = #tpu.dot_dimension_numbers<[1], [1], [0], [0], [0, 0, 1, 0], [], []>} : vector<60x16xf32>, vector<60x16xf32>, vector<60x60xf32> -> vector<60x60xf32>
    %281 = arith.addf %280, %130 : vector<60x60xf32>
    %cst_184 = arith.constant dense<0xFF800000> : vector<60xf32>
    %282 = vector.multi_reduction <maximumf>, %281, %cst_184 [1] : vector<60x60xf32> to vector<60xf32>
    %283 = vector.shape_cast %282 : vector<60xf32> to vector<60x1xf32>
    %284 = vector.broadcast %283 : vector<60x1xf32> to vector<60x60xf32>
    %285 = arith.subf %281, %284 : vector<60x60xf32>
    %286 = math.exp %285 : vector<60x60xf32>
    %cst_185 = arith.constant dense<0.000000e+00> : vector<60xf32>
    %287 = vector.multi_reduction <add>, %286, %cst_185 [1] : vector<60x60xf32> to vector<60xf32>
    %288 = vector.shape_cast %287 : vector<60xf32> to vector<60x1xf32>
    %289 = tpu.reciprocal %288 {approx = true} : vector<60x1xf32> -> vector<60x1xf32>
    %290 = vector.broadcast %289 : vector<60x1xf32> to vector<60x60xf32>
    %291 = arith.mulf %286, %290 : vector<60x60xf32>
    %cst_186 = arith.constant dense<0.000000e+00> : vector<60x16xf32>
    %292 = tpu.matmul %291, %279, %cst_186 {dimension_numbers = #tpu.dot_dimension_numbers<[1], [0], [0], [1], [0, 0, 1, 1], [], []>} : vector<60x60xf32>, vector<60x16xf32>, vector<60x16xf32> -> vector<60x16xf32>
    %c0_187 = arith.constant 0 : index
    %c16_188 = arith.constant 16 : index
    %293 = vector.load %arg31[%c0_187, %c16_188] : memref<60x32xf32, #tpu.memory_space<vmem>>, vector<60x16xf32>
    tpu.vector_store %arg31[%c0_187, %c16_188], %292 {strides = array<i32>} : memref<60x32xf32, #tpu.memory_space<vmem>>, vector<60x16xf32>,
    %c0_189 = arith.constant 0 : index
    %c0_190 = arith.constant 0 : index
    %294 = vector.load %arg31[%c0_189, %c0_190] : memref<60x32xf32, #tpu.memory_space<vmem>>, vector<60x32xf32>
    %c1_191 = arith.constant 1 : index
    %c0_192 = arith.constant 0 : index
    %c0_193 = arith.constant 0 : index
    %295 = vector.load %arg17[%c1_191, %c0_192, %c0_193] : memref<2x32x32xf32, #tpu.memory_space<vmem>>, vector<1x32x32xf32>
    %296 = vector.shape_cast %295 : vector<1x32x32xf32> to vector<32x32xf32>
    %cst_194 = arith.constant dense<0.000000e+00> : vector<60x32xf32>
    %297 = tpu.matmul %294, %296, %cst_194 {dimension_numbers = #tpu.dot_dimension_numbers<[1], [0], [0], [1], [0, 0, 1, 1], [], []>} : vector<60x32xf32>, vector<32x32xf32>, vector<60x32xf32> -> vector<60x32xf32>
    %c1_195 = arith.constant 1 : index
    %c0_196 = arith.constant 0 : index
    %c0_197 = arith.constant 0 : index
    %298 = vector.load %arg18[%c1_195, %c0_196, %c0_197] : memref<2x1x32xf32, #tpu.memory_space<vmem>>, vector<1x1x32xf32>
    %299 = vector.shape_cast %298 : vector<1x1x32xf32> to vector<1x32xf32>
    %300 = vector.broadcast %299 : vector<1x32xf32> to vector<60x32xf32>
    %301 = arith.addf %297, %300 : vector<60x32xf32>
    %302 = arith.addf %301, %256 : vector<60x32xf32>
    %c1_198 = arith.constant 1 : index
    %c0_199 = arith.constant 0 : index
    %c0_200 = arith.constant 0 : index
    %303 = vector.load %arg19[%c1_198, %c0_199, %c0_200] : memref<2x1x32xf32, #tpu.memory_space<vmem>>, vector<1x1x32xf32>
    %304 = vector.shape_cast %303 : vector<1x1x32xf32> to vector<1x32xf32>
    %c1_201 = arith.constant 1 : index
    %c0_202 = arith.constant 0 : index
    %c0_203 = arith.constant 0 : index
    %305 = vector.load %arg20[%c1_201, %c0_202, %c0_203] : memref<2x1x32xf32, #tpu.memory_space<vmem>>, vector<1x1x32xf32>
    %306 = vector.shape_cast %305 : vector<1x1x32xf32> to vector<1x32xf32>
    %cst_204 = arith.constant dense<0.000000e+00> : vector<60xf32>
    %307 = vector.multi_reduction <add>, %302, %cst_204 [1] : vector<60x32xf32> to vector<60xf32>
    %308 = vector.shape_cast %307 : vector<60xf32> to vector<60x1xf32>
    %cst_205 = arith.constant 3.200000e+01 : f32
    %309 = vector.broadcast %cst_205 : f32 to vector<60x1xf32>
    %310 = arith.divf %308, %309 : vector<60x1xf32>
    %311 = vector.broadcast %310 : vector<60x1xf32> to vector<60x32xf32>
    %312 = arith.subf %302, %311 : vector<60x32xf32>
    %313 = arith.mulf %312, %312 : vector<60x32xf32>
    %cst_206 = arith.constant dense<0.000000e+00> : vector<60xf32>
    %314 = vector.multi_reduction <add>, %313, %cst_206 [1] : vector<60x32xf32> to vector<60xf32>
    %315 = vector.shape_cast %314 : vector<60xf32> to vector<60x1xf32>
    %cst_207 = arith.constant 3.200000e+01 : f32
    %316 = vector.broadcast %cst_207 : f32 to vector<60x1xf32>
    %317 = arith.divf %315, %316 : vector<60x1xf32>
    %318 = vector.broadcast %310 : vector<60x1xf32> to vector<60x32xf32>
    %319 = arith.subf %302, %318 : vector<60x32xf32>
    %cst_208 = arith.constant 9.99999997E-7 : f32
    %320 = vector.broadcast %cst_208 : f32 to vector<60x1xf32>
    %321 = arith.addf %317, %320 : vector<60x1xf32>
    %322 = math.rsqrt %321 : vector<60x1xf32>
    %323 = vector.broadcast %322 : vector<60x1xf32> to vector<60x32xf32>
    %324 = arith.mulf %319, %323 : vector<60x32xf32>
    %325 = vector.broadcast %304 : vector<1x32xf32> to vector<60x32xf32>
    %326 = arith.mulf %324, %325 : vector<60x32xf32>
    %327 = vector.broadcast %306 : vector<1x32xf32> to vector<60x32xf32>
    %328 = arith.addf %326, %327 : vector<60x32xf32>
    %c1_209 = arith.constant 1 : index
    %c0_210 = arith.constant 0 : index
    %c0_211 = arith.constant 0 : index
    %329 = vector.load %arg21[%c1_209, %c0_210, %c0_211] : memref<2x32x64xf32, #tpu.memory_space<vmem>>, vector<1x32x64xf32>
    %330 = vector.shape_cast %329 : vector<1x32x64xf32> to vector<32x64xf32>
    %cst_212 = arith.constant dense<0.000000e+00> : vector<60x64xf32>
    %331 = tpu.matmul %328, %330, %cst_212 {dimension_numbers = #tpu.dot_dimension_numbers<[1], [0], [0], [1], [0, 0, 1, 1], [], []>} : vector<60x32xf32>, vector<32x64xf32>, vector<60x64xf32> -> vector<60x64xf32>
    %c1_213 = arith.constant 1 : index
    %c0_214 = arith.constant 0 : index
    %c0_215 = arith.constant 0 : index
    %332 = vector.load %arg22[%c1_213, %c0_214, %c0_215] : memref<2x1x64xf32, #tpu.memory_space<vmem>>, vector<1x1x64xf32>
    %333 = vector.shape_cast %332 : vector<1x1x64xf32> to vector<1x64xf32>
    %334 = vector.broadcast %333 : vector<1x64xf32> to vector<60x64xf32>
    %335 = arith.addf %331, %334 : vector<60x64xf32>
    %cst_216 = arith.constant 5.000000e-01 : f32
    %336 = vector.broadcast %cst_216 : f32 to vector<60x64xf32>
    %337 = arith.mulf %336, %335 : vector<60x64xf32>
    %cst_217 = arith.constant 4.471500e-02 : f32
    %338 = vector.broadcast %cst_217 : f32 to vector<60x64xf32>
    %339 = arith.mulf %338, %335 : vector<60x64xf32>
    %340 = arith.mulf %339, %335 : vector<60x64xf32>
    %341 = arith.mulf %340, %335 : vector<60x64xf32>
    %342 = arith.addf %335, %341 : vector<60x64xf32>
    %cst_218 = arith.constant 0.797884583 : f32
    %343 = vector.broadcast %cst_218 : f32 to vector<60x64xf32>
    %344 = arith.mulf %343, %342 : vector<60x64xf32>
    %345 = math.tanh %344 : vector<60x64xf32>
    %cst_219 = arith.constant 1.000000e+00 : f32
    %346 = vector.broadcast %cst_219 : f32 to vector<60x64xf32>
    %347 = arith.addf %346, %345 : vector<60x64xf32>
    %348 = arith.mulf %337, %347 : vector<60x64xf32>
    %c1_220 = arith.constant 1 : index
    %c0_221 = arith.constant 0 : index
    %c0_222 = arith.constant 0 : index
    %349 = vector.load %arg23[%c1_220, %c0_221, %c0_222] : memref<2x64x32xf32, #tpu.memory_space<vmem>>, vector<1x64x32xf32>
    %350 = vector.shape_cast %349 : vector<1x64x32xf32> to vector<64x32xf32>
    %cst_223 = arith.constant dense<0.000000e+00> : vector<60x32xf32>
    %351 = tpu.matmul %348, %350, %cst_223 {dimension_numbers = #tpu.dot_dimension_numbers<[1], [0], [0], [1], [0, 0, 1, 1], [], []>} : vector<60x64xf32>, vector<64x32xf32>, vector<60x32xf32> -> vector<60x32xf32>
    %c1_224 = arith.constant 1 : index
    %c0_225 = arith.constant 0 : index
    %c0_226 = arith.constant 0 : index
    %352 = vector.load %arg24[%c1_224, %c0_225, %c0_226] : memref<2x1x32xf32, #tpu.memory_space<vmem>>, vector<1x1x32xf32>
    %353 = vector.shape_cast %352 : vector<1x1x32xf32> to vector<1x32xf32>
    %354 = vector.broadcast %353 : vector<1x32xf32> to vector<60x32xf32>
    %355 = arith.addf %351, %354 : vector<60x32xf32>
    %356 = arith.addf %355, %328 : vector<60x32xf32>
    %c1_227 = arith.constant 1 : index
    %c0_228 = arith.constant 0 : index
    %c0_229 = arith.constant 0 : index
    %357 = vector.load %arg25[%c1_227, %c0_228, %c0_229] : memref<2x1x32xf32, #tpu.memory_space<vmem>>, vector<1x1x32xf32>
    %358 = vector.shape_cast %357 : vector<1x1x32xf32> to vector<1x32xf32>
    %c1_230 = arith.constant 1 : index
    %c0_231 = arith.constant 0 : index
    %c0_232 = arith.constant 0 : index
    %359 = vector.load %arg26[%c1_230, %c0_231, %c0_232] : memref<2x1x32xf32, #tpu.memory_space<vmem>>, vector<1x1x32xf32>
    %360 = vector.shape_cast %359 : vector<1x1x32xf32> to vector<1x32xf32>
    %cst_233 = arith.constant dense<0.000000e+00> : vector<60xf32>
    %361 = vector.multi_reduction <add>, %356, %cst_233 [1] : vector<60x32xf32> to vector<60xf32>
    %362 = vector.shape_cast %361 : vector<60xf32> to vector<60x1xf32>
    %cst_234 = arith.constant 3.200000e+01 : f32
    %363 = vector.broadcast %cst_234 : f32 to vector<60x1xf32>
    %364 = arith.divf %362, %363 : vector<60x1xf32>
    %365 = vector.broadcast %364 : vector<60x1xf32> to vector<60x32xf32>
    %366 = arith.subf %356, %365 : vector<60x32xf32>
    %367 = arith.mulf %366, %366 : vector<60x32xf32>
    %cst_235 = arith.constant dense<0.000000e+00> : vector<60xf32>
    %368 = vector.multi_reduction <add>, %367, %cst_235 [1] : vector<60x32xf32> to vector<60xf32>
    %369 = vector.shape_cast %368 : vector<60xf32> to vector<60x1xf32>
    %cst_236 = arith.constant 3.200000e+01 : f32
    %370 = vector.broadcast %cst_236 : f32 to vector<60x1xf32>
    %371 = arith.divf %369, %370 : vector<60x1xf32>
    %372 = vector.broadcast %364 : vector<60x1xf32> to vector<60x32xf32>
    %373 = arith.subf %356, %372 : vector<60x32xf32>
    %cst_237 = arith.constant 9.99999997E-7 : f32
    %374 = vector.broadcast %cst_237 : f32 to vector<60x1xf32>
    %375 = arith.addf %371, %374 : vector<60x1xf32>
    %376 = math.rsqrt %375 : vector<60x1xf32>
    %377 = vector.broadcast %376 : vector<60x1xf32> to vector<60x32xf32>
    %378 = arith.mulf %373, %377 : vector<60x32xf32>
    %379 = vector.broadcast %358 : vector<1x32xf32> to vector<60x32xf32>
    %380 = arith.mulf %378, %379 : vector<60x32xf32>
    %381 = vector.broadcast %360 : vector<1x32xf32> to vector<60x32xf32>
    %382 = arith.addf %380, %381 : vector<60x32xf32>
    %383 = vector.extract_strided_slice %382 {offsets = [15, 0], sizes = [1, 32], strides = [1, 1]} : vector<60x32xf32> to vector<1x32xf32>
    %c0_238 = arith.constant 0 : index
    %c0_239 = arith.constant 0 : index
    %384 = vector.load %arg32[%c0_238, %c0_239] : memref<2x128xf32, #tpu.memory_space<vmem>>, vector<1x32xf32>
    tpu.vector_store %arg32[%c0_238, %c0_239], %383 {strides = array<i32>} : memref<2x128xf32, #tpu.memory_space<vmem>>, vector<1x32xf32>,
    %385 = vector.extract_strided_slice %382 {offsets = [39, 0], sizes = [1, 32], strides = [1, 1]} : vector<60x32xf32> to vector<1x32xf32>
    %c0_240 = arith.constant 0 : index
    %c32_241 = arith.constant 32 : index
    %386 = vector.load %arg32[%c0_240, %c32_241] : memref<2x128xf32, #tpu.memory_space<vmem>>, vector<1x32xf32>
    tpu.vector_store %arg32[%c0_240, %c32_241], %385 {strides = array<i32>} : memref<2x128xf32, #tpu.memory_space<vmem>>, vector<1x32xf32>,
    %387 = vector.extract_strided_slice %382 {offsets = [51, 0], sizes = [1, 32], strides = [1, 1]} : vector<60x32xf32> to vector<1x32xf32>
    %c0_242 = arith.constant 0 : index
    %c64 = arith.constant 64 : index
    %388 = vector.load %arg32[%c0_242, %c64] : memref<2x128xf32, #tpu.memory_space<vmem>>, vector<1x32xf32>
    tpu.vector_store %arg32[%c0_242, %c64], %387 {strides = array<i32>} : memref<2x128xf32, #tpu.memory_space<vmem>>, vector<1x32xf32>,
    %389 = vector.extract_strided_slice %382 {offsets = [57, 0], sizes = [1, 32], strides = [1, 1]} : vector<60x32xf32> to vector<1x32xf32>
    %c0_243 = arith.constant 0 : index
    %c96 = arith.constant 96 : index
    %390 = vector.load %arg32[%c0_243, %c96] : memref<2x128xf32, #tpu.memory_space<vmem>>, vector<1x32xf32>
    tpu.vector_store %arg32[%c0_243, %c96], %389 {strides = array<i32>} : memref<2x128xf32, #tpu.memory_space<vmem>>, vector<1x32xf32>,
    %391 = vector.extract_strided_slice %382 {offsets = [31, 0], sizes = [1, 32], strides = [1, 1]} : vector<60x32xf32> to vector<1x32xf32>
    %c1_244 = arith.constant 1 : index
    %c0_245 = arith.constant 0 : index
    %392 = vector.load %arg32[%c1_244, %c0_245] : memref<2x128xf32, #tpu.memory_space<vmem>>, vector<1x32xf32>
    tpu.vector_store %arg32[%c1_244, %c0_245], %391 {strides = array<i32>} : memref<2x128xf32, #tpu.memory_space<vmem>>, vector<1x32xf32>,
    %393 = vector.extract_strided_slice %382 {offsets = [47, 0], sizes = [1, 32], strides = [1, 1]} : vector<60x32xf32> to vector<1x32xf32>
    %c1_246 = arith.constant 1 : index
    %c32_247 = arith.constant 32 : index
    %394 = vector.load %arg32[%c1_246, %c32_247] : memref<2x128xf32, #tpu.memory_space<vmem>>, vector<1x32xf32>
    tpu.vector_store %arg32[%c1_246, %c32_247], %393 {strides = array<i32>} : memref<2x128xf32, #tpu.memory_space<vmem>>, vector<1x32xf32>,
    %395 = vector.extract_strided_slice %382 {offsets = [55, 0], sizes = [1, 32], strides = [1, 1]} : vector<60x32xf32> to vector<1x32xf32>
    %c1_248 = arith.constant 1 : index
    %c64_249 = arith.constant 64 : index
    %396 = vector.load %arg32[%c1_248, %c64_249] : memref<2x128xf32, #tpu.memory_space<vmem>>, vector<1x32xf32>
    tpu.vector_store %arg32[%c1_248, %c64_249], %395 {strides = array<i32>} : memref<2x128xf32, #tpu.memory_space<vmem>>, vector<1x32xf32>,
    %397 = vector.extract_strided_slice %382 {offsets = [59, 0], sizes = [1, 32], strides = [1, 1]} : vector<60x32xf32> to vector<1x32xf32>
    %c1_250 = arith.constant 1 : index
    %c96_251 = arith.constant 96 : index
    %398 = vector.load %arg32[%c1_250, %c96_251] : memref<2x128xf32, #tpu.memory_space<vmem>>, vector<1x32xf32>
    tpu.vector_store %arg32[%c1_250, %c96_251], %397 {strides = array<i32>} : memref<2x128xf32, #tpu.memory_space<vmem>>, vector<1x32xf32>,
    %c0_252 = arith.constant 0 : index
    %c0_253 = arith.constant 0 : index
    %399 = vector.load %arg32[%c0_252, %c0_253] : memref<2x128xf32, #tpu.memory_space<vmem>>, vector<2x128xf32>
    %c0_254 = arith.constant 0 : index
    %c0_255 = arith.constant 0 : index
    %400 = vector.load %arg27[%c0_254, %c0_255] : memref<128x16xf32, #tpu.memory_space<vmem>>, vector<128x16xf32>
    %cst_256 = arith.constant dense<0.000000e+00> : vector<2x16xf32>
    %401 = tpu.matmul %399, %400, %cst_256 {dimension_numbers = #tpu.dot_dimension_numbers<[1], [0], [0], [1], [0, 0, 1, 1], [], []>} : vector<2x128xf32>, vector<128x16xf32>, vector<2x16xf32> -> vector<2x16xf32>
    %c0_257 = arith.constant 0 : index
    %c0_258 = arith.constant 0 : index
    %c0_259 = arith.constant 0 : index
    %402 = vector.load %arg28[%c0_257, %c0_258, %c0_259] : memref<1x2x16xf32, #tpu.memory_space<vmem>>, vector<1x2x16xf32>
    %403 = vector.shape_cast %402 : vector<1x2x16xf32> to vector<2x16xf32>
    %404 = vector.shape_cast %401 : vector<2x16xf32> to vector<1x2x16xf32>
    tpu.vector_store %arg28[%c0_257, %c0_258, %c0_259], %404 {strides = array<i32>} : memref<1x2x16xf32, #tpu.memory_space<vmem>>, vector<1x2x16xf32>,
    return
  }
  func.func @transform_0(%arg0: i32) -> (i32, i32) {
    %c0_i32 = arith.constant 0 : i32
    %c0_i32_0 = arith.constant 0 : i32
    return %arg0, %c0_i32 : i32, i32
  }
  func.func @transform_1(%arg0: i32) -> (i32, i32) {
    %c0_i32 = arith.constant 0 : i32
    %c0_i32_0 = arith.constant 0 : i32
    return %arg0, %c0_i32 : i32, i32
  }
  func.func @transform_2(%arg0: i32) -> (i32, i32) {
    %c0_i32 = arith.constant 0 : i32
    %c0_i32_0 = arith.constant 0 : i32
    %c0_i32_1 = arith.constant 0 : i32
    return %c0_i32, %c0_i32_0 : i32, i32
  }
  func.func @transform_3(%arg0: i32) -> (i32, i32) {
    %c0_i32 = arith.constant 0 : i32
    %c0_i32_0 = arith.constant 0 : i32
    %c0_i32_1 = arith.constant 0 : i32
    return %c0_i32, %c0_i32_0 : i32, i32
  }
  func.func @transform_4(%arg0: i32) -> (i32, i32) {
    %c0_i32 = arith.constant 0 : i32
    %c0_i32_0 = arith.constant 0 : i32
    %c0_i32_1 = arith.constant 0 : i32
    return %c0_i32, %c0_i32_0 : i32, i32
  }
  func.func @transform_5(%arg0: i32) -> (i32, i32) {
    %c0_i32 = arith.constant 0 : i32
    %c0_i32_0 = arith.constant 0 : i32
    %c0_i32_1 = arith.constant 0 : i32
    return %c0_i32, %c0_i32_0 : i32, i32
  }
  func.func @transform_6(%arg0: i32) -> (i32, i32) {
    %c0_i32 = arith.constant 0 : i32
    %c0_i32_0 = arith.constant 0 : i32
    %c0_i32_1 = arith.constant 0 : i32
    return %c0_i32, %c0_i32_0 : i32, i32
  }
  func.func @transform_7(%arg0: i32) -> (i32, i32) {
    %c0_i32 = arith.constant 0 : i32
    %c0_i32_0 = arith.constant 0 : i32
    %c0_i32_1 = arith.constant 0 : i32
    return %c0_i32, %c0_i32_0 : i32, i32
  }
  func.func @transform_8(%arg0: i32) -> (i32, i32, i32) {
    %c0_i32 = arith.constant 0 : i32
    %c0_i32_0 = arith.constant 0 : i32
    %c0_i32_1 = arith.constant 0 : i32
    %c0_i32_2 = arith.constant 0 : i32
    return %c0_i32, %c0_i32_0, %c0_i32_1 : i32, i32, i32
  }
  func.func @transform_9(%arg0: i32) -> (i32, i32, i32) {
    %c0_i32 = arith.constant 0 : i32
    %c0_i32_0 = arith.constant 0 : i32
    %c0_i32_1 = arith.constant 0 : i32
    %c0_i32_2 = arith.constant 0 : i32
    return %c0_i32, %c0_i32_0, %c0_i32_1 : i32, i32, i32
  }
  func.func @transform_10(%arg0: i32) -> (i32, i32, i32) {
    %c0_i32 = arith.constant 0 : i32
    %c0_i32_0 = arith.constant 0 : i32
    %c0_i32_1 = arith.constant 0 : i32
    %c0_i32_2 = arith.constant 0 : i32
    return %c0_i32, %c0_i32_0, %c0_i32_1 : i32, i32, i32
  }
  func.func @transform_11(%arg0: i32) -> (i32, i32) {
    %c0_i32 = arith.constant 0 : i32
    %c0_i32_0 = arith.constant 0 : i32
    %c0_i32_1 = arith.constant 0 : i32
    return %c0_i32, %c0_i32_0 : i32, i32
  }
  func.func @transform_12(%arg0: i32) -> (i32, i32) {
    %c0_i32 = arith.constant 0 : i32
    %c0_i32_0 = arith.constant 0 : i32
    %c0_i32_1 = arith.constant 0 : i32
    return %c0_i32, %c0_i32_0 : i32, i32
  }
  func.func @transform_13(%arg0: i32) -> (i32, i32) {
    %c0_i32 = arith.constant 0 : i32
    %c0_i32_0 = arith.constant 0 : i32
    %c0_i32_1 = arith.constant 0 : i32
    return %c0_i32, %c0_i32_0 : i32, i32
  }
  func.func @transform_14(%arg0: i32) -> (i32, i32) {
    %c0_i32 = arith.constant 0 : i32
    %c0_i32_0 = arith.constant 0 : i32
    %c0_i32_1 = arith.constant 0 : i32
    return %c0_i32, %c0_i32_0 : i32, i32
  }
  func.func @transform_15(%arg0: i32) -> (i32, i32, i32) {
    %c0_i32 = arith.constant 0 : i32
    %c0_i32_0 = arith.constant 0 : i32
    %c0_i32_1 = arith.constant 0 : i32
    %c0_i32_2 = arith.constant 0 : i32
    return %c0_i32, %c0_i32_0, %c0_i32_1 : i32, i32, i32
  }
  func.func @transform_16(%arg0: i32) -> (i32, i32, i32) {
    %c0_i32 = arith.constant 0 : i32
    %c0_i32_0 = arith.constant 0 : i32
    %c0_i32_1 = arith.constant 0 : i32
    %c0_i32_2 = arith.constant 0 : i32
    return %c0_i32, %c0_i32_0, %c0_i32_1 : i32, i32, i32
  }
  func.func @transform_17(%arg0: i32) -> (i32, i32, i32) {
    %c0_i32 = arith.constant 0 : i32
    %c0_i32_0 = arith.constant 0 : i32
    %c0_i32_1 = arith.constant 0 : i32
    %c0_i32_2 = arith.constant 0 : i32
    return %c0_i32, %c0_i32_0, %c0_i32_1 : i32, i32, i32
  }
  func.func @transform_18(%arg0: i32) -> (i32, i32, i32) {
    %c0_i32 = arith.constant 0 : i32
    %c0_i32_0 = arith.constant 0 : i32
    %c0_i32_1 = arith.constant 0 : i32
    %c0_i32_2 = arith.constant 0 : i32
    return %c0_i32, %c0_i32_0, %c0_i32_1 : i32, i32, i32
  }
  func.func @transform_19(%arg0: i32) -> (i32, i32, i32) {
    %c0_i32 = arith.constant 0 : i32
    %c0_i32_0 = arith.constant 0 : i32
    %c0_i32_1 = arith.constant 0 : i32
    %c0_i32_2 = arith.constant 0 : i32
    return %c0_i32, %c0_i32_0, %c0_i32_1 : i32, i32, i32
  }
  func.func @transform_20(%arg0: i32) -> (i32, i32, i32) {
    %c0_i32 = arith.constant 0 : i32
    %c0_i32_0 = arith.constant 0 : i32
    %c0_i32_1 = arith.constant 0 : i32
    %c0_i32_2 = arith.constant 0 : i32
    return %c0_i32, %c0_i32_0, %c0_i32_1 : i32, i32, i32
  }
  func.func @transform_21(%arg0: i32) -> (i32, i32, i32) {
    %c0_i32 = arith.constant 0 : i32
    %c0_i32_0 = arith.constant 0 : i32
    %c0_i32_1 = arith.constant 0 : i32
    %c0_i32_2 = arith.constant 0 : i32
    return %c0_i32, %c0_i32_0, %c0_i32_1 : i32, i32, i32
  }
  func.func @transform_22(%arg0: i32) -> (i32, i32, i32) {
    %c0_i32 = arith.constant 0 : i32
    %c0_i32_0 = arith.constant 0 : i32
    %c0_i32_1 = arith.constant 0 : i32
    %c0_i32_2 = arith.constant 0 : i32
    return %c0_i32, %c0_i32_0, %c0_i32_1 : i32, i32, i32
  }
  func.func @transform_23(%arg0: i32) -> (i32, i32, i32) {
    %c0_i32 = arith.constant 0 : i32
    %c0_i32_0 = arith.constant 0 : i32
    %c0_i32_1 = arith.constant 0 : i32
    %c0_i32_2 = arith.constant 0 : i32
    return %c0_i32, %c0_i32_0, %c0_i32_1 : i32, i32, i32
  }
  func.func @transform_24(%arg0: i32) -> (i32, i32, i32) {
    %c0_i32 = arith.constant 0 : i32
    %c0_i32_0 = arith.constant 0 : i32
    %c0_i32_1 = arith.constant 0 : i32
    %c0_i32_2 = arith.constant 0 : i32
    return %c0_i32, %c0_i32_0, %c0_i32_1 : i32, i32, i32
  }
  func.func @transform_25(%arg0: i32) -> (i32, i32, i32) {
    %c0_i32 = arith.constant 0 : i32
    %c0_i32_0 = arith.constant 0 : i32
    %c0_i32_1 = arith.constant 0 : i32
    %c0_i32_2 = arith.constant 0 : i32
    return %c0_i32, %c0_i32_0, %c0_i32_1 : i32, i32, i32
  }
  func.func @transform_26(%arg0: i32) -> (i32, i32) {
    %c0_i32 = arith.constant 0 : i32
    %c0_i32_0 = arith.constant 0 : i32
    %c0_i32_1 = arith.constant 0 : i32
    return %c0_i32, %c0_i32_0 : i32, i32
  }
  func.func @transform_27(%arg0: i32) -> (i32, i32, i32) {
    %c0_i32 = arith.constant 0 : i32
    %c0_i32_0 = arith.constant 0 : i32
    %c0_i32_1 = arith.constant 0 : i32
    return %arg0, %c0_i32, %c0_i32_0 : i32, i32, i32
  }
}

</mosaic_0001>

<bundles_post_ra>
// kernel: forward.1
= control target key start
LH: loop header
LB: loop body
LE: loop exit
PB: predicated region body
PF: predicated region fallthrough
CT: control target
= control target key end

     0   :  { %s9063_s0 = inlined_call_operand.vmem [shape: f32[64,12], index: 0, kind: input, shape index: {}]   ;;  %s9064_s1 = inlined_call_operand.vmem [shape: f32[64,4], index: 1, kind: input, shape index: {}]   ;;  %s9065_s2 = inlined_call_operand.vmem [shape: f32[60,60], index: 2, kind: input, shape index: {}]   ;;  %s9066_s3 = inlined_call_operand.vmem [shape: f32[32,32], index: 3, kind: input, shape index: {}]   ;;  %s9067_s4 = inlined_call_operand.vmem [shape: f32[12,32], index: 4, kind: input, shape index: {}]   ;;  %s9068_s5 = inlined_call_operand.vmem [shape: f32[4,32], index: 5, kind: input, shape index: {}]   ;;  %s9069_s6 = inlined_call_operand.vmem [shape: f32[32,16], index: 6, kind: input, shape index: {}]   ;;  %s9070_s7 = inlined_call_operand.vmem [shape: f32[1,16], index: 7, kind: input, shape index: {}]   ;;  %s9071_s8 = inlined_call_operand.vmem [shape: f32[6,16,16], index: 8, kind: input, shape index: {}]   ;;  %s9072_s9 = inlined_call_operand.vmem [shape: f32[3,1,16], index: 9, kind: input, shape index: {}]   ;;  %s9073_s10 = inlined_call_operand.vmem [shape: f32[3,1,16], index: 10, kind: input, shape index: {}]   ;;  %s9074_s11 = inlined_call_operand.vmem [shape: f32[16,32], index: 11, kind: input, shape index: {}]   ;;  %s9075_s12 = inlined_call_operand.vmem [shape: f32[1,32], index: 12, kind: input, shape index: {}]   ;;  %s9076_s13 = inlined_call_operand.vmem [shape: f32[1,32], index: 13, kind: input, shape index: {}]   ;;  %s9077_s14 = inlined_call_operand.vmem [shape: f32[1,32], index: 14, kind: input, shape index: {}]   ;;  %s9078_s15 = inlined_call_operand.vmem [shape: f32[2,32,96], index: 15, kind: input, shape index: {}]   ;;  %s9079_s16 = inlined_call_operand.vmem [shape: f32[2,32,32], index: 16, kind: input, shape index: {}]   ;;  %s9080_s17 = inlined_call_operand.vmem [shape: f32[2,1,32], index: 17, kind: input, shape index: {}]   ;;  %s9081_s18 = inlined_call_operand.vmem [shape: f32[2,1,32], index: 18, kind: input, shape index: {}]   ;;  %s9082_s19 = inlined_call_operand.vmem [shape: f32[2,1,32], index: 19, kind: input, shape index: {}]   ;;  %s9083_s20 = inlined_call_operand.vmem [shape: f32[2,32,64], index: 20, kind: input, shape index: {}]   ;;  %s9084_s21 = inlined_call_operand.vmem [shape: f32[2,1,64], index: 21, kind: input, shape index: {}]   ;;  %s9085_s22 = inlined_call_operand.vmem [shape: f32[2,64,32], index: 22, kind: input, shape index: {}]   ;;  %s9086_s23 = inlined_call_operand.vmem [shape: f32[2,1,32], index: 23, kind: input, shape index: {}]   ;;  %s9087_s24 = inlined_call_operand.vmem [shape: f32[2,1,32], index: 24, kind: input, shape index: {}]   ;;  %s9088_s25 = inlined_call_operand.vmem [shape: f32[2,1,32], index: 25, kind: input, shape index: {}]   ;;  %s9089_s26 = inlined_call_operand.vmem [shape: f32[128,16], index: 26, kind: input, shape index: {}]   ;;  %s9090_s27 = inlined_call_operand.vmem [shape: f32[2,2,16], index: 27, kind: output, shape index: {}]  }
   0x1   :  { %9116 = sst [smem:[#allocation6_spill]] %s9063_s0 }
   0x2   :  { %9117 = sst [smem:[#allocation7_spill]] %s9064_s1 }
   0x3   :  { %9118 = sst [smem:[#allocation8_spill]] %s9065_s2 }
   0x4   :  { %9119 = sst [smem:[#allocation9_spill]] %s9066_s3 }
   0x5   :  { %9120 = sst [smem:[#allocation10_spill]] %s9067_s4 }
   0x6   :  { %9121 = sst [smem:[#allocation11_spill]] %s9068_s5 }
   0x7   :  { %9122 = sst [smem:[#allocation12_spill]] %s9069_s6 }
   0x8   :  { %9123 = sst [smem:[#allocation13_spill]] %s9070_s7  ;;  %s7410_s7 = smov 0  }
   0x9   :  { %9124 = sst [smem:[#allocation14_spill]] %s9071_s8 }
   0xa   :  { %9125 = sst [smem:[#allocation15_spill]] %s9072_s9 }
   0xb   :  { %9126 = sst [smem:[#allocation16_spill]] %s9073_s10 }
   0xc   :  { %9127 = sst [smem:[#allocation17_spill]] %s9074_s11 }
   0xd LB: > { %s7416_s4 = sadd.s32 4294967295, %s7259_s7   ;;  %p5887_p0 = scmp.ge.s32.totalorder %s7259_s7, 1  ;;  %s7259_s7 = sphi %s7410_s7, %s37_s7  }
   0xe   : > { %p749_p1 = scmp.lt.s32.totalorder %s7259_s7, 3 }
  0x10   : > { %p750_p2 = pnand %p5887_p0, %p749_p1 }
  0x11   : > { %s9128_s9 = sld [smem:[#allocation10_spill]] (!%p750_p2)  ;;  %s5888_s1 = sshll.u32 (!%p750_p2), %s7416_s4, 2 }
  0x12   : > { %753 = sbr.rel (%p750_p2) target bundleno = 7963 (0x1f1b), region = 128  ;;  %s9129_s0 = sld [smem:[#allocation11_spill]] (!%p750_p2) }
  0x13   : > { %p826_p3 = scmp.lt.s32.totalorder (!%p750_p2), %s5888_s1, 7  ;;  %s9130_s3 = sld [smem:[#allocation7_spill]] (!%p750_p2) }
  0x14   : > { %s9131_s28 = sld [smem:[#allocation6_spill]] (!%p750_p2)  ;;  %s9112_s10 = smov (!%p750_p2), 16  }
  0x15   : > { %s9134_s5 = sld [smem:[#allocation14_spill]] (!%p750_p2)  ;;  %s9145_s11 = smov (!%p750_p2), 16  }
  0x16   : > { %s9135_s30 = sld [smem:[#allocation13_spill]] (!%p750_p2)  ;;  %p837_p4 = scmp.lt.s32.totalorder (!%p750_p2), %s7416_s4, 1 }
  0x17   : > { %v846_v0 = vld [vmem:[%s9128_s9 + $0x8] sm:$0xf]  ;;  %vm865_vm0 = vcmask 1043456   ;;  %v845_v2 = vld [vmem:[%s9128_s9] sm:$0xff]  ;;  %s9147_s1 = smov (!%p826_p3, %s5888_s1), 7  ;;  %vm852_vm1 = vcmask 31744  }
  0x18   : > { %v851_v1 = vld [vmem:[%s9129_s0] sm:$0xf]  ;;  %6462 = vmatprep.subr.msk.mxu1 %vm865_vm0, %v846_v0  ;;  %s5889_s6 = sshll.u32 %s9147_s1, 3  ;;  %vm954_vm2 = vcmask 97280   ;;  %s9132_s1 = sld [smem:[#allocation12_spill]]  ;;  %vm1063_vm3 = vcmask 261120  }
  0x19   : > { %6454 = vmatprep.subr.msk.mxu0 %vm865_vm0, %v851_v1  ;;  %6463 = vmatpush3.msk.msra.mxu1 %vm865_vm0, %v846_v0  ;;  %s835_s8 = scalar_lea.vmem %s9130_s3, %s5889_s6  ;;  %vm1176_vm4 = vcmask 130048   ;;  %s9136_s29 = sld [smem:[#allocation17_spill]]  ;;  %v7261_v63 = vmov 0.0   ;;  %vm7262_vm5 = vmmov 0   ;;  %vm1997_vm10 = vcmask 257024  }
  0x1a   : > { %6455 = vmatpush3.msk.msra.mxu0 %vm865_vm0, %v851_v1  ;;  %6464 = vmatprep.subr.mxu1 %v845_v2  ;;  %s829_s0 = scalar_lea.vmem %s9131_s28, %s5889_s6  ;;  %v847_v3 = vld [vmem:[%s835_s8] sm:$0xff]  ;;  %v848_v5 = vld [vmem:[%s835_s8 + $0x8] sm:$0xff]  ;;  %v849_v7 = vld [vmem:[%s835_s8 + $0x10] sm:$0xff]  ;;  %s9137_s6 = sld [smem:[#allocation15_spill]]  ;;  %vm2444_vm11 = vcmask 490496   ;;  %vm2466_vm12 = vcmask 486400  }
  0x1b   : > { %6465 = vmatpush3.msra.mxu1 %v845_v2  ;;  %v841_v4 = vld [vmem:[%s829_s0] sm:$0xff]  ;;  %6456 = vmatprep.mubr.msk.f32.mxu0 %vm852_vm1, %v847_v3  ;;  %v842_v6 = vld [vmem:[%s829_s0 + $0x8] sm:$0xff]  ;;  %v843_v8 = vld [vmem:[%s829_s0 + $0x10] sm:$0xff]  ;;  %s9138_s3 = sld [smem:[#allocation16_spill]]  ;;  %s9109_s28 = smov 80   ;;  %vm2695_vm13 = vcmask 125952  }
  0x1c   : > { %6466 = vmatprep.mubr.msk.f32.mxu1 %vm954_vm2, %v841_v4  ;;  %6457 = vmatmul.mubr.msk.f32.vlgmr.msra.gmra.mxu0 %vm852_vm1, %v848_v5  ;;  %v850_v9 = vld [vmem:[%s835_s8 + $0x18] sm:$0xff]  ;;  %v1185_v44 = vld [vmem:[%s9134_s5 + $0x8] sm:$0xff]  ;;  %v5908_v45 = vld [vmem:[%s9134_s5 + $0x10] sm:$0xff]  ;;  %s9139_s2 = sld [smem:[#allocation8_spill]]  ;;  %s9107_s8 = smov 112   ;;  %vm3140_vm14 = vcmask 261248  }
  0x1d   : > { %6467 = vmatmul.mubr.msk.f32.vlgmr.msra.gmra.mxu1 %vm954_vm2, %v842_v6  ;;  %6459 = vmatprep.mubr.msk.f32.mxu0 %vm852_vm1, %v849_v7  ;;  %v844_v10 = vld [vmem:[%s829_s0 + $0x18] sm:$0xff]  ;;  %s9133_s0 = sld [smem:[#allocation9_spill]]  ;;  %v1184_v46 = vld [vmem:[%s9134_s5] sm:$0xff]  ;;  %v5923_v0 = vld [vmem:[%s9134_s5 + $0x30] sm:$0xff]  ;;  %vm3148_vm15 = vcmask 257152   ;;  %s9149_s4 = smov (!%p837_p4, %s7416_s4), 1 }
  0x1e   : > { %6469 = vmatprep.mubr.msk.f32.mxu1 %vm954_vm2, %v843_v8  ;;  %v1071_v11 = vld [vmem:[%s9132_s1 + $0x18] sm:$0xff]  ;;  %v1070_v12 = vld [vmem:[%s9132_s1 + $0x10] sm:$0xff]  ;;  %v1069_v13 = vld [vmem:[%s9132_s1 + $0x8] sm:$0xff]  ;;  %6493 = vmatprep.subr.mxu1 %v1185_v44 }
  0x1f   : > { %6472 = vmatprep.subr.mxu0 %v1071_v11  ;;  %v1068_v14 = vld [vmem:[%s9132_s1] sm:$0xff]  ;;  %v5909_v43 = vld [vmem:[%s9134_s5 + $0x18] sm:$0xff]  ;;  %6494 = vmatpush3.msra.mxu1 %v1185_v44  ;;  %v7522_v60 = vld [vmem:[%s9136_s29 + $0x8] sm:$0xff]  ;;  %s9103_s1 = smov 96  }
  0x20   : > { %6460 = vmatmul.mubr.msk.f32.gmra.mxu0 %vm852_vm1, %v850_v9  ;;  %6495 = vmatprep.subr.mxu1 %v1184_v46  ;;  %v5903_v47 = vld [vmem:[%s9135_s30] ss:$0 sm:$0xff]  ;;  %v5924_v62 = vld [vmem:[%s9134_s5 + $0x38] sm:$0xff]  ;;  %s9105_s30 = smov 48   ;;  %vm3667_vm1 = vcmask 523264  }
  0x21   : > { %6470 = vmatmul.mubr.msk.f32.gmra.mxu1 %vm954_vm2, %v844_v10  ;;  %6473 = vmatpush3.msra.mxu0 %v1071_v11  ;;  %v7527_v61 = vld [vmem:[%s9136_s29] sm:$0xff]  ;;  %vm5705_vm2 = vcmask 523527  }
  0x22   : > { %6474 = vmatprep.subr.mxu0 %v1070_v12  ;;  %6496 = vmatpush3.msra.mxu1 %v1184_v46  ;;  %v5914_v3 = vld [vmem:[%s9137_s6] ss:$0 sm:$0xff] }
  0x23   : > { %6475 = vmatpush3.msra.mxu0 %v1070_v12  ;;  %v1056_v17 = vld [vmem:[%s9133_s0 + $0x8] sm:$0xff]  ;;  %v1055_v21 = vld [vmem:[%s9133_s0] sm:$0xff]  ;;  %v1058_v26 = vld [vmem:[%s9133_s0 + $0x18] sm:$0xff]  ;;  %6507 = vmatprep.subr.mxu1 %v7261_v63 }
  0x24   : > { %6476 = vmatprep.subr.mxu0 %v1069_v13  ;;  %v1057_v31 = vld [vmem:[%s9133_s0 + $0x10] sm:$0xff]  ;;  %v5915_v5 = vld [vmem:[%s9138_s3] ss:$0 sm:$0xff]  ;;  %s9101_s0 = smov 64  }
  0x25   : > { %6477 = vmatpush3.msra.mxu0 %v1069_v13 }
  0x26   : > { %6478 = vmatprep.subr.mxu0 %v1068_v14 }
  0x27   : > { %6479 = vmatpush3.msra.mxu0 %v1068_v14 }
  0x28   : > { %6486 = vmatprep.subr.mxu0 %v5909_v43 }
  0xdc   : > { %v6458_v15 = vpop.f32.mrf.mxu0 }
  0xdd   : > { %v6468_v16 = vpop.f32.mrf.mxu1 }
  0xde   : > { %v1042_v18 = vadd.f32 %v6468_v16, %v6458_v15  ;;  %v935_v19 = vpop.f32.mrf.mxu0 }
  0xdf   : > { %v1036_v20 = vpop.f32.mrf.mxu1 }
  0xe0   : > { %v1060_v22 = vadd.f32 %v1056_v17, %v1042_v18  ;;  %v1037_v23 = vadd.f32 %v1036_v20, %v935_v19  ;;  %v6461_v24 = vpop.f32.mrf.mxu0 }
  0xe1   : > { %v6471_v25 = vpop.f32.mrf.mxu1 }
  0xe2   : > { %1065 = vst.msk [vmem:[#allocation2 + $0x8] sm:$0xff] %vm1063_vm3, %v1060_v22  ;;  %v1059_v27 = vadd.f32 %v1055_v21, %v1037_v23  ;;  %v1052_v28 = vadd.f32 %v6471_v25, %v6461_v24  ;;  %v945_v29 = vpop.f32.mrf.mxu0  ;;  %v5922_v21 = vld [vmem:[%s9134_s5 + $0x28] sm:$0xff]  ;;  %v5937_v25 = vld [vmem:[%s9134_s5 + $0x58] sm:$0xff] }
  0xe3   : > { %v1046_v30 = vpop.f32.mrf.mxu1 }
  0xe4   : > { %1064 = vst.msk [vmem:[#allocation2] sm:$0xff] %vm1063_vm3, %v1059_v27  ;;  %v1062_v32 = vadd.f32 %v1058_v26, %v1052_v28  ;;  %v1047_v33 = vadd.f32 %v1046_v30, %v945_v29  ;;  %6480 = vmatprep.mubr.msk.f32.mxu0 %vm1063_vm3, %v1059_v27  ;;  %v5936_v26 = vld [vmem:[%s9134_s5 + $0x50] sm:$0xff]  ;;  %v7586_v27 = vld [vmem:[%s9075_s12] ss:$0 sm:$0xff] }
  0xe5   : > { %6481 = vmatmul.mubr.msk.f32.vlgmr.msra.gmra.mxu0 %vm1063_vm3, %v1060_v22  ;;  %v5921_v22 = vld [vmem:[%s9134_s5 + $0x20] sm:$0xff] }
  0xe6   : > { %1067 = vst.msk [vmem:[#allocation2 + $0x18] sm:$0xff] %vm1063_vm3, %v1062_v32  ;;  %v1061_v34 = vadd.f32 %v1057_v31, %v1047_v33  ;;  %6487 = vmatpush3.msra.mxu0 %v5909_v43 }
  0xe7   : > { %6488 = vmatprep.subr.mxu0 %v5908_v45 }
  0xe8   : > { %1066 = vst.msk [vmem:[#allocation2 + $0x10] sm:$0xff] %vm1063_vm3, %v1061_v34  ;;  %6483 = vmatprep.mubr.msk.f32.mxu0 %vm1063_vm3, %v1061_v34  ;;  %6489 = vmatpush3.msra.mxu0 %v5908_v45  ;;  %v5928_v34 = vld [vmem:[%s9137_s6 + $0x1] ss:$0 sm:$0xff] }
  0xe9   : > { %6484 = vmatmul.mubr.msk.f32.gmra.mxu0 %vm1063_vm3, %v1062_v32  ;;  %v7484_v37 = vld [vmem:[#allocation2 + $0x8] sm:$0xff]  ;;  %6500 = vmatprep.subr.mxu0 %v7522_v60 }
  0xea   : > { %v2012_v40 = vsel %vm1063_vm3, %v7484_v37, 0.0 }
  0xeb   : > { %v7480_v35 = vld [vmem:[#allocation2] sm:$0xff] }
  0xec   : > { %v2009_v36 = vsel %vm1063_vm3, %v7480_v35, 0.0 }
  0xed   : > { %2010 = vadd.xlane.f32.xlu0 %v2009_v36  ;;  %v7492_v41 = vld [vmem:[#allocation2 + $0x18] sm:$0xff] }
  0xee   : > { %v2018_v42 = vsel %vm1063_vm3, %v7492_v41, 0.0 }
  0xef   : > { %v7486_v38 = vld [vmem:[#allocation2 + $0x10] sm:$0xff] }
  0xf0   : > { %v2015_v39 = vsel %vm1063_vm3, %v7486_v38, 0.0 }
  0xf1   : > { %2016 = vadd.xlane.f32.xlu1 %v2015_v39  ;;  %2013 = vadd.xlane.f32.xlu0 %v2012_v40  ;;  %v5930_v39 = vld [vmem:[%s9138_s3 + $0x1] ss:$0 sm:$0xff] }
  0xf5   : > { %2019 = vadd.xlane.f32.xlu1 %v2018_v42 }
 0x1a5   : > { %v6482_v48 = vpop.f32.mrf.mxu0 }
 0x1a6   : > { %v1163_v49 = vadd.f32 %v6482_v48, %v5903_v47 }
 0x1a7   : > { %v1157_v50 = vpop.f32.mrf.mxu0 }
 0x1a8   : > { %1178 = vst.msk [vmem:[#allocation3 + $0x8] sm:$0xff] %vm1176_vm4, %v1163_v49  ;;  %v1158_v51 = vadd.f32 %v5903_v47, %v1157_v50 }
 0x1a9   : > { %v6485_v52 = vpop.f32.mrf.mxu0 }
 0x1aa   : > { %1177 = vst.msk [vmem:[#allocation3] sm:$0xff] %vm1176_vm4, %v1158_v51  ;;  %v1173_v53 = vadd.f32 %v6485_v52, %v5903_v47  ;;  %v5935_v52 = vld [vmem:[%s9134_s5 + $0x48] sm:$0xff] }
 0x1ab   : > { %v1167_v54 = vpop.f32.mrf.mxu0 }
 0x1ac   : > { %1180 = vst.msk [vmem:[#allocation3 + $0x18] sm:$0xff] %vm1176_vm4, %v1173_v53  ;;  %v1168_v55 = vadd.f32 %v5903_v47, %v1167_v54  ;;  %v5934_v54 = vld [vmem:[%s9134_s5 + $0x40] sm:$0xff]  ;;  %s9143_s5 = smov 112  }
 0x1ae   : > { %1179 = vst.msk [vmem:[#allocation3 + $0x10] sm:$0xff] %vm1176_vm4, %v1168_v55 }
 0x1b1   : > { %v1187_v56 = vld [vmem:[#allocation3 + $0x1] ss:$2 sm:$0xff]  ;;  %v1181_v57 = vld [vmem:[#allocation3] ss:$2 sm:$0xff] }
 0x1b2   : > { %6490 = vmatprep.mubr.msk.f32.mxu0 %vm1176_vm4, %v1187_v56  ;;  %6497 = vmatprep.mubr.msk.f32.mxu1 %vm1176_vm4, %v1181_v57  ;;  %v2011_v57 = vpop.xlane.xlu0 %2010 }
 0x1b5   : > { %v1189_v58 = vld [vmem:[#allocation3 + $0x11] ss:$2 sm:$0xff]  ;;  %v1183_v59 = vld [vmem:[#allocation3 + $0x10] ss:$2 sm:$0xff] }
 0x1b6   : > { %6491 = vmatmul.mubr.msk.f32.vlgmr.msra.gmra.mxu0 %vm1176_vm4, %v1189_v58  ;;  %6498 = vmatmul.mubr.msk.f32.vlgmr.msra.gmra.mxu1 %vm1176_vm4, %v1183_v59 }
 0x1b7   : > { %6501 = vmatpush3.msra.mxu0 %v7522_v60  ;;  %6508 = vmatpush3.msra.mxu1 %v5924_v62  ;;  %v2034_v62 = vmul.f32 0.03125, %v2011_v57 }
 0x1b8   : > { %6502 = vmatprep.subr.mxu0 %v7527_v61  ;;  %6509 = vmatprep.subr.mxu1 %v7261_v63 }
 0x1b9   : > { %6503 = vmatpush3.msra.mxu0 %v7527_v61  ;;  %6511 = vmatprep.mubr.msk.f32.mxu1 %vm7262_vm5, %v7261_v63 }
 0x1ba   : > { %6514 = vmatprep.subr.mxu0 %v7261_v63  ;;  %6510 = vmatpush3.msra.mxu1 %v5923_v0 }
 0x1bb   : > { %6521 = vmatprep.subr.mxu1 %v7261_v63 }
 0x276   : > { %v6492_v1 = vpop.f32.mrf.mxu0  ;;  %v6499_v2 = vpop.f32.mrf.mxu1 }
 0x277   : > { %v1352_v4 = vadd.f32 %v6499_v2, %v6492_v1  ;;  %v2014_v1 = vpop.xlane.xlu0 %2013  ;;  %v2017_v2 = vpop.xlane.xlu1 %2016 }
 0x278   : > { %v1265_v6 = vpop.f32.mrf.mxu0  ;;  %v1346_v7 = vpop.f32.mrf.mxu1 }
 0x279   : > { %v1363_v8 = vmul.f32 %v5914_v3, %v1352_v4  ;;  %v1347_v9 = vadd.f32 %v1346_v7, %v1265_v6 }
 0x27b   : > { %v1372_v10 = vadd.f32 %v5915_v5, %v1363_v8  ;;  %v1362_v11 = vmul.f32 %v5914_v3, %v1347_v9  ;;  %v2042_v3 = vsub.f32 %v7480_v35, %v2034_v62  ;;  %v5943_v8 = vld [vmem:[%s9138_s3 + $0x2] ss:$0 sm:$0xff]  ;;  %s9142_s3 = smov 80  }
 0x27d   : > { %v1377_v12 = vmul.f32 1.442695, %v1372_v10  ;;  %v1371_v13 = vadd.f32 %v5915_v5, %v1362_v11  ;;  %vm1374_vm6 = vcmp.gt.f32.partialorder %v1372_v10, 0.0 }
 0x27f   : > { %7001 = vpow2.f32 %v1377_v12  ;;  %v1375_v14 = vmul.f32 1.442695, %v1371_v13  ;;  %vm1373_vm7 = vcmp.gt.f32.partialorder %v1371_v13, 0.0  ;;  %v2050_v12 = vmul.f32 %v2042_v3, %v2042_v3 }
 0x281   : > { %7003 = vpow2.f32 %v1375_v14 }
 0x28c   : > { %v7002_v15 = vpop.eup %7001 }
 0x28d   : > { %v5917_v16 = vadd.f32 -1.0, %v7002_v15 }
 0x28e   : > { %v7004_v17 = vpop.eup %7003 }
 0x28f   : > { %v5916_v18 = vadd.f32 -1.0, %v7004_v17  ;;  %v1382_v19 = vsel %vm1374_vm6, %v1372_v10, %v5917_v16  ;;  %vm5727_vm6 = vcmask 1044227  }
 0x290   : > { %1384 = vst.msk [vmem:[#allocation3 + $0x8] sm:$0xff] %vm1176_vm4, %v1382_v19 }
 0x291   : > { %v1381_v20 = vsel %vm1373_vm7, %v1371_v13, %v5916_v18  ;;  %vm5816_vm7 = vcmask 123904  }
 0x292   : > { %1383 = vst.msk [vmem:[#allocation3] sm:$0xff] %vm1176_vm4, %v1381_v20  ;;  %6504 = vmatprep.mubr.msk.f32.mxu0 %vm1176_vm4, %v1381_v20 }
 0x293   : > { %6505 = vmatmul.mubr.msk.f32.vlgmr.msra.gmra.mxu0 %vm1176_vm4, %v1382_v19  ;;  %v2058_v19 = vsel %vm1063_vm3, %v2050_v12, 0.0 }
 0x294   : > { %6515 = vmatpush3.msra.mxu0 %v5922_v21  ;;  %6518 = vmatprep.mubr.msk.f32.mxu0 %vm7262_vm5, %v7261_v63 }
 0x295   : > { %6516 = vmatprep.subr.mxu0 %v7261_v63 }
 0x296   : > { %6517 = vmatpush3.msra.mxu0 %v5921_v22 }
 0x297   : > { %6528 = vmatprep.subr.mxu0 %v7261_v63 }
 0x299   : > { %v1481_v23 = vld [vmem:[#allocation3 + $0x1] ss:$2 sm:$0xff]  ;;  %v1477_v24 = vld [vmem:[#allocation3] ss:$2 sm:$0xff] }
 0x29a   : > { %6512 = vmatmul.mubr.msk.f32.vlgmr.msra.gmra.mxu1 %vm1176_vm4, %v1481_v23  ;;  %6519 = vmatmul.mubr.msk.f32.vlgmr.msra.gmra.mxu0 %vm1176_vm4, %v1477_v24 }
 0x29b   : > { %6522 = vmatpush3.msra.mxu1 %v7522_v60  ;;  %6525 = vmatprep.mubr.msk.f32.mxu1 %vm7262_vm5, %v7261_v63 }
 0x29c   : > { %6523 = vmatprep.subr.mxu1 %v7261_v63  ;;  %6532 = vmatprep.mubr.msk.f32.mxu0 %vm7262_vm5, %v7261_v63 }
 0x29d   : > { %6524 = vmatpush3.msra.mxu1 %v7527_v61  ;;  %6529 = vmatpush3.msra.mxu0 %v5937_v25 }
 0x29e   : > { %6535 = vmatprep.subr.mxu1 %v7261_v63  ;;  %6530 = vmatprep.subr.mxu0 %v7261_v63 }
 0x29f   : > { %6531 = vmatpush3.msra.mxu0 %v5936_v26 }
 0x2a0   : > { %6542 = vmatprep.subr.mxu0 %v7261_v63 }
 0x353   : > { %v6506_v28 = vpop.f32.mrf.mxu0 }
 0x354   : > { %v1472_v29 = vadd.f32 %v6506_v28, %v7586_v27 }
 0x355   : > { %v1466_v30 = vpop.f32.mrf.mxu0 }
 0x356   : > { %1476 = vst.msk [vmem:[#allocation2 + $0x28] sm:$0xff] %vm1063_vm3, %v1472_v29  ;;  %v1467_v31 = vadd.f32 %v7586_v27, %v1466_v30 }
 0x358   : > { %1475 = vst.msk [vmem:[#allocation2 + $0x20] sm:$0xff] %vm1063_vm3, %v1467_v31 }
 0x35a   : > { %v1554_v32 = vpop.f32.mrf.mxu1  ;;  %v1627_v33 = vpop.f32.mrf.mxu0 }
 0x35b   : > { %v1628_v36 = vadd.f32 %v1627_v33, %v1554_v32 }
 0x35c   : > { %v6513_v40 = vpop.f32.mrf.mxu1  ;;  %v6520_v42 = vpop.f32.mrf.mxu0 }
 0x35d   : > { %v1639_v43 = vmul.f32 %v5928_v34, %v1628_v36  ;;  %v7598_v44 = vld [vmem:[#allocation2 + $0x28] sm:$0xff]  ;;  %v7657_v42 = vld [vmem:[%s9077_s14] ss:$0 sm:$0xff] }
 0x35e   : > { %v2024_v45 = vsel %vm1063_vm3, %v7598_v44, 0.0 }
 0x35f   : > { %v1648_v46 = vadd.f32 %v5930_v39, %v1639_v43  ;;  %2025 = vadd.xlane.f32.xlu1 %v2024_v45  ;;  %v2003_v47 = vld [vmem:[#allocation2 + $0x20] sm:$0xff] }
 0x360   : > { %v2021_v48 = vsel %vm1063_vm3, %v2003_v47, 0.0  ;;  %v7652_v39 = vld [vmem:[%s9076_s13] ss:$0 sm:$0xff] }
 0x361   : > { %v1650_v49 = vmul.f32 1.442695, %v1648_v46  ;;  %2022 = vadd.xlane.f32.xlu0 %v2021_v48  ;;  %vm1649_vm8 = vcmp.gt.f32.partialorder %v1648_v46, 0.0 }
 0x363   : > { %7005 = vpow2.f32 %v1650_v49  ;;  %v2035_v49 = vmul.f32 0.03125, %v2014_v1  ;;  %v2152_v1 = vld [vmem:[%s9078_s15 + $0x10] sm:$0xff] }
 0x370   : > { %v7006_v50 = vpop.eup %7005 }
 0x371   : > { %v5931_v51 = vadd.f32 -1.0, %v7006_v50  ;;  %v2020_v50 = vpop.xlane.xlu1 %2019 }
 0x373   : > { %v1653_v53 = vsel %vm1649_vm8, %v1648_v46, %v5931_v51  ;;  %v7668_v51 = vsub.f32 %v7484_v37, %v2035_v49 }
 0x374   : > { %1654 = vst.msk [vmem:[#allocation3] sm:$0xff] %vm1176_vm4, %v1653_v53  ;;  %6526 = vmatmul.mubr.msk.f32.vlgmr.msra.gmra.mxu1 %vm1176_vm4, %v1653_v53 }
 0x375   : > { %6536 = vmatpush3.msra.mxu1 %v5935_v52  ;;  %6539 = vmatprep.mubr.msk.f32.mxu1 %vm7262_vm5, %v7261_v63  ;;  %v2037_v52 = vmul.f32 0.03125, %v2020_v50 }
 0x376   : > { %6537 = vmatprep.subr.mxu1 %v7261_v63 }
 0x377   : > { %6538 = vmatpush3.msra.mxu1 %v5934_v54 }
 0x37b   : > { %v1742_v55 = vld [vmem:[#allocation3 + $0x1] ss:$2 sm:$0xf]  ;;  %v1738_v56 = vld [vmem:[#allocation3] ss:$2 sm:$0xf] }
 0x37c   : > { %6533 = vmatmul.mubr.msk.f32.vlgmr.msra.gmra.mxu0 %vm1176_vm4, %v1742_v55  ;;  %6540 = vmatmul.mubr.msk.f32.vlgmr.msra.gmra.mxu1 %vm1176_vm4, %v1738_v56  ;;  %v7671_v55 = vsub.f32 %v7492_v41, %v2037_v52 }
 0x37d   : > { %6543 = vmatpush3.msra.mxu0 %v7522_v60  ;;  %6546 = vmatprep.mubr.msk.f32.mxu0 %vm7262_vm5, %v7261_v63  ;;  %v2036_v60 = vmul.f32 0.03125, %v2017_v2  ;;  %v2151_v2 = vld [vmem:[%s9078_s15 + $0x8] sm:$0xff] }
 0x37e   : > { %6544 = vmatprep.subr.mxu0 %v7261_v63  ;;  %v2053_v37 = vmul.f32 %v7671_v55, %v7671_v55 }
 0x37f   : > { %6545 = vmatpush3.msra.mxu0 %v7527_v61  ;;  %v5941_v61 = vld [vmem:[%s9137_s6 + $0x2] ss:$0 sm:$0xff]  ;;  %v7631_v13 = vsub.f32 %v7486_v38, %v2036_v60 }
 0x380   : > { %v2067_v62 = vsel %vm1063_vm3, %v2053_v37, 0.0 }
 0x381   : > { %v2052_v20 = vmul.f32 %v7631_v13, %v7631_v13 }
 0x383   : > { %v2064_v21 = vsel %vm1063_vm3, %v2052_v20, 0.0 }
 0x3e8   : > { %v2026_v53 = vpop.xlane.xlu1 %2025 }
 0x3e9   : > { %v2039_v56 = vmul.f32 0.03125, %v2026_v53 }
 0x3ea   : > { %v2023_v4 = vpop.xlane.xlu0 %2022 }
 0x3eb   : > { %v2038_v35 = vmul.f32 0.03125, %v2023_v4 }
 0x3ed   : > { %v7634_v17 = vsub.f32 %v2003_v47, %v2038_v35 }
 0x3ef   : > { %v2054_v38 = vmul.f32 %v7634_v17, %v7634_v17 }
 0x3f1   : > { %v2070_v22 = vsel %vm1063_vm3, %v2054_v38, 0.0 }
 0x434   : > { %v1733_v58 = vpop.f32.mrf.mxu1 }
 0x435   : > { %v1734_v59 = vadd.f32 %v7586_v27, %v1733_v58  ;;  %v7677_v58 = vsub.f32 %v7598_v44, %v2039_v56  ;;  %v2153_v44 = vld [vmem:[%s9078_s15 + $0x18] sm:$0xff] }
 0x436   : > { %v6527_v0 = vpop.f32.mrf.mxu1  ;;  %6549 = vmatprep.subr.mxu1 %v2153_v44 }
 0x437   : > { %1737 = vst.msk [vmem:[#allocation2 + $0x30] sm:$0xff] %vm1063_vm3, %v1734_v59  ;;  %v2055_v41 = vmul.f32 %v7677_v58, %v7677_v58  ;;  %6550 = vmatpush3.msra.mxu1 %v2153_v44 }
 0x438   : > { %6551 = vmatprep.subr.mxu1 %v2152_v1 }
 0x439   : > { %v2073_v0 = vsel %vm1063_vm3, %v2055_v41, 0.0  ;;  %6552 = vmatpush3.msra.mxu1 %v2152_v1 }
 0x43a   : > { %6553 = vmatprep.subr.mxu1 %v2151_v2 }
 0x43b   : > { %6554 = vmatpush3.msra.mxu1 %v2151_v2 }
 0x43c   : > { %v1815_v5 = vpop.f32.mrf.mxu0  ;;  %v1888_v6 = vpop.f32.mrf.mxu1 }
 0x43d   : > { %v1889_v7 = vadd.f32 %v1888_v6, %v1815_v5 }
 0x43e   : > { %v6534_v9 = vpop.f32.mrf.mxu0  ;;  %v6541_v10 = vpop.f32.mrf.mxu1  ;;  %v2005_v11 = vld [vmem:[#allocation2 + $0x30] sm:$0xff] }
 0x43f   : > { %v1900_v14 = vmul.f32 %v5941_v61, %v1889_v7  ;;  %v2027_v15 = vsel %vm1063_vm3, %v2005_v11, 0.0 }
 0x440   : > { %2028 = vadd.xlane.f32.xlu0 %v2027_v15 }
 0x441   : > { %v1909_v16 = vadd.f32 %v5943_v8, %v1900_v14 }
 0x443   : > { %v1911_v18 = vmul.f32 1.442695, %v1909_v16  ;;  %vm1910_vm9 = vcmp.gt.f32.partialorder %v1909_v16, 0.0 }
 0x444   : > { %2059 = vadd.xlane.f32.xlu0 %v2058_v19 }
 0x445   : > { %7007 = vpow2.f32 %v1911_v18 }
 0x448   : > { %2065 = vadd.xlane.f32.xlu0 %v2064_v21 }
 0x44c   : > { %2071 = vadd.xlane.f32.xlu0 %v2070_v22 }
 0x452   : > { %v7008_v23 = vpop.eup %7007 }
 0x453   : > { %v5944_v24 = vadd.f32 -1.0, %v7008_v23 }
 0x455   : > { %v1914_v25 = vsel %vm1910_vm9, %v1909_v16, %v5944_v24 }
 0x456   : > { %6547 = vmatmul.mubr.msk.f32.vlgmr.msra.gmra.mxu0 %vm1176_vm4, %v1914_v25 }
 0x4c9   : > { %v2029_v26 = vpop.xlane.xlu0 %2028 }
 0x4ca   : > { %v2040_v28 = vmul.f32 0.03125, %v2029_v26 }
 0x4cc   : > { %v7644_v29 = vsub.f32 %v2005_v11, %v2040_v28 }
 0x4cd   : > { %v2060_v30 = vpop.xlane.xlu0 %2059 }
 0x4ce   : > { %v2082_v31 = vmul.f32 0.03125, %v2060_v30  ;;  %v2056_v32 = vmul.f32 %v7644_v29, %v7644_v29 }
 0x4d0   : > { %v2090_v33 = vadd.f32 1e-05, %v2082_v31  ;;  %v2076_v34 = vsel %vm1063_vm3, %v2056_v32, 0.0 }
 0x4d1   : > { %2077 = vadd.xlane.f32.xlu0 %v2076_v34  ;;  %v2066_v60 = vpop.xlane.xlu0 %2065 }
 0x4d2   : > { %7009 = vrsqrt.f32 %v2090_v33  ;;  %v2084_v4 = vmul.f32 0.03125, %v2066_v60 }
 0x4d4   : > { %v2092_v6 = vadd.f32 1e-05, %v2084_v4 }
 0x4d5   : > { %v2072_v5 = vpop.xlane.xlu0 %2071 }
 0x4d6   : > { %v2086_v61 = vmul.f32 0.03125, %v2072_v5  ;;  %7011 = vrsqrt.f32 %v2092_v6 }
 0x4d8   : > { %v2094_v11 = vadd.f32 1e-05, %v2086_v61 }
 0x4da   : > { %7013 = vrsqrt.f32 %v2094_v11 }
 0x4df   : > { %v7010_v36 = vpop.eup %7009 }
 0x4e0   : > { %v2106_v40 = vmul.f32 %v7010_v36, %v2042_v3  ;;  %v2150_v3 = vld [vmem:[%s9078_s15] sm:$0xff] }
 0x4e1   : > { %6555 = vmatprep.subr.mxu1 %v2150_v3 }
 0x4e2   : > { %v2120_v43 = vmul.f32 %v7652_v39, %v2106_v40  ;;  %6556 = vmatpush3.msra.mxu1 %v2150_v3 }
 0x4e3   : > { %v7012_v25 = vpop.eup %7011 }
 0x4e4   : > { %v7661_v45 = vadd.f32 %v7657_v42, %v2120_v43  ;;  %v2108_v26 = vmul.f32 %v7012_v25, %v7631_v13 }
 0x4e6   : > { %6557 = vmatprep.mubr.msk.f32.mxu1 %vm1063_vm3, %v7661_v45  ;;  %v2122_v32 = vmul.f32 %v7652_v39, %v2108_v26 }
 0x4e7   : > { %v7014_v28 = vpop.eup %7013 }
 0x4e8   : > { %v2110_v33 = vmul.f32 %v7014_v28, %v7634_v17 }
 0x4ea   : > { %v2124_v13 = vmul.f32 %v7652_v39, %v2110_v33  ;;  %v7860_v33 = vld [vmem:[%s9139_s2 + $0x10] sm:$0xff] }
 0x4ec   : > { %v7723_v52 = vadd.f32 %v7657_v42, %v2124_v13 }
 0x516   : > { %v1993_v46 = vpop.f32.mrf.mxu0 }
 0x517   : > { %v1994_v47 = vadd.f32 %v7586_v27, %v1993_v46  ;;  %v2051_v27 = vmul.f32 %v7668_v51, %v7668_v51 }
 0x518   : > { %v6548_v48 = vpop.f32.mrf.mxu0 }
 0x519   : > { %1998 = vst.msk [vmem:[#allocation2 + $0x38] sm:$0xf] %vm1997_vm10, %v1994_v47  ;;  %v2061_v59 = vsel %vm1063_vm3, %v2051_v27, 0.0  ;;  %v7709_v47 = vadd.f32 %v7657_v42, %v2122_v32 }
 0x520   : > { %v2006_v54 = vld [vmem:[#allocation2 + $0x38] sm:$0xf] }
 0x521   : > { %v2030_v57 = vsel %vm1997_vm10, %v2006_v54, 0.0 }
 0x522   : > { %2031 = vadd.xlane.f32.xlu1 %v2030_v57 }
 0x526   : > { %2062 = vadd.xlane.f32.xlu1 %v2061_v59 }
 0x52a   : > { %2068 = vadd.xlane.f32.xlu1 %v2067_v62 }
 0x52e   : > { %2074 = vadd.xlane.f32.xlu1 %v2073_v0 }
 0x55a   : > { %v2078_v8 = vpop.xlane.xlu0 %2077 }
 0x55b   : > { %v2088_v12 = vmul.f32 0.03125, %v2078_v8 }
 0x55d   : > { %v2096_v19 = vadd.f32 1e-05, %v2088_v12 }
 0x5ab   : > { %v2032_v7 = vpop.xlane.xlu1 %2031 }
 0x5ac   : > { %v2041_v9 = vmul.f32 0.03125, %v2032_v7 }
 0x5ae   : > { %v2049_v10 = vsub.f32 %v2006_v54, %v2041_v9 }
 0x5af   : > { %v2063_v35 = vpop.xlane.xlu1 %2062 }
 0x5b0   : > { %v2083_v14 = vmul.f32 0.03125, %v2063_v35  ;;  %v2057_v15 = vmul.f32 %v2049_v10, %v2049_v10 }
 0x5b2   : > { %v2091_v16 = vadd.f32 1e-05, %v2083_v14  ;;  %v2079_v18 = vsel %vm1997_vm10, %v2057_v15, 0.0 }
 0x5b3   : > { %2080 = vadd.xlane.f32.xlu1 %v2079_v18  ;;  %v2069_v20 = vpop.xlane.xlu1 %2068 }
 0x5b4   : > { %7015 = vrsqrt.f32 %v2091_v16  ;;  %v2085_v21 = vmul.f32 0.03125, %v2069_v20  ;;  %v7840_v20 = vld [vmem:[%s9139_s2 + $0x8] sm:$0xff] }
 0x5b5   : > { %7017 = vrsqrt.f32 %v2096_v19 }
 0x5b6   : > { %v2093_v38 = vadd.f32 1e-05, %v2085_v21 }
 0x5b7   : > { %v2075_v22 = vpop.xlane.xlu1 %2074 }
 0x5b8   : > { %7019 = vrsqrt.f32 %v2093_v38  ;;  %v2087_v23 = vmul.f32 0.03125, %v2075_v22  ;;  %v7845_v38 = vld [vmem:[%s9139_s2] sm:$0xff] }
 0x5ba   : > { %v2095_v24 = vadd.f32 1e-05, %v2087_v23 }
 0x5bc   : > { %7021 = vrsqrt.f32 %v2095_v24  ;;  %v7851_v24 = vld [vmem:[%s9139_s2 + $0x18] sm:$0xff] }
 0x5c1   : > { %v7016_v30 = vpop.eup %7015 }
 0x5c2   : > { %v2107_v31 = vmul.f32 %v7016_v30, %v7668_v51  ;;  %v7018_v34 = vpop.eup %7017 }
 0x5c3   : > { %v2112_v48 = vmul.f32 %v7018_v34, %v7644_v29  ;;  %v7865_v34 = vld [vmem:[%s9139_s2 + $0x28] sm:$0xff] }
 0x5c4   : > { %v2121_v36 = vmul.f32 %v7652_v39, %v2107_v31 }
 0x5c5   : > { %v7020_v40 = vpop.eup %7019  ;;  %v2126_v53 = vmul.f32 %v7652_v39, %v2112_v48 }
 0x5c6   : > { %v7705_v43 = vadd.f32 %v7657_v42, %v2121_v36  ;;  %v2109_v46 = vmul.f32 %v7020_v40, %v7671_v55 }
 0x5c7   : > { %v7735_v55 = vadd.f32 %v7657_v42, %v2126_v53 }
 0x5c8   : > { %6558 = vmatmul.mubr.msk.f32.vlgmr.msra.gmra.mxu1 %vm1063_vm3, %v7705_v43  ;;  %v2123_v17 = vmul.f32 %v7652_v39, %v2109_v46 }
 0x5c9   : > { %v7022_v49 = vpop.eup %7021  ;;  %6560 = vmatprep.mubr.msk.f32.mxu1 %vm1063_vm3, %v7709_v47 }
 0x5ca   : > { %v7719_v50 = vadd.f32 %v7657_v42, %v2123_v17  ;;  %v2111_v51 = vmul.f32 %v7022_v49, %v7677_v58  ;;  %v7873_v17 = vld [vmem:[%s9139_s2 + $0x20] sm:$0xff]  ;;  %v7878_v49 = vld [vmem:[%s9139_s2 + $0x38] sm:$0xf] }
 0x5cc   : > { %6561 = vmatmul.mubr.msk.f32.gmra.mxu1 %vm1063_vm3, %v7719_v50  ;;  %v2125_v29 = vmul.f32 %v7652_v39, %v2111_v51 }
 0x5cd   : > { %6563 = vmatprep.mubr.msk.f32.mxu1 %vm1063_vm3, %v7723_v52 }
 0x5ce   : > { %v7732_v54 = vadd.f32 %v7657_v42, %v2125_v29 }
 0x5d0   : > { %6564 = vmatmul.mubr.msk.f32.gmra.mxu1 %vm1063_vm3, %v7732_v54 }
 0x5d1   : > { %6566 = vmatprep.mubr.msk.f32.mxu1 %vm1063_vm3, %v7735_v55 }
 0x63c   : > { %v2081_v56 = vpop.xlane.xlu1 %2080 }
 0x63d   : > { %v2089_v57 = vmul.f32 0.03125, %v2081_v56 }
 0x63f   : > { %v2097_v27 = vadd.f32 1e-05, %v2089_v57 }
 0x641   : > { %7023 = vrsqrt.f32 %v2097_v27 }
 0x64e   : > { %v7024_v58 = vpop.eup %7023 }
 0x64f   : > { %v2113_v59 = vmul.f32 %v7024_v58, %v2049_v10  ;;  %v7887_v58 = vld [vmem:[%s9139_s2 + $0x30] sm:$0xff] }
 0x651   : > { %v2127_v37 = vmul.f32 %v7652_v39, %v2113_v59 }
 0x653   : > { %v7743_v62 = vadd.f32 %v7657_v42, %v2127_v37 }
 0x655   : > { %6567 = vmatmul.mubr.msk.f32.gmra.mxu1 %vm1063_vm3, %v7743_v62 }
 0x688   : > { %v7747_v41 = vpop.f32.mrf.mxu1 }
 0x68a   : > { %v7749_v0 = vpop.f32.mrf.mxu1 }
 0x68b   : > { %6585 = vmatprep.mubr.msk.f32.mxu0 %vm1176_vm4, %v7749_v0 }
 0x68c   : > { %v7753_v44 = vpop.f32.mrf.mxu1 }
 0x68e   : > { %v7755_v1 = vpop.f32.mrf.mxu1 }
 0x690   : > { %v7757_v2 = vpop.f32.mrf.mxu1 }
 0x692   : > { %v7759_v39 = vpop.f32.mrf.mxu1 }
 0x715   : > { %v7761_v42 = vpop.f32.mrf.mxu1 }
 0x716   : > { %2305 = vrot.lane.b32.xlu0 %v7761_v42, %s9103_s1 }
 0x717   : > { %v7765_v3 = vpop.f32.mrf.mxu1 }
 0x718   : > { %2303 = vrot.lane.b32.xlu1 %v7765_v3, %s9103_s1 }
 0x71a   : > { %2297 = vrot.lane.b32.xlu0 %v7753_v44, %s9103_s1 }
 0x71c   : > { %2301 = vrot.lane.b32.xlu1 %v7757_v2, %s9103_s1 }
 0x71e   : > { %2293 = vrot.lane.b32.xlu0 %v7747_v41, %s9103_s1 }
 0x720   : > { %2299 = vrot.lane.b32.xlu1 %v7759_v39, %s9103_s1 }
 0x722   : > { %2548 = vrot.lane.b32.xlu0 %v7761_v42, %s9101_s0 }
 0x724   : > { %2295 = vrot.lane.b32.xlu1 %v7755_v1, %s9103_s1 }
 0x726   : > { %2540 = vrot.lane.b32.xlu0 %v7753_v44, %s9101_s0 }
 0x728   : > { %2291 = vrot.lane.b32.xlu1 %v7749_v0, %s9103_s1  ;;  %s9140_s1 = smov 96  }
 0x72a   : > { %2536 = vrot.lane.b32.xlu0 %v7747_v41, %s9101_s0 }
 0x72c   : > { %2544 = vrot.lane.b32.xlu1 %v7757_v2, %s9101_s0 }
 0x72e   : > { %2727 = vrot.lane.b32.xlu0 %v7761_v42, %s9109_s28 }
 0x730   : > { %2542 = vrot.lane.b32.xlu1 %v7759_v39, %s9101_s0 }
 0x734   : > { %2538 = vrot.lane.b32.xlu1 %v7755_v1, %s9101_s0 }
 0x738   : > { %2534 = vrot.lane.b32.xlu1 %v7749_v0, %s9101_s0 }
 0x73c   : > { %2546 = vrot.lane.b32.xlu1 %v7765_v3, %s9101_s0  ;;  %s9141_s0 = smov 64  }
 0x740   : > { %2725 = vrot.lane.b32.xlu1 %v7765_v3, %s9109_s28 }
 0x788   : > { %v2306_v60 = vpop.permute.xlu0 %2305 }
 0x789   : > { %6569 = vmatprep.subr.msk.mxu0 %vm1176_vm4, %v2306_v60 }
 0x78a   : > { %6570 = vmatpush3.xpose.msk.msra.mxu0 %vm1176_vm4, %v2306_v60  ;;  %v2304_v4 = vpop.permute.xlu1 %2303 }
 0x78b   : > { %6571 = vmatprep.subr.msk.mxu0 %vm1176_vm4, %v2304_v4 }
 0x78c   : > { %v2298_v5 = vpop.permute.xlu0 %2297 }
 0x78e   : > { %6572 = vmatpush3.xpose.msk.msra.mxu0 %vm1176_vm4, %v2304_v4  ;;  %v2302_v6 = vpop.permute.xlu1 %2301 }
 0x78f   : > { %6573 = vmatprep.subr.msk.mxu0 %vm1176_vm4, %v2302_v6 }
 0x790   : > { %v2294_v61 = vpop.permute.xlu0 %2293 }
 0x792   : > { %6574 = vmatpush3.xpose.msk.msra.mxu0 %vm1176_vm4, %v2302_v6  ;;  %v2300_v7 = vpop.permute.xlu1 %2299 }
 0x793   : > { %6575 = vmatprep.subr.msk.mxu0 %vm1176_vm4, %v2300_v7 }
 0x794   : > { %v2549_v8 = vpop.permute.xlu0 %2548 }
 0x795   : > { %6597 = vmatprep.subr.msk.mxu1 %vm865_vm0, %v2549_v8 }
 0x796   : > { %6576 = vmatpush3.xpose.msk.msra.mxu0 %vm1176_vm4, %v2300_v7  ;;  %6598 = vmatpush3.msk.msra.mxu1 %vm865_vm0, %v2549_v8  ;;  %v2296_v9 = vpop.permute.xlu1 %2295 }
 0x797   : > { %6577 = vmatprep.subr.msk.mxu0 %vm1176_vm4, %v2298_v5 }
 0x798   : > { %v2541_v16 = vpop.permute.xlu0 %2540 }
 0x79a   : > { %6578 = vmatpush3.xpose.msk.msra.mxu0 %vm1176_vm4, %v2298_v5  ;;  %v2292_v10 = vpop.permute.xlu1 %2291 }
 0x79b   : > { %6579 = vmatprep.subr.msk.mxu0 %vm1176_vm4, %v2296_v9 }
 0x79c   : > { %v2537_v18 = vpop.permute.xlu0 %2536 }
 0x79e   : > { %6580 = vmatpush3.xpose.msk.msra.mxu0 %vm1176_vm4, %v2296_v9  ;;  %v2545_v11 = vpop.permute.xlu1 %2544 }
 0x79f   : > { %6581 = vmatprep.subr.msk.mxu0 %vm1176_vm4, %v2294_v61 }
 0x7a0   : > { %v7833_v19 = vpop.permute.xlu0 %2727 }
 0x7a2   : > { %6582 = vmatpush3.xpose.msk.msra.mxu0 %vm1176_vm4, %v2294_v61  ;;  %v2543_v12 = vpop.permute.xlu1 %2542 }
 0x7a3   : > { %6583 = vmatprep.subr.msk.mxu0 %vm1176_vm4, %v2292_v10 }
 0x7a6   : > { %6584 = vmatpush3.xpose.msk.msra.mxu0 %vm1176_vm4, %v2292_v10  ;;  %v2539_v35 = vpop.permute.xlu1 %2538 }
 0x7a9   : > { %6586 = vmatmul.mubr.msk.f32.vlgmr.msra.gmra.mxu0 %vm1176_vm4, %v7747_v41 }
 0x7aa   : > { %6588 = vmatprep.mubr.msk.f32.mxu0 %vm1176_vm4, %v7755_v1  ;;  %v2535_v14 = vpop.permute.xlu1 %2534 }
 0x7ad   : > { %6589 = vmatmul.mubr.msk.f32.gmra.mxu0 %vm1176_vm4, %v7753_v44 }
 0x7ae   : > { %6591 = vmatprep.mubr.msk.f32.mxu0 %vm1176_vm4, %v7759_v39  ;;  %v2547_v15 = vpop.permute.xlu1 %2546 }
 0x7af   : > { %6599 = vmatprep.subr.mxu1 %v2547_v15 }
 0x7b0   : > { %6600 = vmatpush3.msra.mxu1 %v2547_v15 }
 0x7b1   : > { %6592 = vmatmul.mubr.msk.f32.gmra.mxu0 %vm1176_vm4, %v7757_v2  ;;  %6601 = vmatprep.subr.mxu1 %v2545_v11 }
 0x7b2   : > { %6594 = vmatprep.mubr.msk.f32.mxu0 %vm1176_vm4, %v7765_v3  ;;  %6602 = vmatpush3.msra.mxu1 %v2545_v11  ;;  %v7897_v5 = vpop.permute.xlu1 %2725 }
 0x7b3   : > { %6603 = vmatprep.subr.mxu1 %v2543_v12 }
 0x7b4   : > { %6604 = vmatpush3.msra.mxu1 %v2543_v12 }
 0x7b5   : > { %6595 = vmatmul.mubr.msk.f32.gmra.mxu0 %vm1176_vm4, %v7761_v42  ;;  %6605 = vmatprep.subr.mxu1 %v2541_v16 }
 0x7b6   : > { %6606 = vmatpush3.msra.mxu1 %v2541_v16 }
 0x7b7   : > { %6607 = vmatprep.subr.mxu1 %v2539_v35 }
 0x7b8   : > { %6608 = vmatpush3.msra.mxu1 %v2539_v35 }
 0x7b9   : > { %6609 = vmatprep.subr.mxu1 %v2537_v18 }
 0x7ba   : > { %6610 = vmatpush3.msra.mxu1 %v2537_v18 }
 0x7bb   : > { %6611 = vmatprep.subr.mxu1 %v2535_v14 }
 0x7bc   : > { %6612 = vmatpush3.msra.mxu1 %v2535_v14 }
 0x7bd   : > { %6625 = vmatprep.subr.msk.mxu1 %vm1176_vm4, %v7833_v19 }
 0x869   : > { %v6587_v21 = vpop.f32.mrf.mxu0 }
 0x86a   : > { %v2411_v22 = vadd.f32 %v6587_v21, %v7840_v20 }
 0x86b   : > { %v2405_v23 = vpop.f32.mrf.mxu0 }
 0x86c   : > { %v2406_v25 = vadd.f32 %v2405_v23, %v7845_v38  ;;  %v2448_v26 = vsel %vm2444_vm11, %v2411_v22, -inf }
 0x86d   : > { %2449 = vmax.xlane.f32.xlu1 %v2448_v26  ;;  %v6590_v28 = vpop.f32.mrf.mxu0 }
 0x86e   : > { %v2421_v30 = vadd.f32 %v6590_v28, %v7851_v24  ;;  %v2445_v31 = vsel %vm2444_vm11, %v2406_v25, -inf }
 0x86f   : > { %v2415_v32 = vpop.f32.mrf.mxu0  ;;  %2446 = vmax.xlane.f32.xlu0 %v2445_v31 }
 0x870   : > { %v2416_v40 = vadd.f32 %v2415_v32, %v7860_v33  ;;  %v2454_v13 = vsel %vm2444_vm11, %v2421_v30, -inf }
 0x871   : > { %v6593_v36 = vpop.f32.mrf.mxu0 }
 0x872   : > { %v2431_v46 = vadd.f32 %v6593_v36, %v7865_v34  ;;  %v2451_v57 = vsel %vm2444_vm11, %v2416_v40, -inf }
 0x873   : > { %v2425_v48 = vpop.f32.mrf.mxu0  ;;  %2455 = vmax.xlane.f32.xlu0 %v2454_v13 }
 0x874   : > { %v2460_v51 = vsel %vm2444_vm11, %v2431_v46, -inf  ;;  %v2426_v29 = vadd.f32 %v2425_v48, %v7873_v17 }
 0x875   : > { %2461 = vmax.xlane.f32.xlu1 %v2460_v51  ;;  %v6596_v53 = vpop.f32.mrf.mxu0 }
 0x876   : > { %v2441_v56 = vadd.f32 %v6596_v53, %v7878_v49  ;;  %v2457_v60 = vsel %vm2444_vm11, %v2426_v29, -inf }
 0x877   : > { %v2435_v27 = vpop.f32.mrf.mxu0  ;;  %2452 = vmax.xlane.f32.xlu0 %v2451_v57 }
 0x878   : > { %v2467_v59 = vsel %vm2466_vm12, %v2441_v56, -inf  ;;  %v2436_v37 = vadd.f32 %v2435_v27, %v7887_v58 }
 0x879   : > { %2468 = vmax.xlane.f32.xlu1 %v2467_v59 }
 0x87a   : > { %v2463_v4 = vsel %vm2444_vm11, %v2436_v37, -inf }
 0x87b   : > { %2458 = vmax.xlane.f32.xlu0 %v2457_v60 }
 0x87f   : > { %2464 = vmax.xlane.f32.xlu0 %v2463_v4 }
 0x88a   : > { %2721 = vrot.lane.b32.xlu1 %v7759_v39, %s9109_s28 }
 0x895   : > { %2723 = vrot.lane.b32.xlu0 %v7757_v2, %s9109_s28 }
 0x8f6   : > { %v2450_v6 = vpop.xlane.xlu1 %2449 }
 0x8f7   : > { %v2471_v61 = vsub.f32 %v2411_v22, %v2450_v6 }
 0x8f8   : > { %v2447_v7 = vpop.xlane.xlu0 %2446 }
 0x8f9   : > { %v2480_v8 = vmul.f32 1.442695, %v2471_v61  ;;  %v2470_v9 = vsub.f32 %v2406_v25, %v2447_v7 }
 0x8fb   : > { %7025 = vpow2.f32 %v2480_v8  ;;  %v2478_v10 = vmul.f32 1.442695, %v2470_v9 }
 0x8fc   : > { %v2456_v15 = vpop.xlane.xlu0 %2455 }
 0x8fd   : > { %7027 = vpow2.f32 %v2478_v10  ;;  %v2473_v21 = vsub.f32 %v2421_v30, %v2456_v15 }
 0x8fe   : > { %v2462_v18 = vpop.xlane.xlu1 %2461 }
 0x8ff   : > { %v2484_v25 = vmul.f32 1.442695, %v2473_v21  ;;  %v2475_v26 = vsub.f32 %v2431_v46, %v2462_v18 }
 0x900   : > { %v2453_v16 = vpop.xlane.xlu0 %2452 }
 0x901   : > { %v2472_v23 = vsub.f32 %v2416_v40, %v2453_v16  ;;  %7029 = vpow2.f32 %v2484_v25  ;;  %v2488_v13 = vmul.f32 1.442695, %v2475_v26 }
 0x902   : > { %v2469_v28 = vpop.xlane.xlu1 %2468 }
 0x903   : > { %v2482_v31 = vmul.f32 1.442695, %v2472_v23  ;;  %v2477_v48 = vsub.f32 %v2441_v56, %v2469_v28 }
 0x904   : > { %v2459_v22 = vpop.xlane.xlu0 %2458 }
 0x905   : > { %v2474_v32 = vsub.f32 %v2426_v29, %v2459_v22  ;;  %7031 = vpow2.f32 %v2482_v31  ;;  %v2492_v57 = vmul.f32 1.442695, %v2477_v48 }
 0x906   : > { %7033 = vpow2.f32 %v2488_v13  ;;  %v2722_v8 = vpop.permute.xlu1 %2721 }
 0x907   : > { %v2486_v51 = vmul.f32 1.442695, %v2474_v32 }
 0x908   : > { %v7899_v11 = vpop.eup %7025  ;;  %v2465_v36 = vpop.xlane.xlu0 %2464 }
 0x909   : > { %v2497_v12 = vsel %vm2444_vm11, %v7899_v11, 0.0  ;;  %v2476_v53 = vsub.f32 %v2436_v37, %v2465_v36  ;;  %7035 = vpow2.f32 %v2486_v51 }
 0x90a   : > { %v7903_v35 = vpop.eup %7027  ;;  %2498 = vadd.xlane.f32.xlu1 %v2497_v12  ;;  %7037 = vpow2.f32 %v2492_v57 }
 0x90b   : > { %v2494_v14 = vsel %vm2444_vm11, %v7903_v35, 0.0  ;;  %v2490_v27 = vmul.f32 1.442695, %v2476_v53 }
 0x90c   : > { %2495 = vadd.xlane.f32.xlu0 %v2494_v14  ;;  %v2724_v9 = vpop.permute.xlu0 %2723 }
 0x90d   : > { %7039 = vpow2.f32 %v2490_v27 }
 0x90e   : > { %v7911_v30 = vpop.eup %7029 }
 0x90f   : > { %v2503_v46 = vsel %vm2444_vm11, %v7911_v30, 0.0 }
 0x912   : > { %v7913_v40 = vpop.eup %7031 }
 0x913   : > { %v7917_v29 = vpop.eup %7033  ;;  %v2500_v56 = vsel %vm2444_vm11, %v7913_v40, 0.0 }
 0x914   : > { %v2509_v37 = vsel %vm2444_vm11, %v7917_v29, 0.0 }
 0x916   : > { %v7921_v59 = vpop.eup %7035 }
 0x917   : > { %v7925_v60 = vpop.eup %7037  ;;  %v2506_v4 = vsel %vm2444_vm11, %v7921_v59, 0.0 }
 0x918   : > { %v2515_v61 = vsel %vm2466_vm12, %v7925_v60, 0.0 }
 0x91a   : > { %v7929_v6 = vpop.eup %7039 }
 0x91b   : > { %2717 = vrot.lane.b32.xlu1 %v7755_v1, %s9109_s28  ;;  %v2512_v7 = vsel %vm2444_vm11, %v7929_v6, 0.0 }
 0x922   : > { %2719 = vrot.lane.b32.xlu0 %v7753_v44, %s9109_s28 }
 0x93f   : > { %2504 = vadd.xlane.f32.xlu1 %v2503_v46 }
 0x941   : > { %2501 = vadd.xlane.f32.xlu0 %v2500_v56 }
 0x943   : > { %2510 = vadd.xlane.f32.xlu1 %v2509_v37 }
 0x945   : > { %2507 = vadd.xlane.f32.xlu0 %v2506_v4 }
 0x947   : > { %2516 = vadd.xlane.f32.xlu1 %v2515_v61 }
 0x949   : > { %2513 = vadd.xlane.f32.xlu0 %v2512_v7 }
 0x958   : > { %2713 = vrot.lane.b32.xlu1 %v7749_v0, %s9109_s28 }
 0x95c   : > { %2699 = vrot.lane.b32.xlu1 %v7747_v41, %s9107_s8 }
 0x95f   : > { %2715 = vrot.lane.b32.xlu0 %v7747_v41, %s9109_s28 }
 0x960   : > { %2703 = vrot.lane.b32.xlu1 %v7753_v44, %s9107_s8 }
 0x963   : > { %2697 = vrot.lane.b32.xlu0 %v7749_v0, %s9107_s8 }
 0x964   : > { %2707 = vrot.lane.b32.xlu1 %v7757_v2, %s9107_s8 }
 0x967   : > { %2701 = vrot.lane.b32.xlu0 %v7755_v1, %s9107_s8 }
 0x968   : > { %2711 = vrot.lane.b32.xlu1 %v7761_v42, %s9107_s8 }
 0x96b   : > { %2705 = vrot.lane.b32.xlu0 %v7759_v39, %s9107_s8 }
 0x96f   : > { %2709 = vrot.lane.b32.xlu0 %v7765_v3, %s9107_s8 }
 0x993   : > { %v2499_v10 = vpop.xlane.xlu1 %2498 }
 0x994   : > { %7041 = vrcp.f32 %v2499_v10 }
 0x995   : > { %v2496_v12 = vpop.xlane.xlu0 %2495 }
 0x996   : > { %7043 = vrcp.f32 %v2496_v12 }
 0x9a1   : > { %v7042_v14 = vpop.eup %7041 }
 0x9a2   : > { %v2527_v18 = vmul.f32 %v7042_v14, %v7899_v11  ;;  %v2720_v11 = vpop.permute.xlu0 %2719 }
 0x9a3   : > { %v7044_v15 = vpop.eup %7043 }
 0x9a4   : > { %v2526_v16 = vmul.f32 %v7044_v15, %v7903_v35  ;;  %v2718_v35 = vpop.permute.xlu1 %2717 }
 0x9a6   : > { %6613 = vmatprep.mubr.msk.f32.mxu1 %vm2444_vm11, %v2526_v16 }
 0x9a7   : > { %6614 = vmatmul.mubr.msk.f32.vlgmr.msra.gmra.mxu1 %vm2444_vm11, %v2527_v18 }
 0x9a8   : > { %6626 = vmatpush3.xpose.msk.msra.mxu1 %vm1176_vm4, %v7833_v19 }
 0x9a9   : > { %6627 = vmatprep.subr.msk.mxu1 %vm1176_vm4, %v7897_v5 }
 0x9ac   : > { %6628 = vmatpush3.xpose.msk.msra.mxu1 %vm1176_vm4, %v7897_v5 }
 0x9ad   : > { %6629 = vmatprep.subr.msk.mxu1 %vm1176_vm4, %v2724_v9 }
 0x9b0   : > { %6630 = vmatpush3.xpose.msk.msra.mxu1 %vm1176_vm4, %v2724_v9 }
 0x9b1   : > { %6631 = vmatprep.subr.msk.mxu1 %vm1176_vm4, %v2722_v8 }
 0x9b4   : > { %6632 = vmatpush3.xpose.msk.msra.mxu1 %vm1176_vm4, %v2722_v8 }
 0x9b5   : > { %6633 = vmatprep.subr.msk.mxu1 %vm1176_vm4, %v2720_v11 }
 0x9b8   : > { %6634 = vmatpush3.xpose.msk.msra.mxu1 %vm1176_vm4, %v2720_v11 }
 0x9b9   : > { %6635 = vmatprep.subr.msk.mxu1 %vm1176_vm4, %v2718_v35 }
 0x9bc   : > { %6636 = vmatpush3.xpose.msk.msra.mxu1 %vm1176_vm4, %v2718_v35 }
 0x9c8   : > { %v2505_v19 = vpop.xlane.xlu1 %2504 }
 0x9c9   : > { %7045 = vrcp.f32 %v2505_v19 }
 0x9ca   : > { %v2502_v5 = vpop.xlane.xlu0 %2501 }
 0x9cb   : > { %7047 = vrcp.f32 %v2502_v5 }
 0x9cc   : > { %v2511_v21 = vpop.xlane.xlu1 %2510 }
 0x9cd   : > { %7049 = vrcp.f32 %v2511_v21 }
 0x9ce   : > { %v2508_v22 = vpop.xlane.xlu0 %2507 }
 0x9cf   : > { %7051 = vrcp.f32 %v2508_v22 }
 0x9d0   : > { %v2517_v23 = vpop.xlane.xlu1 %2516 }
 0x9d1   : > { %7053 = vrcp.f32 %v2517_v23 }
 0x9d2   : > { %v2514_v25 = vpop.xlane.xlu0 %2513 }
 0x9d3   : > { %7055 = vrcp.f32 %v2514_v25 }
 0x9d4   : > { %v2714_v32 = vpop.permute.xlu1 %2713 }
 0x9d6   : > { %v2716_v26 = vpop.permute.xlu0 %2715  ;;  %v7046_v28 = vpop.eup %7045 }
 0x9d7   : > { %6637 = vmatprep.subr.msk.mxu1 %vm1176_vm4, %v2716_v26  ;;  %v2529_v13 = vmul.f32 %v7046_v28, %v7911_v30 }
 0x9d8   : > { %v7048_v31 = vpop.eup %7047  ;;  %6638 = vmatpush3.xpose.msk.msra.mxu1 %vm1176_vm4, %v2716_v26  ;;  %v2700_v30 = vpop.permute.xlu1 %2699 }
 0x9d9   : > { %6639 = vmatprep.subr.msk.mxu1 %vm1176_vm4, %v2714_v32  ;;  %v2528_v36 = vmul.f32 %v7048_v31, %v7913_v40 }
 0x9da   : > { %v7050_v48 = vpop.eup %7049  ;;  %v2698_v57 = vpop.permute.xlu0 %2697 }
 0x9db   : > { %6616 = vmatprep.mubr.msk.f32.mxu1 %vm2444_vm11, %v2528_v36  ;;  %v2531_v27 = vmul.f32 %v7050_v48, %v7917_v29 }
 0x9dc   : > { %v7052_v51 = vpop.eup %7051  ;;  %6617 = vmatmul.mubr.msk.f32.gmra.mxu1 %vm2444_vm11, %v2529_v13 }
 0x9dd   : > { %6640 = vmatpush3.xpose.msk.msra.mxu1 %vm1176_vm4, %v2714_v32  ;;  %v2530_v53 = vmul.f32 %v7052_v51, %v7921_v59  ;;  %v2704_v59 = vpop.permute.xlu1 %2703 }
 0x9de   : > { %v7054_v46 = vpop.eup %7053  ;;  %v2702_v4 = vpop.permute.xlu0 %2701 }
 0x9df   : > { %6619 = vmatprep.mubr.msk.f32.mxu1 %vm2444_vm11, %v2530_v53  ;;  %v2533_v37 = vmul.f32 %v7054_v46, %v7925_v60 }
 0x9e0   : > { %v7056_v56 = vpop.eup %7055  ;;  %6620 = vmatmul.mubr.msk.f32.gmra.mxu1 %vm2444_vm11, %v2531_v27 }
 0x9e1   : > { %v2532_v40 = vmul.f32 %v7056_v56, %v7929_v6  ;;  %v2708_v61 = vpop.permute.xlu1 %2707 }
 0x9e2   : > { %v2706_v29 = vpop.permute.xlu0 %2705 }
 0x9e3   : > { %6622 = vmatprep.mubr.msk.f32.mxu1 %vm2444_vm11, %v2532_v40 }
 0x9e4   : > { %6623 = vmatmul.mubr.msk.f32.gmra.mxu1 %vm2444_vm11, %v2533_v37 }
 0x9e5   : > { %6641 = vmatprep.mubr.msk.f32.mxu1 %vm1176_vm4, %v2698_v57  ;;  %v2712_v60 = vpop.permute.xlu1 %2711 }
 0x9e6   : > { %v2710_v6 = vpop.permute.xlu0 %2709 }
 0x9e8   : > { %6642 = vmatmul.mubr.msk.f32.vlgmr.msra.gmra.mxu1 %vm1176_vm4, %v2700_v30 }
 0x9e9   : > { %6644 = vmatprep.mubr.msk.f32.mxu1 %vm1176_vm4, %v2702_v4 }
 0x9ec   : > { %6645 = vmatmul.mubr.msk.f32.gmra.mxu1 %vm1176_vm4, %v2704_v59 }
 0x9ed   : > { %6647 = vmatprep.mubr.msk.f32.mxu1 %vm1176_vm4, %v2706_v29 }
 0x9f0   : > { %6648 = vmatmul.mubr.msk.f32.gmra.mxu1 %vm1176_vm4, %v2708_v61 }
 0x9f1   : > { %6650 = vmatprep.mubr.msk.f32.mxu1 %vm1176_vm4, %v2710_v6 }
 0x9f4   : > { %6651 = vmatmul.mubr.msk.f32.gmra.mxu1 %vm1176_vm4, %v2712_v60 }
 0xa67   : > { %v6615_v7 = vpop.f32.mrf.mxu1 }
 0xa68   : > { %2689 = vst.msk [vmem:[#allocation4 + $0x8] sm:$0xff] %vm1176_vm4, %v6615_v7 }
 0xa69   : > { %v2649_v8 = vpop.f32.mrf.mxu1 }
 0xa6a   : > { %2688 = vst.msk [vmem:[#allocation4] sm:$0xff] %vm1176_vm4, %v2649_v8 }
 0xa9c   : > { %v6618_v9 = vpop.f32.mrf.mxu1 }
 0xa9d   : > { %2691 = vst.msk [vmem:[#allocation4 + $0x18] sm:$0xff] %vm1176_vm4, %v6618_v9 }
 0xa9e   : > { %v2659_v10 = vpop.f32.mrf.mxu1 }
 0xa9f   : > { %2690 = vst.msk [vmem:[#allocation4 + $0x10] sm:$0xff] %vm1176_vm4, %v2659_v10 }
 0xaa0   : > { %v6621_v12 = vpop.f32.mrf.mxu1 }
 0xaa1   : > { %2693 = vst.msk [vmem:[#allocation4 + $0x28] sm:$0xff] %vm1176_vm4, %v6621_v12 }
 0xaa2   : > { %v2669_v14 = vpop.f32.mrf.mxu1 }
 0xaa3   : > { %2692 = vst.msk [vmem:[#allocation4 + $0x20] sm:$0xff] %vm1176_vm4, %v2669_v14 }
 0xaa4   : > { %v6624_v15 = vpop.f32.mrf.mxu1 }
 0xaa5   : > { %2696 = vst.msk [vmem:[#allocation4 + $0x38] sm:$0xf] %vm2695_vm13, %v6624_v15 }
 0xaa6   : > { %v2679_v16 = vpop.f32.mrf.mxu1 }
 0xaa7   : > { %2694 = vst.msk [vmem:[#allocation4 + $0x30] sm:$0xff] %vm1176_vm4, %v2679_v16 }
 0xaa8   : > { %v6643_v18 = vpop.f32.mrf.mxu1 }
 0xaa9   : > { %v2833_v11 = vadd.f32 %v6643_v18, %v7840_v20 }
 0xaaa   : > { %v2827_v35 = vpop.f32.mrf.mxu1 }
 0xaab   : > { %v2828_v19 = vadd.f32 %v2827_v35, %v7845_v38  ;;  %v2869_v5 = vsel %vm2444_vm11, %v2833_v11, -inf }
 0xaac   : > { %2870 = vmax.xlane.f32.xlu1 %v2869_v5  ;;  %v6646_v21 = vpop.f32.mrf.mxu1 }
 0xaad   : > { %v2843_v22 = vadd.f32 %v6646_v21, %v7851_v24  ;;  %v2866_v23 = vsel %vm2444_vm11, %v2828_v19, -inf }
 0xaae   : > { %2867 = vmax.xlane.f32.xlu0 %v2866_v23  ;;  %v2837_v25 = vpop.f32.mrf.mxu1 }
 0xaaf   : > { %v2838_v28 = vadd.f32 %v2837_v25, %v7860_v33  ;;  %v2875_v20 = vsel %vm2444_vm11, %v2843_v22, -inf }
 0xab0   : > { %v6649_v26 = vpop.f32.mrf.mxu1 }
 0xab1   : > { %v2853_v31 = vadd.f32 %v6649_v26, %v7865_v34  ;;  %v2872_v48 = vsel %vm2444_vm11, %v2838_v28, -inf }
 0xab2   : > { %2876 = vmax.xlane.f32.xlu0 %v2875_v20  ;;  %v2847_v32 = vpop.f32.mrf.mxu1 }
 0xab3   : > { %v2881_v38 = vsel %vm2444_vm11, %v2853_v31, -inf  ;;  %v2848_v13 = vadd.f32 %v2847_v32, %v7873_v17 }
 0xab4   : > { %2882 = vmax.xlane.f32.xlu1 %v2881_v38  ;;  %v6652_v36 = vpop.f32.mrf.mxu1 }
 0xab5   : > { %v2863_v24 = vadd.f32 %v6652_v36, %v7878_v49  ;;  %v2878_v53 = vsel %vm2444_vm11, %v2848_v13, -inf }
 0xab6   : > { %2873 = vmax.xlane.f32.xlu0 %v2872_v48  ;;  %v2857_v51 = vpop.f32.mrf.mxu1 }
 0xab7   : > { %v2887_v33 = vsel %vm2466_vm12, %v2863_v24, -inf  ;;  %v2858_v34 = vadd.f32 %v2857_v51, %v7887_v58 }
 0xab8   : > { %2888 = vmax.xlane.f32.xlu1 %v2887_v33 }
 0xab9   : > { %v2884_v57 = vsel %vm2444_vm11, %v2858_v34, -inf }
 0xaba   : > { %2879 = vmax.xlane.f32.xlu0 %v2878_v53 }
 0xabe   : > { %2885 = vmax.xlane.f32.xlu0 %v2884_v57 }
 0xac9   : > { %2966 = vrot.lane.b32.xlu1 %v7765_v3, %s9105_s30 }
 0xacd   : > { %2964 = vrot.lane.b32.xlu1 %v7757_v2, %s9105_s30 }
 0xad1   : > { %2962 = vrot.lane.b32.xlu1 %v7759_v39, %s9105_s30 }
 0xad4   : > { %2968 = vrot.lane.b32.xlu0 %v7761_v42, %s9105_s30 }
 0xad5   : > { %2958 = vrot.lane.b32.xlu1 %v7755_v1, %s9105_s30 }
 0xad8   : > { %2960 = vrot.lane.b32.xlu0 %v7753_v44, %s9105_s30 }
 0xb35   : > { %v2871_v17 = vpop.xlane.xlu1 %2870 }
 0xb36   : > { %v2891_v49 = vsub.f32 %v2833_v11, %v2871_v17 }
 0xb37   : > { %v2868_v58 = vpop.xlane.xlu0 %2867 }
 0xb38   : > { %v2900_v27 = vmul.f32 1.442695, %v2891_v49  ;;  %v2890_v3 = vsub.f32 %v2828_v19, %v2868_v58 }
 0xb3a   : > { %7057 = vpow2.f32 %v2900_v27  ;;  %v2898_v46 = vmul.f32 1.442695, %v2890_v3 }
 0xb3b   : > { %v2877_v2 = vpop.xlane.xlu0 %2876 }
 0xb3c   : > { %7059 = vpow2.f32 %v2898_v46  ;;  %v2893_v56 = vsub.f32 %v2843_v22, %v2877_v2 }
 0xb3d   : > { %v2883_v39 = vpop.xlane.xlu1 %2882 }
 0xb3e   : > { %v2904_v30 = vmul.f32 1.442695, %v2893_v56  ;;  %v2895_v40 = vsub.f32 %v2853_v31, %v2883_v39 }
 0xb3f   : > { %v2874_v42 = vpop.xlane.xlu0 %2873 }
 0xb40   : > { %7061 = vpow2.f32 %v2904_v30  ;;  %v2908_v37 = vmul.f32 1.442695, %v2895_v40  ;;  %v2892_v1 = vsub.f32 %v2838_v28, %v2874_v42 }
 0xb41   : > { %v2889_v4 = vpop.xlane.xlu1 %2888 }
 0xb42   : > { %7063 = vpow2.f32 %v2908_v37  ;;  %v2902_v44 = vmul.f32 1.442695, %v2892_v1  ;;  %v2897_v59 = vsub.f32 %v2863_v24, %v2889_v4 }
 0xb43   : > { %v2880_v29 = vpop.xlane.xlu0 %2879 }
 0xb44   : > { %7065 = vpow2.f32 %v2902_v44  ;;  %v2912_v61 = vmul.f32 1.442695, %v2897_v59  ;;  %v2894_v6 = vsub.f32 %v2848_v13, %v2880_v29  ;;  %v3161_v29 = vld [vmem:[%s9079_s16 + $0x18] sm:$0xff] }
 0xb45   : > { %v2967_v60 = vpop.permute.xlu1 %2966 }
 0xb46   : > { %v2906_v7 = vmul.f32 1.442695, %v2894_v6  ;;  %7067 = vpow2.f32 %v2912_v61  ;;  %v3160_v61 = vld [vmem:[%s9079_s16 + $0x10] sm:$0xff]  ;;  %v3159_v6 = vld [vmem:[%s9079_s16 + $0x8] sm:$0xff] }
 0xb47   : > { %v8033_v8 = vpop.eup %7057  ;;  %v2886_v9 = vpop.xlane.xlu0 %2885 }
 0xb48   : > { %7069 = vpow2.f32 %v2906_v7  ;;  %v2896_v10 = vsub.f32 %v2858_v34, %v2886_v9  ;;  %v2917_v12 = vsel %vm2444_vm11, %v8033_v8, 0.0 }
 0xb49   : > { %v7060_v14 = vpop.eup %7059  ;;  %2918 = vadd.xlane.f32.xlu1 %v2917_v12  ;;  %v2965_v16 = vpop.permute.xlu1 %2964 }
 0xb4a   : > { %v2910_v15 = vmul.f32 1.442695, %v2896_v10  ;;  %v2914_v18 = vsel %vm2444_vm11, %v7060_v14, 0.0 }
 0xb4b   : > { %2915 = vadd.xlane.f32.xlu0 %v2914_v18  ;;  %v2969_v11 = vpop.permute.xlu0 %2968 }
 0xb4c   : > { %7071 = vpow2.f32 %v2910_v15  ;;  %6653 = vmatprep.subr.msk.mxu0 %vm865_vm0, %v2969_v11 }
 0xb4d   : > { %v8039_v35 = vpop.eup %7061  ;;  %6654 = vmatpush3.msk.msra.mxu0 %vm865_vm0, %v2969_v11  ;;  %v2963_v21 = vpop.permute.xlu1 %2962 }
 0xb4e   : > { %6655 = vmatprep.subr.mxu0 %v2967_v60  ;;  %v2923_v19 = vsel %vm2444_vm11, %v8039_v35, 0.0 }
 0xb4f   : > { %v8044_v5 = vpop.eup %7063  ;;  %2924 = vadd.xlane.f32.xlu1 %v2923_v19  ;;  %6656 = vmatpush3.msra.mxu0 %v2967_v60  ;;  %v2961_v28 = vpop.permute.xlu0 %2960  ;;  %v3158_v60 = vld [vmem:[%s9079_s16] sm:$0xff] }
 0xb50   : > { %6657 = vmatprep.subr.mxu0 %v2965_v16  ;;  %v2929_v25 = vsel %vm2444_vm11, %v8044_v5, 0.0 }
 0xb51   : > { %v7066_v22 = vpop.eup %7065  ;;  %6658 = vmatpush3.msra.mxu0 %v2965_v16  ;;  %v2959_v20 = vpop.permute.xlu1 %2958 }
 0xb52   : > { %6659 = vmatprep.subr.mxu0 %v2963_v21  ;;  %v2920_v23 = vsel %vm2444_vm11, %v7066_v22, 0.0 }
 0xb53   : > { %2921 = vadd.xlane.f32.xlu0 %v2920_v23  ;;  %2930 = vadd.xlane.f32.xlu1 %v2929_v25  ;;  %v7068_v26 = vpop.eup %7067 }
 0xb54   : > { %6660 = vmatpush3.msra.mxu0 %v2963_v21  ;;  %v2935_v38 = vsel %vm2466_vm12, %v7068_v26, 0.0 }
 0xb55   : > { %v7070_v31 = vpop.eup %7069  ;;  %6661 = vmatprep.subr.mxu0 %v2961_v28 }
 0xb56   : > { %6662 = vmatpush3.msra.mxu0 %v2961_v28  ;;  %v2926_v32 = vsel %vm2444_vm11, %v7070_v31, 0.0 }
 0xb57   : > { %6663 = vmatprep.subr.mxu0 %v2959_v20  ;;  %2927 = vadd.xlane.f32.xlu0 %v2926_v32 }
 0xb58   : > { %2936 = vadd.xlane.f32.xlu1 %v2935_v38  ;;  %6664 = vmatpush3.msra.mxu0 %v2959_v20 }
 0xb59   : > { %v7072_v36 = vpop.eup %7071 }
 0xb5a   : > { %v2932_v13 = vsel %vm2444_vm11, %v7072_v36, 0.0 }
 0xb5b   : > { %2933 = vadd.xlane.f32.xlu0 %v2932_v13  ;;  %v6007_v13 = vld [vmem:[%s9080_s17] ss:$0 sm:$0xff] }
 0xb69   : > { %2954 = vrot.lane.b32.xlu1 %v7749_v0, %s9105_s30 }
 0xb71   : > { %2956 = vrot.lane.b32.xlu0 %v7747_v41, %s9105_s30  ;;  %s7269_s30 = smov 32  }
 0xbd2   : > { %v2919_v24 = vpop.xlane.xlu1 %2918 }
 0xbd4   : > { %v2916_v48 = vpop.xlane.xlu0 %2915 }
 0xbd5   : > { %7073 = vrcp.f32 %v2916_v48 }
 0xbd6   : > { %7075 = vrcp.f32 %v2919_v24 }
 0xbd8   : > { %v2925_v51 = vpop.xlane.xlu1 %2924 }
 0xbdc   : > { %v2922_v33 = vpop.xlane.xlu0 %2921  ;;  %v2931_v34 = vpop.xlane.xlu1 %2930 }
 0xbdd   : > { %7077 = vrcp.f32 %v2922_v33 }
 0xbde   : > { %7079 = vrcp.f32 %v2925_v51 }
 0xbe0   : > { %v2928_v53 = vpop.xlane.xlu0 %2927 }
 0xbe1   : > { %7081 = vrcp.f32 %v2928_v53  ;;  %v2937_v49 = vpop.xlane.xlu1 %2936 }
 0xbe2   : > { %v7074_v57 = vpop.eup %7073  ;;  %7083 = vrcp.f32 %v2931_v34 }
 0xbe3   : > { %v2946_v17 = vmul.f32 %v7074_v57, %v7060_v14  ;;  %v7076_v41 = vpop.eup %7075 }
 0xbe4   : > { %v2934_v58 = vpop.xlane.xlu0 %2933  ;;  %v2947_v46 = vmul.f32 %v7076_v41, %v8033_v8 }
 0xbe5   : > { %7085 = vrcp.f32 %v2934_v58  ;;  %6669 = vmatprep.mubr.msk.f32.mxu0 %vm2444_vm11, %v2946_v17  ;;  %v2955_v3 = vpop.permute.xlu1 %2954 }
 0xbe6   : > { %7087 = vrcp.f32 %v2937_v49 }
 0xbe8   : > { %v2957_v0 = vpop.permute.xlu0 %2956 }
 0xbe9   : > { %6665 = vmatprep.subr.mxu0 %v2957_v0 }
 0xbea   : > { %v7078_v27 = vpop.eup %7077  ;;  %6666 = vmatpush3.msra.mxu0 %v2957_v0 }
 0xbeb   : > { %6667 = vmatprep.subr.mxu0 %v2955_v3  ;;  %v2948_v2 = vmul.f32 %v7078_v27, %v7066_v22  ;;  %v7080_v56 = vpop.eup %7079 }
 0xbec   : > { %6668 = vmatpush3.msra.mxu0 %v2955_v3  ;;  %v2949_v30 = vmul.f32 %v7080_v56, %v8039_v35 }
 0xbed   : > { %6670 = vmatmul.mubr.msk.f32.vlgmr.msra.gmra.mxu0 %vm2444_vm11, %v2947_v46  ;;  %6681 = vmatprep.subr.mxu0 %v3161_v29 }
 0xbee   : > { %v7082_v39 = vpop.eup %7081  ;;  %6672 = vmatprep.mubr.msk.f32.mxu0 %vm2444_vm11, %v2948_v2  ;;  %6682 = vmatpush3.msra.mxu0 %v3161_v29 }
 0xbef   : > { %v2950_v40 = vmul.f32 %v7082_v39, %v7070_v31  ;;  %v7084_v42 = vpop.eup %7083  ;;  %6683 = vmatprep.subr.mxu0 %v3160_v61 }
 0xbf0   : > { %v2951_v1 = vmul.f32 %v7084_v42, %v8044_v5  ;;  %6684 = vmatpush3.msra.mxu0 %v3160_v61 }
 0xbf1   : > { %6673 = vmatmul.mubr.msk.f32.gmra.mxu0 %vm2444_vm11, %v2949_v30  ;;  %6685 = vmatprep.subr.mxu0 %v3159_v6 }
 0xbf2   : > { %v7086_v37 = vpop.eup %7085  ;;  %6675 = vmatprep.mubr.msk.f32.mxu0 %vm2444_vm11, %v2950_v40  ;;  %6686 = vmatpush3.msra.mxu0 %v3159_v6 }
 0xbf3   : > { %v2952_v4 = vmul.f32 %v7086_v37, %v7072_v36  ;;  %v7088_v44 = vpop.eup %7087  ;;  %6687 = vmatprep.subr.mxu0 %v3158_v60 }
 0xbf4   : > { %v2953_v59 = vmul.f32 %v7088_v44, %v7068_v26  ;;  %6688 = vmatpush3.msra.mxu0 %v3158_v60 }
 0xbf5   : > { %6676 = vmatmul.mubr.msk.f32.gmra.mxu0 %vm2444_vm11, %v2951_v1 }
 0xbf6   : > { %6678 = vmatprep.mubr.msk.f32.mxu0 %vm2444_vm11, %v2952_v4 }
 0xbf9   : > { %6679 = vmatmul.mubr.msk.f32.gmra.mxu0 %vm2444_vm11, %v2953_v59 }
 0xcad   : > { %v6671_v7 = vpop.f32.mrf.mxu0 }
 0xcae   : > { %3118 = vrot.lane.b32.xlu1 %v6671_v7, %s9112_s10 }
 0xcaf   : > { %v3069_v8 = vpop.f32.mrf.mxu0 }
 0xcb0   : > { %3116 = vrot.lane.b32.xlu0 %v3069_v8, %s9112_s10 }
 0xcb1   : > { %v6674_v9 = vpop.f32.mrf.mxu0 }
 0xcb2   : > { %3122 = vrot.lane.b32.xlu1 %v6674_v9, %s9112_s10 }
 0xcb3   : > { %v3079_v10 = vpop.f32.mrf.mxu0 }
 0xcb4   : > { %3120 = vrot.lane.b32.xlu0 %v3079_v10, %s9112_s10 }
 0xcb5   : > { %v6677_v12 = vpop.f32.mrf.mxu0 }
 0xcb6   : > { %3126 = vrot.lane.b32.xlu1 %v6677_v12, %s9112_s10 }
 0xcb7   : > { %v3089_v14 = vpop.f32.mrf.mxu0 }
 0xcb8   : > { %3124 = vrot.lane.b32.xlu0 %v3089_v14, %s9112_s10 }
 0xcb9   : > { %v6680_v15 = vpop.f32.mrf.mxu0 }
 0xcba   : > { %3130 = vrot.lane.b32.xlu1 %v6680_v15, %s9112_s10 }
 0xcbb   : > { %v3099_v16 = vpop.f32.mrf.mxu0 }
 0xcbc   : > { %3128 = vrot.lane.b32.xlu0 %v3099_v16, %s9112_s10 }
 0xd20   : > { %v3119_v18 = vpop.permute.xlu1 %3118 }
 0xd21   : > { %3142 = vst.msk [vmem:[#allocation4 + $0x8] sm:$0xff] %vm3140_vm14, %v3119_v18 }
 0xd22   : > { %v3117_v11 = vpop.permute.xlu0 %3116 }
 0xd23   : > { %3141 = vst.msk [vmem:[#allocation4] sm:$0xff] %vm3140_vm14, %v3117_v11 }
 0xd24   : > { %v3123_v35 = vpop.permute.xlu1 %3122 }
 0xd25   : > { %3144 = vst.msk [vmem:[#allocation4 + $0x18] sm:$0xff] %vm3140_vm14, %v3123_v35 }
 0xd26   : > { %v3121_v19 = vpop.permute.xlu0 %3120 }
 0xd27   : > { %3143 = vst.msk [vmem:[#allocation4 + $0x10] sm:$0xff] %vm3140_vm14, %v3121_v19 }
 0xd28   : > { %v3127_v5 = vpop.permute.xlu1 %3126  ;;  %v3151_v23 = vld [vmem:[#allocation4 + $0x8] sm:$0xff] }
 0xd29   : > { %3146 = vst.msk [vmem:[#allocation4 + $0x28] sm:$0xff] %vm3140_vm14, %v3127_v5 }
 0xd2a   : > { %v3125_v21 = vpop.permute.xlu0 %3124  ;;  %v3150_v22 = vld [vmem:[#allocation4] sm:$0xff] }
 0xd2b   : > { %3145 = vst.msk [vmem:[#allocation4 + $0x20] sm:$0xff] %vm3140_vm14, %v3125_v21  ;;  %6689 = vmatprep.mubr.msk.f32.mxu0 %vm1063_vm3, %v3150_v22 }
 0xd2c   : > { %6690 = vmatmul.mubr.msk.f32.vlgmr.msra.gmra.mxu0 %vm1063_vm3, %v3151_v23  ;;  %v3131_v25 = vpop.permute.xlu1 %3130  ;;  %v3153_v31 = vld [vmem:[#allocation4 + $0x18] sm:$0xff] }
 0xd2d   : > { %3149 = vst.msk [vmem:[#allocation4 + $0x38] sm:$0xf] %vm3148_vm15, %v3131_v25 }
 0xd2e   : > { %v3129_v26 = vpop.permute.xlu0 %3128  ;;  %v3152_v28 = vld [vmem:[#allocation4 + $0x10] sm:$0xff] }
 0xd2f   : > { %3147 = vst.msk [vmem:[#allocation4 + $0x30] sm:$0xff] %vm3140_vm14, %v3129_v26  ;;  %6692 = vmatprep.mubr.msk.f32.mxu0 %vm1063_vm3, %v3152_v28 }
 0xd30   : > { %6693 = vmatmul.mubr.msk.f32.gmra.mxu0 %vm1063_vm3, %v3153_v31  ;;  %v3155_v32 = vld [vmem:[#allocation4 + $0x28] sm:$0xff] }
 0xd32   : > { %v3154_v20 = vld [vmem:[#allocation4 + $0x20] sm:$0xff] }
 0xd33   : > { %6695 = vmatprep.mubr.msk.f32.mxu0 %vm1063_vm3, %v3154_v20 }
 0xd34   : > { %6696 = vmatmul.mubr.msk.f32.gmra.mxu0 %vm1063_vm3, %v3155_v32  ;;  %v3157_v36 = vld [vmem:[#allocation4 + $0x38] sm:$0xf] }
 0xd36   : > { %v3156_v38 = vld [vmem:[#allocation4 + $0x30] sm:$0xff] }
 0xd37   : > { %6698 = vmatprep.mubr.msk.f32.mxu0 %vm1063_vm3, %v3156_v38 }
 0xd38   : > { %6699 = vmatmul.mubr.msk.f32.gmra.mxu0 %vm1063_vm3, %v3157_v36 }
 0xdec   : > { %v6691_v24 = vpop.f32.mrf.mxu0 }
 0xded   : > { %v3265_v48 = vadd.f32 %v6691_v24, %v6007_v13 }
 0xdee   : > { %v3259_v51 = vpop.f32.mrf.mxu0 }
 0xdef   : > { %v3299_v33 = vadd.f32 %v3265_v48, %v7705_v43  ;;  %v3260_v34 = vadd.f32 %v6007_v13, %v3259_v51 }
 0xdf0   : > { %v6694_v53 = vpop.f32.mrf.mxu0 }
 0xdf1   : > { %v3275_v57 = vadd.f32 %v6694_v53, %v6007_v13  ;;  %v3311_v17 = vsel %vm1063_vm3, %v3299_v33, 0.0  ;;  %v3298_v49 = vadd.f32 %v3260_v34, %v7661_v45 }
 0xdf2   : > { %3312 = vadd.xlane.f32.xlu1 %v3311_v17  ;;  %v3269_v58 = vpop.f32.mrf.mxu0 }
 0xdf3   : > { %v3270_v41 = vadd.f32 %v6007_v13, %v3269_v58  ;;  %v3308_v0 = vsel %vm1063_vm3, %v3298_v49, 0.0  ;;  %v3301_v27 = vadd.f32 %v3275_v57, %v7719_v50  ;;  %v3443_v58 = vld [vmem:[%s9083_s20 + $0x18] sm:$0xff] }
 0xdf4   : > { %v6697_v3 = vpop.f32.mrf.mxu0  ;;  %3309 = vadd.xlane.f32.xlu0 %v3308_v0  ;;  %6701 = vmatprep.subr.mxu1 %v3443_v58  ;;  %v3441_v0 = vld [vmem:[%s9083_s20 + $0x8] sm:$0xff] }
 0xdf5   : > { %v3285_v46 = vadd.f32 %v6697_v3, %v6007_v13  ;;  %v3300_v43 = vadd.f32 %v3270_v41, %v7709_v47  ;;  %v3317_v30 = vsel %vm1063_vm3, %v3301_v27, 0.0  ;;  %6702 = vmatpush3.msra.mxu1 %v3443_v58  ;;  %v3442_v41 = vld [vmem:[%s9083_s20 + $0x10] sm:$0xff] }
 0xdf6   : > { %v3279_v2 = vpop.f32.mrf.mxu0  ;;  %6703 = vmatprep.subr.mxu1 %v3442_v41  ;;  %v3658_v58 = vld [vmem:[%s9085_s22 + $0x30] sm:$0xff] }
 0xdf7   : > { %v3303_v56 = vadd.f32 %v3285_v46, %v7732_v54  ;;  %v3280_v39 = vadd.f32 %v6007_v13, %v3279_v2  ;;  %v3314_v44 = vsel %vm1063_vm3, %v3300_v43, 0.0  ;;  %6704 = vmatpush3.msra.mxu1 %v3442_v41  ;;  %v3657_v41 = vld [vmem:[%s9085_s22 + $0x28] sm:$0xff] }
 0xdf8   : > { %v6700_v40 = vpop.f32.mrf.mxu0  ;;  %3318 = vadd.xlane.f32.xlu0 %v3317_v30  ;;  %6705 = vmatprep.subr.mxu1 %v3441_v0 }
 0xdf9   : > { %v3295_v45 = vadd.f32 %v6700_v40, %v6007_v13  ;;  %v3323_v42 = vsel %vm1063_vm3, %v3303_v56, 0.0  ;;  %v3302_v50 = vadd.f32 %v3280_v39, %v7723_v52  ;;  %6706 = vmatpush3.msra.mxu1 %v3441_v0  ;;  %v3656_v0 = vld [vmem:[%s9085_s22 + $0x20] sm:$0xff] }
 0xdfa   : > { %3324 = vadd.xlane.f32.xlu1 %v3323_v42  ;;  %v3289_v37 = vpop.f32.mrf.mxu0 }
 0xdfb   : > { %v3305_v1 = vadd.f32 %v3295_v45, %v7743_v62  ;;  %v3290_v4 = vadd.f32 %v6007_v13, %v3289_v37  ;;  %v3320_v59 = vsel %vm1063_vm3, %v3302_v50, 0.0 }
 0xdfc   : > { %3315 = vadd.xlane.f32.xlu0 %v3314_v44 }
 0xdfd   : > { %v3329_v47 = vsel %vm1997_vm10, %v3305_v1, 0.0  ;;  %v3304_v54 = vadd.f32 %v3290_v4, %v7735_v55 }
 0xdfe   : > { %3330 = vadd.xlane.f32.xlu1 %v3329_v47 }
 0xdff   : > { %v3326_v29 = vsel %vm1063_vm3, %v3304_v54, 0.0 }
 0xe00   : > { %3321 = vadd.xlane.f32.xlu0 %v3320_v59 }
 0xe04   : > { %3327 = vadd.xlane.f32.xlu0 %v3326_v29 }
 0xe7b   : > { %v3313_v61 = vpop.xlane.xlu1 %3312 }
 0xe7c   : > { %v3333_v6 = vmul.f32 0.03125, %v3313_v61 }
 0xe7d   : > { %v3310_v52 = vpop.xlane.xlu0 %3309 }
 0xe7e   : > { %v8122_v60 = vsub.f32 %v3299_v33, %v3333_v6  ;;  %v3332_v62 = vmul.f32 0.03125, %v3310_v52 }
 0xe80   : > { %v8124_v7 = vsub.f32 %v3298_v49, %v3332_v62  ;;  %v3349_v8 = vmul.f32 %v8122_v60, %v8122_v60 }
 0xe81   : > { %v3319_v9 = vpop.xlane.xlu0 %3318 }
 0xe82   : > { %v3335_v10 = vmul.f32 0.03125, %v3319_v9  ;;  %v3359_v55 = vsel %vm1063_vm3, %v3349_v8, 0.0  ;;  %v3348_v12 = vmul.f32 %v8124_v7, %v8124_v7  ;;  %v6016_v8 = vld [vmem:[%s9081_s18] ss:$0 sm:$0xff] }
 0xe83   : > { %v3325_v14 = vpop.xlane.xlu1 %3324  ;;  %3360 = vadd.xlane.f32.xlu1 %v3359_v55 }
 0xe84   : > { %v8131_v15 = vsub.f32 %v3301_v27, %v3335_v10  ;;  %v3337_v16 = vmul.f32 0.03125, %v3325_v14  ;;  %v3356_v18 = vsel %vm1063_vm3, %v3348_v12, 0.0  ;;  %v3440_v27 = vld [vmem:[%s9083_s20] sm:$0xff] }
 0xe85   : > { %3357 = vadd.xlane.f32.xlu0 %v3356_v18  ;;  %v3316_v11 = vpop.xlane.xlu0 %3315  ;;  %6707 = vmatprep.subr.mxu1 %v3440_v27  ;;  %v6017_v18 = vld [vmem:[%s9082_s19] ss:$0 sm:$0xff] }
 0xe86   : > { %v8134_v35 = vsub.f32 %v3303_v56, %v3337_v16  ;;  %v3334_v19 = vmul.f32 0.03125, %v3316_v11  ;;  %v3351_v5 = vmul.f32 %v8131_v15, %v8131_v15  ;;  %6708 = vmatpush3.msra.mxu1 %v3440_v27  ;;  %v3655_v27 = vld [vmem:[%s9085_s22 + $0x18] sm:$0xff] }
 0xe87   : > { %v3331_v21 = vpop.xlane.xlu1 %3330 }
 0xe88   : > { %v8138_v22 = vsub.f32 %v3300_v43, %v3334_v19  ;;  %v3339_v23 = vmul.f32 0.03125, %v3331_v21  ;;  %v3365_v25 = vsel %vm1063_vm3, %v3351_v5, 0.0  ;;  %v3353_v26 = vmul.f32 %v8134_v35, %v8134_v35 }
 0xe89   : > { %3366 = vadd.xlane.f32.xlu1 %v3365_v25  ;;  %v3322_v28 = vpop.xlane.xlu0 %3321 }
 0xe8a   : > { %v8143_v31 = vsub.f32 %v3305_v1, %v3339_v23  ;;  %v3336_v20 = vmul.f32 0.03125, %v3322_v28  ;;  %v3350_v32 = vmul.f32 %v8138_v22, %v8138_v22  ;;  %v3371_v36 = vsel %vm1063_vm3, %v3353_v26, 0.0 }
 0xe8c   : > { %v8147_v38 = vsub.f32 %v3302_v50, %v3336_v20  ;;  %v3362_v13 = vsel %vm1063_vm3, %v3350_v32, 0.0  ;;  %v3355_v24 = vmul.f32 %v8143_v31, %v8143_v31 }
 0xe8d   : > { %3372 = vadd.xlane.f32.xlu1 %v3371_v36  ;;  %3363 = vadd.xlane.f32.xlu0 %v3362_v13  ;;  %v3328_v48 = vpop.xlane.xlu0 %3327 }
 0xe8e   : > { %v3338_v51 = vmul.f32 0.03125, %v3328_v48  ;;  %v3352_v33 = vmul.f32 %v8147_v38, %v8147_v38  ;;  %v3377_v53 = vsel %vm1997_vm10, %v3355_v24, 0.0 }
 0xe90   : > { %v8155_v34 = vsub.f32 %v3304_v54, %v3338_v51  ;;  %v3368_v57 = vsel %vm1063_vm3, %v3352_v33, 0.0 }
 0xe91   : > { %3378 = vadd.xlane.f32.xlu1 %v3377_v53  ;;  %3369 = vadd.xlane.f32.xlu0 %v3368_v57 }
 0xe92   : > { %v3354_v17 = vmul.f32 %v8155_v34, %v8155_v34 }
 0xe94   : > { %v3374_v49 = vsel %vm1063_vm3, %v3354_v17, 0.0 }
 0xe95   : > { %3375 = vadd.xlane.f32.xlu0 %v3374_v49 }
 0xf0c   : > { %v3361_v3 = vpop.xlane.xlu1 %3360 }
 0xf0d   : > { %v3381_v46 = vmul.f32 0.03125, %v3361_v3  ;;  %v3654_v3 = vld [vmem:[%s9085_s22 + $0x10] sm:$0xff] }
 0xf0e   : > { %v3358_v2 = vpop.xlane.xlu0 %3357 }
 0xf0f   : > { %v3389_v43 = vadd.f32 1e-06, %v3381_v46  ;;  %v3380_v56 = vmul.f32 0.03125, %v3358_v2  ;;  %v3653_v46 = vld [vmem:[%s9085_s22 + $0x8] sm:$0xff]  ;;  %v3652_v2 = vld [vmem:[%s9085_s22] sm:$0xff] }
 0xf11   : > { %7089 = vrsqrt.f32 %v3389_v43  ;;  %v3388_v39 = vadd.f32 1e-06, %v3380_v56  ;;  %v6018_v43 = vld [vmem:[%s9084_s21] ss:$0 sm:$0xff] }
 0xf12   : > { %v3367_v30 = vpop.xlane.xlu1 %3366 }
 0xf13   : > { %7091 = vrsqrt.f32 %v3388_v39  ;;  %v3383_v40 = vmul.f32 0.03125, %v3367_v30 }
 0xf15   : > { %v3391_v45 = vadd.f32 1e-06, %v3383_v40 }
 0xf16   : > { %v3373_v42 = vpop.xlane.xlu1 %3372  ;;  %v3364_v37 = vpop.xlane.xlu0 %3363 }
 0xf17   : > { %7093 = vrsqrt.f32 %v3391_v45  ;;  %v3385_v50 = vmul.f32 0.03125, %v3373_v42  ;;  %v3382_v1 = vmul.f32 0.03125, %v3364_v37 }
 0xf19   : > { %v3393_v4 = vadd.f32 1e-06, %v3385_v50  ;;  %v3390_v44 = vadd.f32 1e-06, %v3382_v1 }
 0xf1a   : > { %v3379_v47 = vpop.xlane.xlu1 %3378  ;;  %v3370_v54 = vpop.xlane.xlu0 %3369 }
 0xf1b   : > { %7095 = vrsqrt.f32 %v3393_v4  ;;  %v3387_v59 = vmul.f32 0.03125, %v3379_v47  ;;  %v3384_v29 = vmul.f32 0.03125, %v3370_v54 }
 0xf1c   : > { %7097 = vrsqrt.f32 %v3390_v44 }
 0xf1d   : > { %v3395_v61 = vadd.f32 1e-06, %v3387_v59  ;;  %v3392_v6 = vadd.f32 1e-06, %v3384_v29 }
 0xf1e   : > { %v7090_v52 = vpop.eup %7089  ;;  %v3376_v62 = vpop.xlane.xlu0 %3375 }
 0xf1f   : > { %v3405_v9 = vmul.f32 %v7090_v52, %v8122_v60  ;;  %7099 = vrsqrt.f32 %v3395_v61  ;;  %v3386_v10 = vmul.f32 0.03125, %v3376_v62 }
 0xf20   : > { %v7092_v55 = vpop.eup %7091  ;;  %7101 = vrsqrt.f32 %v3392_v6 }
 0xf21   : > { %v3394_v12 = vadd.f32 1e-06, %v3386_v10  ;;  %v3404_v14 = vmul.f32 %v7092_v55, %v8124_v7  ;;  %v3419_v16 = vmul.f32 %v6016_v8, %v3405_v9 }
 0xf23   : > { %7103 = vrsqrt.f32 %v3394_v12  ;;  %v3418_v11 = vmul.f32 %v6016_v8, %v3404_v14  ;;  %v8184_v21 = vadd.f32 %v6017_v18, %v3419_v16 }
 0xf24   : > { %v7094_v19 = vpop.eup %7093 }
 0xf25   : > { %v8182_v5 = vadd.f32 %v6017_v18, %v3418_v11  ;;  %v3407_v60 = vmul.f32 %v7094_v19, %v8131_v15 }
 0xf27   : > { %6709 = vmatprep.mubr.msk.f32.mxu1 %vm1063_vm3, %v8182_v5  ;;  %v3421_v26 = vmul.f32 %v6016_v8, %v3407_v60 }
 0xf28   : > { %v7096_v23 = vpop.eup %7095  ;;  %6710 = vmatmul.mubr.msk.f32.vlgmr.msra.gmra.mxu1 %vm1063_vm3, %v8184_v21 }
 0xf29   : > { %v7098_v7 = vpop.eup %7097  ;;  %v3409_v28 = vmul.f32 %v7096_v23, %v8134_v35  ;;  %v8196_v48 = vadd.f32 %v6017_v18, %v3421_v26 }
 0xf2a   : > { %v3406_v25 = vmul.f32 %v7098_v7, %v8138_v22 }
 0xf2b   : > { %v3423_v15 = vmul.f32 %v6016_v8, %v3409_v28 }
 0xf2c   : > { %v7100_v20 = vpop.eup %7099  ;;  %v3420_v32 = vmul.f32 %v6016_v8, %v3406_v25 }
 0xf2d   : > { %v7102_v36 = vpop.eup %7101  ;;  %v3411_v51 = vmul.f32 %v7100_v20, %v8143_v31  ;;  %v8206_v57 = vadd.f32 %v6017_v18, %v3423_v15 }
 0xf2e   : > { %v8193_v13 = vadd.f32 %v6017_v18, %v3420_v32  ;;  %v3408_v24 = vmul.f32 %v7102_v36, %v8147_v38 }
 0xf2f   : > { %v3425_v17 = vmul.f32 %v6016_v8, %v3411_v51 }
 0xf30   : > { %v7104_v33 = vpop.eup %7103  ;;  %6712 = vmatprep.mubr.msk.f32.mxu1 %vm1063_vm3, %v8193_v13  ;;  %v3422_v22 = vmul.f32 %v6016_v8, %v3408_v24 }
 0xf31   : > { %6713 = vmatmul.mubr.msk.f32.gmra.mxu1 %vm1063_vm3, %v8196_v48  ;;  %v3410_v35 = vmul.f32 %v7104_v33, %v8155_v34  ;;  %v8216_v49 = vadd.f32 %v6017_v18, %v3425_v17  ;;  %v3659_v34 = vld [vmem:[%s9085_s22 + $0x38] sm:$0xff] }
 0xf32   : > { %v8204_v53 = vadd.f32 %v6017_v18, %v3422_v22  ;;  %6721 = vmatprep.subr.mxu0 %v3659_v34 }
 0xf33   : > { %v3424_v38 = vmul.f32 %v6016_v8, %v3410_v35  ;;  %6722 = vmatpush3.msra.mxu0 %v3659_v34 }
 0xf34   : > { %6715 = vmatprep.mubr.msk.f32.mxu1 %vm1063_vm3, %v8204_v53  ;;  %6723 = vmatprep.subr.mxu0 %v3658_v58 }
 0xf35   : > { %6716 = vmatmul.mubr.msk.f32.gmra.mxu1 %vm1063_vm3, %v8206_v57  ;;  %v8212_v31 = vadd.f32 %v6017_v18, %v3424_v38  ;;  %6724 = vmatpush3.msra.mxu0 %v3658_v58 }
 0xf36   : > { %6725 = vmatprep.subr.mxu0 %v3657_v41 }
 0xf37   : > { %6718 = vmatprep.mubr.msk.f32.mxu1 %vm1063_vm3, %v8212_v31  ;;  %6726 = vmatpush3.msra.mxu0 %v3657_v41 }
 0xf38   : > { %6727 = vmatprep.subr.mxu0 %v3656_v0 }
 0xf39   : > { %6719 = vmatmul.mubr.msk.f32.gmra.mxu1 %vm1063_vm3, %v8216_v49  ;;  %6728 = vmatpush3.msra.mxu0 %v3656_v0 }
 0xf3a   : > { %6729 = vmatprep.subr.mxu0 %v3655_v27 }
 0xf3b   : > { %6730 = vmatpush3.msra.mxu0 %v3655_v27 }
 0xf3c   : > { %6731 = vmatprep.subr.mxu0 %v3654_v3 }
 0xf3d   : > { %6732 = vmatpush3.msra.mxu0 %v3654_v3 }
 0xf3e   : > { %6733 = vmatprep.subr.mxu0 %v3653_v46 }
 0xf3f   : > { %6734 = vmatpush3.msra.mxu0 %v3653_v46 }
 0xf40   : > { %6735 = vmatprep.subr.mxu0 %v3652_v2 }
 0xf41   : > { %6736 = vmatpush3.msra.mxu0 %v3652_v2 }
 0xfe8   : > { %v6711_v56 = vpop.f32.mrf.mxu1 }
 0xfe9   : > { %v8247_v39 = vadd.f32 %v6711_v56, %v6018_v43 }
 0xfea   : > { %v3541_v30 = vpop.f32.mrf.mxu1 }
 0xfeb   : > { %v3589_v40 = vmul.f32 0.044715, %v8247_v39  ;;  %v3542_v45 = vadd.f32 %v6018_v43, %v3541_v30 }
 0xfed   : > { %v3597_v42 = vmul.f32 %v3589_v40, %v8247_v39  ;;  %v3588_v37 = vmul.f32 0.044715, %v3542_v45  ;;  %v3580_v40 = vmul.f32 0.5, %v3542_v45 }
 0xfef   : > { %v3605_v50 = vmul.f32 %v3597_v42, %v8247_v39  ;;  %v3596_v1 = vmul.f32 %v3588_v37, %v3542_v45 }
 0xff1   : > { %v3613_v4 = vadd.f32 %v3605_v50, %v8247_v39  ;;  %v3604_v44 = vmul.f32 %v3596_v1, %v3542_v45  ;;  %v6714_v47 = vpop.f32.mrf.mxu1  ;;  %v3581_v50 = vmul.f32 0.5, %v8247_v39 }
 0xff2   : > { %v8253_v54 = vadd.f32 %v6714_v47, %v6018_v43 }
 0xff3   : > { %v3621_v59 = vmul.f32 0.7978846, %v3613_v4  ;;  %v3612_v29 = vadd.f32 %v3604_v44, %v3542_v45  ;;  %v3551_v61 = vpop.f32.mrf.mxu1 }
 0xff4   : > { %v3591_v6 = vmul.f32 0.044715, %v8253_v54  ;;  %v3552_v52 = vadd.f32 %v6018_v43, %v3551_v61 }
 0xff5   : > { %7105 = vtanh.f32 %v3621_v59  ;;  %v6717_v62 = vpop.f32.mrf.mxu1  ;;  %v3620_v8 = vmul.f32 0.7978846, %v3612_v29 }
 0xff6   : > { %v3599_v9 = vmul.f32 %v3591_v6, %v8253_v54  ;;  %v3590_v10 = vmul.f32 0.044715, %v3552_v52  ;;  %v8257_v55 = vadd.f32 %v6717_v62, %v6018_v43  ;;  %v3582_v61 = vmul.f32 0.5, %v3552_v52 }
 0xff7   : > { %v3561_v12 = vpop.f32.mrf.mxu1  ;;  %7107 = vtanh.f32 %v3620_v8  ;;  %v3583_v62 = vmul.f32 0.5, %v8253_v54 }
 0xff8   : > { %v3607_v14 = vmul.f32 %v3599_v9, %v8253_v54  ;;  %v3598_v16 = vmul.f32 %v3590_v10, %v3552_v52  ;;  %v3593_v18 = vmul.f32 0.044715, %v8257_v55  ;;  %v3562_v11 = vadd.f32 %v6018_v43, %v3561_v12 }
 0xff9   : > { %v6720_v19 = vpop.f32.mrf.mxu1 }
 0xffa   : > { %v3615_v60 = vadd.f32 %v3607_v14, %v8253_v54  ;;  %v3606_v23 = vmul.f32 %v3598_v16, %v3552_v52  ;;  %v3601_v7 = vmul.f32 %v3593_v18, %v8257_v55  ;;  %v3592_v25 = vmul.f32 0.044715, %v3562_v11 }
 0xffb   : > { %v8263_v26 = vadd.f32 %v6720_v19, %v6018_v43  ;;  %v3571_v28 = vpop.f32.mrf.mxu1  ;;  %v3584_v12 = vmul.f32 0.5, %v3562_v11  ;;  %v3585_v16 = vmul.f32 0.5, %v8257_v55 }
 0xffc   : > { %v3614_v20 = vadd.f32 %v3606_v23, %v3552_v52  ;;  %v3609_v32 = vmul.f32 %v3601_v7, %v8257_v55  ;;  %v3600_v36 = vmul.f32 %v3592_v25, %v3562_v11  ;;  %v3572_v24 = vadd.f32 %v6018_v43, %v3571_v28 }
 0xffd   : > { %v3595_v15 = vmul.f32 0.044715, %v8263_v26  ;;  %v3623_v51 = vmul.f32 0.7978846, %v3615_v60  ;;  %v3587_v25 = vmul.f32 0.5, %v8263_v26 }
 0xffe   : > { %v3617_v33 = vadd.f32 %v3609_v32, %v8257_v55  ;;  %v3608_v22 = vmul.f32 %v3600_v36, %v3562_v11  ;;  %v3594_v35 = vmul.f32 0.044715, %v3572_v24  ;;  %v3622_v38 = vmul.f32 0.7978846, %v3614_v20  ;;  %v6027_v55 = vld [vmem:[%s9086_s23] ss:$0 sm:$0xff] }
 0xfff   : > { %v3603_v17 = vmul.f32 %v3595_v15, %v8263_v26  ;;  %7109 = vtanh.f32 %v3623_v51  ;;  %v3586_v54 = vmul.f32 0.5, %v3572_v24 }
0x1000   : > { %v3616_v34 = vadd.f32 %v3608_v22, %v3562_v11  ;;  %v3602_v58 = vmul.f32 %v3594_v35, %v3572_v24  ;;  %7111 = vtanh.f32 %v3622_v38  ;;  %v3625_v41 = vmul.f32 0.7978846, %v3617_v33 }
0x1001   : > { %v3611_v0 = vmul.f32 %v3603_v17, %v8263_v26 }
0x1002   : > { %v7106_v27 = vpop.eup %7105  ;;  %v3610_v3 = vmul.f32 %v3602_v58, %v3572_v24  ;;  %v3624_v46 = vmul.f32 0.7978846, %v3616_v34  ;;  %7113 = vtanh.f32 %v3625_v41 }
0x1003   : > { %v3619_v2 = vadd.f32 %v3611_v0, %v8263_v26  ;;  %v3637_v56 = vadd.f32 1.0, %v7106_v27 }
0x1004   : > { %v7108_v43 = vpop.eup %7107  ;;  %v3618_v30 = vadd.f32 %v3610_v3, %v3572_v24  ;;  %7115 = vtanh.f32 %v3624_v46 }
0x1005   : > { %v3636_v42 = vadd.f32 1.0, %v7108_v43  ;;  %v3627_v37 = vmul.f32 0.7978846, %v3619_v2  ;;  %v3645_v44 = vmul.f32 %v3637_v56, %v3581_v50 }
0x1006   : > { %v3626_v1 = vmul.f32 0.7978846, %v3618_v30 }
0x1007   : > { %v3644_v4 = vmul.f32 %v3636_v42, %v3580_v40  ;;  %7117 = vtanh.f32 %v3627_v37 }
0x1008   : > { %7119 = vtanh.f32 %v3626_v1 }
0x1009   : > { %6737 = vmatprep.mubr.msk.f32.mxu0 %vm3667_vm1, %v3644_v4 }
0x100a   : > { %6738 = vmatmul.mubr.msk.f32.vlgmr.msra.gmra.mxu0 %vm3667_vm1, %v3645_v44 }
0x100c   : > { %v7110_v47 = vpop.eup %7109 }
0x100d   : > { %v7112_v59 = vpop.eup %7111  ;;  %v3639_v29 = vadd.f32 1.0, %v7110_v47 }
0x100e   : > { %v3638_v6 = vadd.f32 1.0, %v7112_v59 }
0x100f   : > { %v7114_v45 = vpop.eup %7113  ;;  %v3647_v9 = vmul.f32 %v3639_v29, %v3583_v62 }
0x1010   : > { %v3646_v8 = vmul.f32 %v3638_v6, %v3582_v61  ;;  %v3641_v10 = vadd.f32 1.0, %v7114_v45 }
0x1011   : > { %v7116_v39 = vpop.eup %7115 }
0x1012   : > { %6740 = vmatprep.mubr.msk.f32.mxu0 %vm3667_vm1, %v3646_v8  ;;  %v3640_v14 = vadd.f32 1.0, %v7116_v39  ;;  %v3649_v52 = vmul.f32 %v3641_v10, %v3585_v16 }
0x1013   : > { %6741 = vmatmul.mubr.msk.f32.gmra.mxu0 %vm3667_vm1, %v3647_v9 }
0x1014   : > { %v7118_v18 = vpop.eup %7117  ;;  %v3648_v19 = vmul.f32 %v3640_v14, %v3584_v12 }
0x1015   : > { %v7120_v60 = vpop.eup %7119  ;;  %v3643_v23 = vadd.f32 1.0, %v7118_v18 }
0x1016   : > { %6743 = vmatprep.mubr.msk.f32.mxu0 %vm3667_vm1, %v3648_v19  ;;  %v3642_v7 = vadd.f32 1.0, %v7120_v60 }
0x1017   : > { %6744 = vmatmul.mubr.msk.f32.gmra.mxu0 %vm3667_vm1, %v3649_v52  ;;  %v3651_v11 = vmul.f32 %v3643_v23, %v3587_v25 }
0x1018   : > { %v3650_v28 = vmul.f32 %v3642_v7, %v3586_v54 }
0x101a   : > { %6746 = vmatprep.mubr.msk.f32.mxu0 %vm3667_vm1, %v3650_v28 }
0x101b   : > { %6747 = vmatmul.mubr.msk.f32.gmra.mxu0 %vm3667_vm1, %v3651_v11 }
0x10ca   : > { %v6739_v20 = vpop.f32.mrf.mxu0 }
0x10cb   : > { %v3764_v32 = vadd.f32 %v6739_v20, %v6027_v55 }
0x10cc   : > { %v3758_v36 = vpop.f32.mrf.mxu0 }
0x10cd   : > { %v3798_v24 = vadd.f32 %v3764_v32, %v8184_v21  ;;  %v3759_v15 = vadd.f32 %v6027_v55, %v3758_v36 }
0x10cf   : > { %v3797_v51 = vadd.f32 %v3759_v15, %v8182_v5  ;;  %v3810_v26 = vsel %vm1063_vm3, %v3798_v24, 0.0 }
0x10d0   : > { %3811 = vadd.xlane.f32.xlu1 %v3810_v26 }
0x10d1   : > { %v3807_v33 = vsel %vm1063_vm3, %v3797_v51, 0.0 }
0x10d2   : > { %3808 = vadd.xlane.f32.xlu0 %v3807_v33 }
0x10d3   : > { %v6742_v22 = vpop.f32.mrf.mxu0 }
0x10d4   : > { %v3774_v35 = vadd.f32 %v6742_v22, %v6027_v55 }
0x10d5   : > { %v3768_v38 = vpop.f32.mrf.mxu0 }
0x10d6   : > { %v3800_v17 = vadd.f32 %v3774_v35, %v8196_v48  ;;  %v3769_v34 = vadd.f32 %v6027_v55, %v3768_v38  ;;  %v6041_v35 = vld [vmem:[%s9078_s15 + $0x38] sm:$0xff]  ;;  %v6040_v38 = vld [vmem:[%s9078_s15 + $0x30] sm:$0xff] }
0x10d7   : > { %v6745_v58 = vpop.f32.mrf.mxu0  ;;  %6749 = vmatprep.subr.mxu1 %v6041_v35 }
0x10d8   : > { %v3799_v41 = vadd.f32 %v3769_v34, %v8193_v13  ;;  %v3784_v0 = vadd.f32 %v6745_v58, %v6027_v55  ;;  %v3816_v21 = vsel %vm1063_vm3, %v3800_v17, 0.0  ;;  %6750 = vmatpush3.msra.mxu1 %v6041_v35  ;;  %v6038_v34 = vld [vmem:[%s9078_s15 + $0x20] sm:$0xff] }
0x10d9   : > { %3817 = vadd.xlane.f32.xlu1 %v3816_v21  ;;  %v3778_v5 = vpop.f32.mrf.mxu0  ;;  %6751 = vmatprep.subr.mxu1 %v6040_v38 }
0x10da   : > { %v3802_v27 = vadd.f32 %v3784_v0, %v8206_v57  ;;  %v3779_v3 = vadd.f32 %v6027_v55, %v3778_v5  ;;  %v3813_v46 = vsel %vm1063_vm3, %v3799_v41, 0.0  ;;  %6752 = vmatpush3.msra.mxu1 %v6040_v38 }
0x10db   : > { %3814 = vadd.xlane.f32.xlu0 %v3813_v46  ;;  %v6748_v2 = vpop.f32.mrf.mxu0 }
0x10dc   : > { %v3801_v43 = vadd.f32 %v3779_v3, %v8204_v53  ;;  %v3794_v56 = vadd.f32 %v6748_v2, %v6027_v55  ;;  %v3822_v48 = vsel %vm1063_vm3, %v3802_v27, 0.0 }
0x10dd   : > { %3823 = vadd.xlane.f32.xlu1 %v3822_v48  ;;  %v3788_v30 = vpop.f32.mrf.mxu0 }
0x10de   : > { %v3804_v13 = vadd.f32 %v3794_v56, %v8216_v49  ;;  %v3789_v40 = vadd.f32 %v6027_v55, %v3788_v30  ;;  %v3819_v42 = vsel %vm1063_vm3, %v3801_v43, 0.0 }
0x10df   : > { %3820 = vadd.xlane.f32.xlu0 %v3819_v42 }
0x10e0   : > { %v3803_v57 = vadd.f32 %v3789_v40, %v8212_v31  ;;  %v3828_v37 = vsel %vm1997_vm10, %v3804_v13, 0.0 }
0x10e1   : > { %3829 = vadd.xlane.f32.xlu1 %v3828_v37 }
0x10e2   : > { %v3825_v50 = vsel %vm1063_vm3, %v3803_v57, 0.0 }
0x10e3   : > { %3826 = vadd.xlane.f32.xlu0 %v3825_v50 }
0x1159   : > { %v3812_v53 = vpop.xlane.xlu1 %3811 }
0x115a   : > { %v3832_v1 = vmul.f32 0.03125, %v3812_v53 }
0x115b   : > { %v3809_v4 = vpop.xlane.xlu0 %3808 }
0x115c   : > { %v8302_v44 = vsub.f32 %v3798_v24, %v3832_v1  ;;  %v3831_v47 = vmul.f32 0.03125, %v3809_v4  ;;  %v6036_v4 = vld [vmem:[%s9087_s24] ss:$0 sm:$0xff] }
0x115e   : > { %v8304_v59 = vsub.f32 %v3797_v51, %v3831_v47  ;;  %v3848_v49 = vmul.f32 %v8302_v44, %v8302_v44 }
0x1160   : > { %v3858_v29 = vsel %vm1063_vm3, %v3848_v49, 0.0  ;;  %v3847_v31 = vmul.f32 %v8304_v59, %v8304_v59 }
0x1161   : > { %3859 = vadd.xlane.f32.xlu1 %v3858_v29 }
0x1162   : > { %v3818_v61 = vpop.xlane.xlu1 %3817  ;;  %v3855_v6 = vsel %vm1063_vm3, %v3847_v31, 0.0 }
0x1163   : > { %v3834_v45 = vmul.f32 0.03125, %v3818_v61  ;;  %3856 = vadd.xlane.f32.xlu0 %v3855_v6 }
0x1164   : > { %v3815_v62 = vpop.xlane.xlu0 %3814 }
0x1165   : > { %v8312_v8 = vsub.f32 %v3800_v17, %v3834_v45  ;;  %v3833_v39 = vmul.f32 0.03125, %v3815_v62  ;;  %v6039_v17 = vld [vmem:[%s9078_s15 + $0x28] sm:$0xff] }
0x1166   : > { %v3824_v9 = vpop.xlane.xlu1 %3823  ;;  %6753 = vmatprep.subr.mxu1 %v6039_v17 }
0x1167   : > { %v8314_v10 = vsub.f32 %v3799_v41, %v3833_v39  ;;  %v3836_v12 = vmul.f32 0.03125, %v3824_v9  ;;  %v3850_v14 = vmul.f32 %v8312_v8, %v8312_v8  ;;  %6754 = vmatpush3.msra.mxu1 %v6039_v17  ;;  %v6037_v39 = vld [vmem:[%s9088_s25] ss:$0 sm:$0xff] }
0x1168   : > { %v3821_v16 = vpop.xlane.xlu0 %3820  ;;  %6755 = vmatprep.subr.mxu1 %v6038_v34 }
0x1169   : > { %v8318_v18 = vsub.f32 %v3802_v27, %v3836_v12  ;;  %v3835_v19 = vmul.f32 0.03125, %v3821_v16  ;;  %v3864_v60 = vsel %vm1063_vm3, %v3850_v14, 0.0  ;;  %v3849_v52 = vmul.f32 %v8314_v10, %v8314_v10  ;;  %6756 = vmatpush3.msra.mxu1 %v6038_v34 }
0x116a   : > { %3865 = vadd.xlane.f32.xlu1 %v3864_v60  ;;  %v3830_v23 = vpop.xlane.xlu1 %3829 }
0x116b   : > { %v8323_v54 = vsub.f32 %v3801_v43, %v3835_v19  ;;  %v3838_v7 = vmul.f32 0.03125, %v3830_v23  ;;  %v3861_v25 = vsel %vm1063_vm3, %v3849_v52, 0.0  ;;  %v3852_v28 = vmul.f32 %v8318_v18, %v8318_v18 }
0x116c   : > { %3862 = vadd.xlane.f32.xlu0 %v3861_v25  ;;  %v3827_v11 = vpop.xlane.xlu0 %3826 }
0x116d   : > { %v8328_v55 = vsub.f32 %v3804_v13, %v3838_v7  ;;  %v3837_v20 = vmul.f32 0.03125, %v3827_v11  ;;  %v3870_v32 = vsel %vm1063_vm3, %v3852_v28, 0.0  ;;  %v3851_v36 = vmul.f32 %v8323_v54, %v8323_v54 }
0x116e   : > { %3871 = vadd.xlane.f32.xlu1 %v3870_v32 }
0x116f   : > { %v8333_v24 = vsub.f32 %v3803_v57, %v3837_v20  ;;  %v3867_v15 = vsel %vm1063_vm3, %v3851_v36, 0.0  ;;  %v3854_v51 = vmul.f32 %v8328_v55, %v8328_v55 }
0x1170   : > { %3868 = vadd.xlane.f32.xlu0 %v3867_v15 }
0x1171   : > { %v3876_v26 = vsel %vm1997_vm10, %v3854_v51, 0.0  ;;  %v3853_v33 = vmul.f32 %v8333_v24, %v8333_v24 }
0x1172   : > { %3877 = vadd.xlane.f32.xlu1 %v3876_v26 }
0x1173   : > { %v3873_v22 = vsel %vm1063_vm3, %v3853_v33, 0.0 }
0x1174   : > { %3874 = vadd.xlane.f32.xlu0 %v3873_v22 }
0x11ea   : > { %v3860_v58 = vpop.xlane.xlu1 %3859 }
0x11eb   : > { %v3880_v41 = vmul.f32 0.03125, %v3860_v58 }
0x11ec   : > { %v3857_v0 = vpop.xlane.xlu0 %3856 }
0x11ed   : > { %v3888_v21 = vadd.f32 1e-06, %v3880_v41  ;;  %v3879_v5 = vmul.f32 0.03125, %v3857_v0 }
0x11ef   : > { %7121 = vrsqrt.f32 %v3888_v21  ;;  %v3887_v27 = vadd.f32 1e-06, %v3879_v5 }
0x11f1   : > { %7123 = vrsqrt.f32 %v3887_v27 }
0x11f3   : > { %v3866_v3 = vpop.xlane.xlu1 %3865 }
0x11f4   : > { %v3882_v46 = vmul.f32 0.03125, %v3866_v3 }
0x11f5   : > { %v3863_v2 = vpop.xlane.xlu0 %3862 }
0x11f6   : > { %v3890_v43 = vadd.f32 1e-06, %v3882_v46  ;;  %v3881_v56 = vmul.f32 0.03125, %v3863_v2 }
0x11f7   : > { %v3872_v48 = vpop.xlane.xlu1 %3871 }
0x11f8   : > { %7125 = vrsqrt.f32 %v3890_v43  ;;  %v3889_v30 = vadd.f32 1e-06, %v3881_v56  ;;  %v3884_v13 = vmul.f32 0.03125, %v3872_v48 }
0x11f9   : > { %v3869_v40 = vpop.xlane.xlu0 %3868 }
0x11fa   : > { %7127 = vrsqrt.f32 %v3889_v30  ;;  %v3892_v42 = vadd.f32 1e-06, %v3884_v13  ;;  %v3883_v57 = vmul.f32 0.03125, %v3869_v40 }
0x11fb   : > { %v3878_v37 = vpop.xlane.xlu1 %3877 }
0x11fc   : > { %v7122_v50 = vpop.eup %7121  ;;  %7129 = vrsqrt.f32 %v3892_v42  ;;  %v3891_v53 = vadd.f32 1e-06, %v3883_v57  ;;  %v3886_v1 = vmul.f32 0.03125, %v3878_v37 }
0x11fd   : > { %v3904_v47 = vmul.f32 %v7122_v50, %v8302_v44  ;;  %v3875_v49 = vpop.xlane.xlu0 %3874 }
0x11fe   : > { %v7124_v29 = vpop.eup %7123  ;;  %7131 = vrsqrt.f32 %v3891_v53  ;;  %v3894_v31 = vadd.f32 1e-06, %v3886_v1  ;;  %v3885_v61 = vmul.f32 0.03125, %v3875_v49 }
0x11ff   : > { %v3903_v6 = vmul.f32 %v7124_v29, %v8304_v59  ;;  %v3918_v45 = vmul.f32 %v6036_v4, %v3904_v47  ;;  %v8499_v29 = vld [vmem:[%s9139_s2] sm:$0xff] }
0x1200   : > { %7133 = vrsqrt.f32 %v3894_v31  ;;  %v3893_v62 = vadd.f32 1e-06, %v3885_v61 }
0x1201   : > { %v3917_v9 = vmul.f32 %v6036_v4, %v3903_v6  ;;  %v8364_v14 = vadd.f32 %v6037_v39, %v3918_v45  ;;  %v8506_v45 = vld [vmem:[%s9139_s2 + $0x18] sm:$0xff] }
0x1202   : > { %7135 = vrsqrt.f32 %v3893_v62 }
0x1203   : > { %v8362_v12 = vadd.f32 %v6037_v39, %v3917_v9 }
0x1205   : > { %v7126_v44 = vpop.eup %7125  ;;  %6757 = vmatprep.mubr.msk.f32.mxu1 %vm1063_vm3, %v8362_v12 }
0x1206   : > { %6758 = vmatmul.mubr.msk.f32.vlgmr.msra.gmra.mxu1 %vm1063_vm3, %v8364_v14  ;;  %v3906_v59 = vmul.f32 %v7126_v44, %v8312_v8 }
0x1207   : > { %v7128_v16 = vpop.eup %7127 }
0x1208   : > { %v3905_v19 = vmul.f32 %v7128_v16, %v8314_v10  ;;  %v3920_v52 = vmul.f32 %v6036_v4, %v3906_v59  ;;  %v8513_v59 = vld [vmem:[%s9139_s2 + $0x10] sm:$0xff] }
0x1209   : > { %v7130_v60 = vpop.eup %7129 }
0x120a   : > { %v3919_v23 = vmul.f32 %v6036_v4, %v3905_v19  ;;  %v3908_v7 = vmul.f32 %v7130_v60, %v8318_v18  ;;  %v8376_v32 = vadd.f32 %v6037_v39, %v3920_v52  ;;  %v8519_v19 = vld [vmem:[%s9139_s2 + $0x28] sm:$0xff] }
0x120b   : > { %v7132_v25 = vpop.eup %7131 }
0x120c   : > { %v8373_v28 = vadd.f32 %v6037_v39, %v3919_v23  ;;  %v3907_v11 = vmul.f32 %v7132_v25, %v8323_v54  ;;  %v3922_v36 = vmul.f32 %v6036_v4, %v3908_v7 }
0x120d   : > { %v7134_v20 = vpop.eup %7133 }
0x120e   : > { %6760 = vmatprep.mubr.msk.f32.mxu1 %vm1063_vm3, %v8373_v28  ;;  %v3921_v8 = vmul.f32 %v6036_v4, %v3907_v11  ;;  %v3910_v10 = vmul.f32 %v7134_v20, %v8328_v55  ;;  %v8386_v26 = vadd.f32 %v6037_v39, %v3922_v36  ;;  %v8527_v11 = vld [vmem:[%s9139_s2 + $0x20] sm:$0xff]  ;;  %v8533_v36 = vld [vmem:[%s9139_s2 + $0x38] sm:$0xf] }
0x120f   : > { %v7136_v15 = vpop.eup %7135  ;;  %6761 = vmatmul.mubr.msk.f32.gmra.mxu1 %vm1063_vm3, %v8376_v32 }
0x1210   : > { %v8383_v18 = vadd.f32 %v6037_v39, %v3921_v8  ;;  %v3909_v51 = vmul.f32 %v7136_v15, %v8333_v24  ;;  %v3924_v54 = vmul.f32 %v6036_v4, %v3910_v10 }
0x1212   : > { %6763 = vmatprep.mubr.msk.f32.mxu1 %vm1063_vm3, %v8383_v18  ;;  %v3923_v33 = vmul.f32 %v6036_v4, %v3909_v51  ;;  %v8394_v55 = vadd.f32 %v6037_v39, %v3924_v54  ;;  %v8493_v4 = vld [vmem:[%s9139_s2 + $0x8] sm:$0xff]  ;;  %v8541_v54 = vld [vmem:[%s9139_s2 + $0x30] sm:$0xff] }
0x1213   : > { %6764 = vmatmul.mubr.msk.f32.gmra.mxu1 %vm1063_vm3, %v8386_v26 }
0x1214   : > { %v8392_v22 = vadd.f32 %v6037_v39, %v3923_v33 }
0x1216   : > { %6766 = vmatprep.mubr.msk.f32.mxu1 %vm1063_vm3, %v8392_v22 }
0x1217   : > { %6767 = vmatmul.mubr.msk.f32.gmra.mxu1 %vm1063_vm3, %v8394_v55 }
0x12c6   : > { %v8400_v24 = vpop.f32.mrf.mxu1 }
0x12c8   : > { %v8402_v35 = vpop.f32.mrf.mxu1 }
0x12c9   : > { %6785 = vmatprep.mubr.msk.f32.mxu0 %vm1176_vm4, %v8402_v35 }
0x12cf   : > { %v8406_v38 = vpop.f32.mrf.mxu1 }
0x12d1   : > { %v8408_v17 = vpop.f32.mrf.mxu1 }
0x12d3   : > { %v8410_v34 = vpop.f32.mrf.mxu1 }
0x12d5   : > { %v8412_v58 = vpop.f32.mrf.mxu1 }
0x12d7   : > { %v8414_v41 = vpop.f32.mrf.mxu1 }
0x12d8   : > { %4095 = vrot.lane.b32.xlu0 %v8414_v41, %s9140_s1 }
0x12d9   : > { %v8418_v0 = vpop.f32.mrf.mxu1 }
0x12da   : > { %4093 = vrot.lane.b32.xlu1 %v8418_v0, %s9140_s1 }
0x12dc   : > { %4087 = vrot.lane.b32.xlu0 %v8406_v38, %s9140_s1 }
0x12de   : > { %4091 = vrot.lane.b32.xlu1 %v8410_v34, %s9140_s1 }
0x12e0   : > { %4083 = vrot.lane.b32.xlu0 %v8400_v24, %s9140_s1 }
0x12e2   : > { %4089 = vrot.lane.b32.xlu1 %v8412_v58, %s9140_s1 }
0x12e4   : > { %4336 = vrot.lane.b32.xlu0 %v8414_v41, %s9141_s0 }
0x12e6   : > { %4085 = vrot.lane.b32.xlu1 %v8408_v17, %s9140_s1 }
0x12e8   : > { %4328 = vrot.lane.b32.xlu0 %v8406_v38, %s9141_s0 }
0x12ea   : > { %4081 = vrot.lane.b32.xlu1 %v8402_v35, %s9140_s1 }
0x12ec   : > { %4324 = vrot.lane.b32.xlu0 %v8400_v24, %s9141_s0 }
0x12ee   : > { %4332 = vrot.lane.b32.xlu1 %v8410_v34, %s9141_s0 }
0x12f0   : > { %4514 = vrot.lane.b32.xlu0 %v8414_v41, %s9142_s3 }
0x12f2   : > { %4330 = vrot.lane.b32.xlu1 %v8412_v58, %s9141_s0 }
0x12f6   : > { %4326 = vrot.lane.b32.xlu1 %v8408_v17, %s9141_s0 }
0x12fa   : > { %4322 = vrot.lane.b32.xlu1 %v8402_v35, %s9141_s0 }
0x12fe   : > { %4334 = vrot.lane.b32.xlu1 %v8418_v0, %s9141_s0 }
0x1302   : > { %4512 = vrot.lane.b32.xlu1 %v8418_v0, %s9142_s3 }
0x134a   : > { %v4096_v21 = vpop.permute.xlu0 %4095 }
0x134b   : > { %6769 = vmatprep.subr.msk.mxu0 %vm1176_vm4, %v4096_v21 }
0x134c   : > { %6770 = vmatpush3.xpose.msk.msra.mxu0 %vm1176_vm4, %v4096_v21  ;;  %v4094_v5 = vpop.permute.xlu1 %4093 }
0x134d   : > { %6771 = vmatprep.subr.msk.mxu0 %vm1176_vm4, %v4094_v5 }
0x134e   : > { %v4088_v27 = vpop.permute.xlu0 %4087 }
0x1350   : > { %6772 = vmatpush3.xpose.msk.msra.mxu0 %vm1176_vm4, %v4094_v5  ;;  %v4092_v3 = vpop.permute.xlu1 %4091 }
0x1351   : > { %6773 = vmatprep.subr.msk.mxu0 %vm1176_vm4, %v4092_v3 }
0x1352   : > { %v4084_v46 = vpop.permute.xlu0 %4083 }
0x1354   : > { %6774 = vmatpush3.xpose.msk.msra.mxu0 %vm1176_vm4, %v4092_v3  ;;  %v4090_v2 = vpop.permute.xlu1 %4089 }
0x1355   : > { %6775 = vmatprep.subr.msk.mxu0 %vm1176_vm4, %v4090_v2 }
0x1356   : > { %v4337_v43 = vpop.permute.xlu0 %4336 }
0x1357   : > { %6797 = vmatprep.subr.msk.mxu1 %vm865_vm0, %v4337_v43 }
0x1358   : > { %6776 = vmatpush3.xpose.msk.msra.mxu0 %vm1176_vm4, %v4090_v2  ;;  %6798 = vmatpush3.msk.msra.mxu1 %vm865_vm0, %v4337_v43  ;;  %v4086_v56 = vpop.permute.xlu1 %4085 }
0x1359   : > { %6777 = vmatprep.subr.msk.mxu0 %vm1176_vm4, %v4088_v27 }
0x135a   : > { %v4329_v37 = vpop.permute.xlu0 %4328 }
0x135c   : > { %6778 = vmatpush3.xpose.msk.msra.mxu0 %vm1176_vm4, %v4088_v27  ;;  %v4082_v48 = vpop.permute.xlu1 %4081 }
0x135d   : > { %6779 = vmatprep.subr.msk.mxu0 %vm1176_vm4, %v4086_v56 }
0x135e   : > { %v4325_v50 = vpop.permute.xlu0 %4324 }
0x1360   : > { %6780 = vmatpush3.xpose.msk.msra.mxu0 %vm1176_vm4, %v4086_v56  ;;  %v4333_v30 = vpop.permute.xlu1 %4332 }
0x1361   : > { %6781 = vmatprep.subr.msk.mxu0 %vm1176_vm4, %v4084_v46 }
0x1362   : > { %v8486_v53 = vpop.permute.xlu0 %4514 }
0x1364   : > { %6782 = vmatpush3.xpose.msk.msra.mxu0 %vm1176_vm4, %v4084_v46  ;;  %v4331_v13 = vpop.permute.xlu1 %4330 }
0x1365   : > { %6783 = vmatprep.subr.msk.mxu0 %vm1176_vm4, %v4082_v48 }
0x1368   : > { %6784 = vmatpush3.xpose.msk.msra.mxu0 %vm1176_vm4, %v4082_v48  ;;  %v4327_v40 = vpop.permute.xlu1 %4326 }
0x136b   : > { %6786 = vmatmul.mubr.msk.f32.vlgmr.msra.gmra.mxu0 %vm1176_vm4, %v8400_v24 }
0x136c   : > { %6788 = vmatprep.mubr.msk.f32.mxu0 %vm1176_vm4, %v8408_v17  ;;  %v4323_v42 = vpop.permute.xlu1 %4322 }
0x136f   : > { %6789 = vmatmul.mubr.msk.f32.gmra.mxu0 %vm1176_vm4, %v8406_v38 }
0x1370   : > { %6791 = vmatprep.mubr.msk.f32.mxu0 %vm1176_vm4, %v8412_v58  ;;  %v4335_v57 = vpop.permute.xlu1 %4334 }
0x1371   : > { %6799 = vmatprep.subr.mxu1 %v4335_v57 }
0x1372   : > { %6800 = vmatpush3.msra.mxu1 %v4335_v57 }
0x1373   : > { %6792 = vmatmul.mubr.msk.f32.gmra.mxu0 %vm1176_vm4, %v8410_v34  ;;  %6801 = vmatprep.subr.mxu1 %v4333_v30 }
0x1374   : > { %6794 = vmatprep.mubr.msk.f32.mxu0 %vm1176_vm4, %v8418_v0  ;;  %6802 = vmatpush3.msra.mxu1 %v4333_v30  ;;  %v8550_v27 = vpop.permute.xlu1 %4512 }
0x1375   : > { %6803 = vmatprep.subr.mxu1 %v4331_v13 }
0x1376   : > { %6804 = vmatpush3.msra.mxu1 %v4331_v13 }
0x1377   : > { %6795 = vmatmul.mubr.msk.f32.gmra.mxu0 %vm1176_vm4, %v8414_v41  ;;  %6805 = vmatprep.subr.mxu1 %v4329_v37 }
0x1378   : > { %6806 = vmatpush3.msra.mxu1 %v4329_v37 }
0x1379   : > { %6807 = vmatprep.subr.mxu1 %v4327_v40 }
0x137a   : > { %6808 = vmatpush3.msra.mxu1 %v4327_v40 }
0x137b   : > { %6809 = vmatprep.subr.mxu1 %v4325_v50 }
0x137c   : > { %6810 = vmatpush3.msra.mxu1 %v4325_v50 }
0x137d   : > { %6811 = vmatprep.subr.mxu1 %v4323_v42 }
0x137e   : > { %6812 = vmatpush3.msra.mxu1 %v4323_v42 }
0x137f   : > { %6825 = vmatprep.subr.msk.mxu1 %vm1176_vm4, %v8486_v53 }
0x142b   : > { %v6787_v1 = vpop.f32.mrf.mxu0 }
0x142c   : > { %v4201_v47 = vadd.f32 %v8493_v4, %v6787_v1 }
0x142d   : > { %v4195_v49 = vpop.f32.mrf.mxu0 }
0x142e   : > { %v4196_v31 = vadd.f32 %v8499_v29, %v4195_v49  ;;  %v4237_v61 = vsel %vm2444_vm11, %v4201_v47, -inf }
0x142f   : > { %4238 = vmax.xlane.f32.xlu1 %v4237_v61  ;;  %v6790_v6 = vpop.f32.mrf.mxu0 }
0x1430   : > { %v4211_v62 = vadd.f32 %v8506_v45, %v6790_v6  ;;  %v4234_v39 = vsel %vm2444_vm11, %v4196_v31, -inf }
0x1431   : > { %v4205_v9 = vpop.f32.mrf.mxu0  ;;  %4235 = vmax.xlane.f32.xlu0 %v4234_v39 }
0x1432   : > { %v4206_v16 = vadd.f32 %v8513_v59, %v4205_v9  ;;  %v4243_v52 = vsel %vm2444_vm11, %v4211_v62, -inf }
0x1433   : > { %v6793_v44 = vpop.f32.mrf.mxu0 }
0x1434   : > { %v4221_v60 = vadd.f32 %v8519_v19, %v6793_v44  ;;  %v4240_v10 = vsel %vm2444_vm11, %v4206_v16, -inf }
0x1435   : > { %v4215_v23 = vpop.f32.mrf.mxu0  ;;  %4244 = vmax.xlane.f32.xlu0 %v4243_v52 }
0x1436   : > { %v4249_v7 = vsel %vm2444_vm11, %v4221_v60, -inf  ;;  %v4216_v20 = vadd.f32 %v8527_v11, %v4215_v23 }
0x1437   : > { %4250 = vmax.xlane.f32.xlu1 %v4249_v7  ;;  %v6796_v25 = vpop.f32.mrf.mxu0 }
0x1438   : > { %v4231_v8 = vadd.f32 %v8533_v36, %v6796_v25  ;;  %v4246_v21 = vsel %vm2444_vm11, %v4216_v20, -inf }
0x1439   : > { %v4225_v15 = vpop.f32.mrf.mxu0  ;;  %4241 = vmax.xlane.f32.xlu0 %v4240_v10 }
0x143a   : > { %v4255_v51 = vsel %vm2466_vm12, %v4231_v8, -inf  ;;  %v4226_v33 = vadd.f32 %v8541_v54, %v4225_v15 }
0x143b   : > { %4256 = vmax.xlane.f32.xlu1 %v4255_v51 }
0x143c   : > { %v4252_v5 = vsel %vm2444_vm11, %v4226_v33, -inf }
0x143d   : > { %4247 = vmax.xlane.f32.xlu0 %v4246_v21 }
0x1441   : > { %4253 = vmax.xlane.f32.xlu0 %v4252_v5 }
0x144c   : > { %4508 = vrot.lane.b32.xlu1 %v8412_v58, %s9142_s3 }
0x1457   : > { %4510 = vrot.lane.b32.xlu0 %v8410_v34, %s9142_s3 }
0x14b8   : > { %v4239_v3 = vpop.xlane.xlu1 %4238 }
0x14b9   : > { %v4259_v46 = vsub.f32 %v4201_v47, %v4239_v3 }
0x14ba   : > { %v4236_v2 = vpop.xlane.xlu0 %4235 }
0x14bb   : > { %v4268_v43 = vmul.f32 1.442695, %v4259_v46  ;;  %v4258_v56 = vsub.f32 %v4196_v31, %v4236_v2 }
0x14bd   : > { %7137 = vpow2.f32 %v4268_v43  ;;  %v4266_v48 = vmul.f32 1.442695, %v4258_v56 }
0x14be   : > { %v4245_v57 = vpop.xlane.xlu0 %4244 }
0x14bf   : > { %7139 = vpow2.f32 %v4266_v48  ;;  %v4261_v1 = vsub.f32 %v4211_v62, %v4245_v57 }
0x14c0   : > { %v4251_v50 = vpop.xlane.xlu1 %4250 }
0x14c1   : > { %v4272_v31 = vmul.f32 1.442695, %v4261_v1  ;;  %v4263_v61 = vsub.f32 %v4221_v60, %v4251_v50 }
0x14c2   : > { %v4242_v37 = vpop.xlane.xlu0 %4241 }
0x14c3   : > { %v4260_v49 = vsub.f32 %v4206_v16, %v4242_v37  ;;  %7141 = vpow2.f32 %v4272_v31  ;;  %v4276_v52 = vmul.f32 1.442695, %v4263_v61 }
0x14c4   : > { %v4257_v6 = vpop.xlane.xlu1 %4256 }
0x14c5   : > { %v4270_v39 = vmul.f32 1.442695, %v4260_v49  ;;  %v4265_v23 = vsub.f32 %v4231_v8, %v4257_v6 }
0x14c6   : > { %v4248_v47 = vpop.xlane.xlu0 %4247 }
0x14c7   : > { %v4262_v9 = vsub.f32 %v4216_v20, %v4248_v47  ;;  %7143 = vpow2.f32 %v4270_v39  ;;  %v4280_v10 = vmul.f32 1.442695, %v4265_v23 }
0x14c8   : > { %7145 = vpow2.f32 %v4276_v52  ;;  %v4509_v43 = vpop.permute.xlu1 %4508 }
0x14c9   : > { %v4274_v7 = vmul.f32 1.442695, %v4262_v9 }
0x14ca   : > { %v8552_v30 = vpop.eup %7137  ;;  %v4254_v44 = vpop.xlane.xlu0 %4253 }
0x14cb   : > { %v4285_v13 = vsel %vm2444_vm11, %v8552_v30, 0.0  ;;  %v4264_v25 = vsub.f32 %v4226_v33, %v4254_v44  ;;  %7147 = vpow2.f32 %v4274_v7 }
0x14cc   : > { %v8556_v40 = vpop.eup %7139  ;;  %4286 = vadd.xlane.f32.xlu1 %v4285_v13  ;;  %7149 = vpow2.f32 %v4280_v10 }
0x14cd   : > { %v4282_v42 = vsel %vm2444_vm11, %v8556_v40, 0.0  ;;  %v4278_v15 = vmul.f32 1.442695, %v4264_v25 }
0x14ce   : > { %4283 = vadd.xlane.f32.xlu0 %v4282_v42  ;;  %v4511_v56 = vpop.permute.xlu0 %4510 }
0x14cf   : > { %7151 = vpow2.f32 %v4278_v15 }
0x14d0   : > { %v8564_v62 = vpop.eup %7141 }
0x14d1   : > { %v4291_v60 = vsel %vm2444_vm11, %v8564_v62, 0.0 }
0x14d4   : > { %v8566_v16 = vpop.eup %7143 }
0x14d5   : > { %v8570_v20 = vpop.eup %7145  ;;  %v4288_v8 = vsel %vm2444_vm11, %v8566_v16, 0.0 }
0x14d6   : > { %v4297_v33 = vsel %vm2444_vm11, %v8570_v20, 0.0 }
0x14d8   : > { %v8574_v51 = vpop.eup %7147 }
0x14d9   : > { %v8578_v21 = vpop.eup %7149  ;;  %v4294_v5 = vsel %vm2444_vm11, %v8574_v51, 0.0 }
0x14da   : > { %v4303_v46 = vsel %vm2466_vm12, %v8578_v21, 0.0 }
0x14dc   : > { %v8582_v3 = vpop.eup %7151 }
0x14dd   : > { %4504 = vrot.lane.b32.xlu1 %v8408_v17, %s9142_s3  ;;  %v4300_v2 = vsel %vm2444_vm11, %v8582_v3, 0.0 }
0x14e4   : > { %4506 = vrot.lane.b32.xlu0 %v8406_v38, %s9142_s3 }
0x1501   : > { %4292 = vadd.xlane.f32.xlu1 %v4291_v60 }
0x1503   : > { %4289 = vadd.xlane.f32.xlu0 %v4288_v8 }
0x1505   : > { %4298 = vadd.xlane.f32.xlu1 %v4297_v33 }
0x1507   : > { %4295 = vadd.xlane.f32.xlu0 %v4294_v5 }
0x1509   : > { %4304 = vadd.xlane.f32.xlu1 %v4303_v46 }
0x150b   : > { %4301 = vadd.xlane.f32.xlu0 %v4300_v2 }
0x151a   : > { %4500 = vrot.lane.b32.xlu1 %v8402_v35, %s9142_s3 }
0x151e   : > { %4486 = vrot.lane.b32.xlu1 %v8400_v24, %s9143_s5 }
0x1521   : > { %4502 = vrot.lane.b32.xlu0 %v8400_v24, %s9142_s3  ;;  %s9144_s3 = smov 48  }
0x1522   : > { %4490 = vrot.lane.b32.xlu1 %v8406_v38, %s9143_s5 }
0x1525   : > { %4484 = vrot.lane.b32.xlu0 %v8402_v35, %s9143_s5 }
0x1526   : > { %4494 = vrot.lane.b32.xlu1 %v8410_v34, %s9143_s5 }
0x1529   : > { %4488 = vrot.lane.b32.xlu0 %v8408_v17, %s9143_s5 }
0x152a   : > { %4498 = vrot.lane.b32.xlu1 %v8414_v41, %s9143_s5 }
0x152d   : > { %4492 = vrot.lane.b32.xlu0 %v8412_v58, %s9143_s5 }
0x1531   : > { %4496 = vrot.lane.b32.xlu0 %v8418_v0, %s9143_s5 }
0x1555   : > { %v4287_v48 = vpop.xlane.xlu1 %4286 }
0x1556   : > { %7153 = vrcp.f32 %v4287_v48 }
0x1557   : > { %v4284_v13 = vpop.xlane.xlu0 %4283 }
0x1558   : > { %7155 = vrcp.f32 %v4284_v13 }
0x1563   : > { %v7154_v42 = vpop.eup %7153 }
0x1564   : > { %v4315_v50 = vmul.f32 %v7154_v42, %v8552_v30  ;;  %v4507_v30 = vpop.permute.xlu0 %4506 }
0x1565   : > { %v7156_v57 = vpop.eup %7155 }
0x1566   : > { %v4314_v37 = vmul.f32 %v7156_v57, %v8556_v40  ;;  %v4505_v40 = vpop.permute.xlu1 %4504 }
0x1568   : > { %6813 = vmatprep.mubr.msk.f32.mxu1 %vm2444_vm11, %v4314_v37 }
0x1569   : > { %6814 = vmatmul.mubr.msk.f32.vlgmr.msra.gmra.mxu1 %vm2444_vm11, %v4315_v50 }
0x156a   : > { %6826 = vmatpush3.xpose.msk.msra.mxu1 %vm1176_vm4, %v8486_v53 }
0x156b   : > { %6827 = vmatprep.subr.msk.mxu1 %vm1176_vm4, %v8550_v27 }
0x156e   : > { %6828 = vmatpush3.xpose.msk.msra.mxu1 %vm1176_vm4, %v8550_v27 }
0x156f   : > { %6829 = vmatprep.subr.msk.mxu1 %vm1176_vm4, %v4511_v56 }
0x1572   : > { %6830 = vmatpush3.xpose.msk.msra.mxu1 %vm1176_vm4, %v4511_v56 }
0x1573   : > { %6831 = vmatprep.subr.msk.mxu1 %vm1176_vm4, %v4509_v43 }
0x1576   : > { %6832 = vmatpush3.xpose.msk.msra.mxu1 %vm1176_vm4, %v4509_v43 }
0x1577   : > { %6833 = vmatprep.subr.msk.mxu1 %vm1176_vm4, %v4507_v30 }
0x157a   : > { %6834 = vmatpush3.xpose.msk.msra.mxu1 %vm1176_vm4, %v4507_v30 }
0x157b   : > { %6835 = vmatprep.subr.msk.mxu1 %vm1176_vm4, %v4505_v40 }
0x157e   : > { %6836 = vmatpush3.xpose.msk.msra.mxu1 %vm1176_vm4, %v4505_v40 }
0x158a   : > { %v4293_v53 = vpop.xlane.xlu1 %4292 }
0x158b   : > { %7157 = vrcp.f32 %v4293_v53 }
0x158c   : > { %v4290_v27 = vpop.xlane.xlu0 %4289 }
0x158d   : > { %7159 = vrcp.f32 %v4290_v27 }
0x158e   : > { %v4299_v1 = vpop.xlane.xlu1 %4298 }
0x158f   : > { %7161 = vrcp.f32 %v4299_v1 }
0x1590   : > { %v4296_v47 = vpop.xlane.xlu0 %4295 }
0x1591   : > { %7163 = vrcp.f32 %v4296_v47 }
0x1592   : > { %v4305_v49 = vpop.xlane.xlu1 %4304 }
0x1593   : > { %7165 = vrcp.f32 %v4305_v49 }
0x1594   : > { %v4302_v31 = vpop.xlane.xlu0 %4301 }
0x1595   : > { %7167 = vrcp.f32 %v4302_v31 }
0x1596   : > { %v4501_v9 = vpop.permute.xlu1 %4500 }
0x1598   : > { %v4503_v61 = vpop.permute.xlu0 %4502  ;;  %v7158_v6 = vpop.eup %7157 }
0x1599   : > { %6837 = vmatprep.subr.msk.mxu1 %vm1176_vm4, %v4503_v61  ;;  %v4317_v52 = vmul.f32 %v7158_v6, %v8564_v62 }
0x159a   : > { %v7160_v39 = vpop.eup %7159  ;;  %6838 = vmatpush3.xpose.msk.msra.mxu1 %vm1176_vm4, %v4503_v61  ;;  %v4487_v62 = vpop.permute.xlu1 %4486 }
0x159b   : > { %6839 = vmatprep.subr.msk.mxu1 %vm1176_vm4, %v4501_v9  ;;  %v4316_v44 = vmul.f32 %v7160_v39, %v8566_v16 }
0x159c   : > { %v7162_v23 = vpop.eup %7161  ;;  %v4485_v10 = vpop.permute.xlu0 %4484 }
0x159d   : > { %6816 = vmatprep.mubr.msk.f32.mxu1 %vm2444_vm11, %v4316_v44  ;;  %v4319_v15 = vmul.f32 %v7162_v23, %v8570_v20 }
0x159e   : > { %v7164_v7 = vpop.eup %7163  ;;  %6817 = vmatmul.mubr.msk.f32.gmra.mxu1 %vm2444_vm11, %v4317_v52 }
0x159f   : > { %6840 = vmatpush3.xpose.msk.msra.mxu1 %vm1176_vm4, %v4501_v9  ;;  %v4318_v25 = vmul.f32 %v7164_v7, %v8574_v51  ;;  %v4491_v51 = vpop.permute.xlu1 %4490 }
0x15a0   : > { %v7166_v60 = vpop.eup %7165  ;;  %v4489_v5 = vpop.permute.xlu0 %4488 }
0x15a1   : > { %6819 = vmatprep.mubr.msk.f32.mxu1 %vm2444_vm11, %v4318_v25  ;;  %v4321_v33 = vmul.f32 %v7166_v60, %v8578_v21 }
0x15a2   : > { %v7168_v8 = vpop.eup %7167  ;;  %6820 = vmatmul.mubr.msk.f32.gmra.mxu1 %vm2444_vm11, %v4319_v15 }
0x15a3   : > { %v4320_v16 = vmul.f32 %v7168_v8, %v8582_v3  ;;  %v4495_v46 = vpop.permute.xlu1 %4494 }
0x15a4   : > { %v4493_v20 = vpop.permute.xlu0 %4492 }
0x15a5   : > { %6822 = vmatprep.mubr.msk.f32.mxu1 %vm2444_vm11, %v4320_v16 }
0x15a6   : > { %6823 = vmatmul.mubr.msk.f32.gmra.mxu1 %vm2444_vm11, %v4321_v33 }
0x15a7   : > { %6841 = vmatprep.mubr.msk.f32.mxu1 %vm1176_vm4, %v4485_v10  ;;  %v4499_v21 = vpop.permute.xlu1 %4498 }
0x15a8   : > { %v4497_v3 = vpop.permute.xlu0 %4496 }
0x15aa   : > { %6842 = vmatmul.mubr.msk.f32.vlgmr.msra.gmra.mxu1 %vm1176_vm4, %v4487_v62 }
0x15ab   : > { %6844 = vmatprep.mubr.msk.f32.mxu1 %vm1176_vm4, %v4489_v5 }
0x15ae   : > { %6845 = vmatmul.mubr.msk.f32.gmra.mxu1 %vm1176_vm4, %v4491_v51 }
0x15af   : > { %6847 = vmatprep.mubr.msk.f32.mxu1 %vm1176_vm4, %v4493_v20 }
0x15b2   : > { %6848 = vmatmul.mubr.msk.f32.gmra.mxu1 %vm1176_vm4, %v4495_v46 }
0x15b3   : > { %6850 = vmatprep.mubr.msk.f32.mxu1 %vm1176_vm4, %v4497_v3 }
0x15b6   : > { %6851 = vmatmul.mubr.msk.f32.gmra.mxu1 %vm1176_vm4, %v4499_v21 }
0x1629   : > { %v6815_v2 = vpop.f32.mrf.mxu1 }
0x162a   : > { %4477 = vst.msk [vmem:[#allocation4 + $0x8] sm:$0xff] %vm1176_vm4, %v6815_v2 }
0x162b   : > { %v4437_v43 = vpop.f32.mrf.mxu1 }
0x162c   : > { %4476 = vst.msk [vmem:[#allocation4] sm:$0xff] %vm1176_vm4, %v4437_v43 }
0x165e   : > { %v6818_v56 = vpop.f32.mrf.mxu1 }
0x165f   : > { %4479 = vst.msk [vmem:[#allocation4 + $0x18] sm:$0xff] %vm1176_vm4, %v6818_v56 }
0x1660   : > { %v4447_v48 = vpop.f32.mrf.mxu1 }
0x1661   : > { %4478 = vst.msk [vmem:[#allocation4 + $0x10] sm:$0xff] %vm1176_vm4, %v4447_v48 }
0x1662   : > { %v6821_v13 = vpop.f32.mrf.mxu1 }
0x1663   : > { %4481 = vst.msk [vmem:[#allocation4 + $0x28] sm:$0xff] %vm1176_vm4, %v6821_v13 }
0x1664   : > { %v4457_v42 = vpop.f32.mrf.mxu1 }
0x1665   : > { %4480 = vst.msk [vmem:[#allocation4 + $0x20] sm:$0xff] %vm1176_vm4, %v4457_v42 }
0x1666   : > { %v6824_v57 = vpop.f32.mrf.mxu1 }
0x1667   : > { %4483 = vst.msk [vmem:[#allocation4 + $0x38] sm:$0xf] %vm2695_vm13, %v6824_v57 }
0x1668   : > { %v4467_v37 = vpop.f32.mrf.mxu1 }
0x1669   : > { %4482 = vst.msk [vmem:[#allocation4 + $0x30] sm:$0xff] %vm1176_vm4, %v4467_v37  ;;  %vm5725_vm4 = vcmask 785927  }
0x166a   : > { %v6843_v50 = vpop.f32.mrf.mxu1 }
0x166b   : > { %v4620_v30 = vadd.f32 %v8493_v4, %v6843_v50 }
0x166c   : > { %v4614_v40 = vpop.f32.mrf.mxu1 }
0x166d   : > { %v4615_v53 = vadd.f32 %v8499_v29, %v4614_v40  ;;  %v4656_v27 = vsel %vm2444_vm11, %v4620_v30, -inf }
0x166e   : > { %4657 = vmax.xlane.f32.xlu1 %v4656_v27  ;;  %v6846_v1 = vpop.f32.mrf.mxu1 }
0x166f   : > { %v4630_v47 = vadd.f32 %v8506_v45, %v6846_v1  ;;  %v4653_v49 = vsel %vm2444_vm11, %v4615_v53, -inf }
0x1670   : > { %4654 = vmax.xlane.f32.xlu0 %v4653_v49  ;;  %v4624_v31 = vpop.f32.mrf.mxu1 }
0x1671   : > { %v4625_v6 = vadd.f32 %v8513_v59, %v4624_v31  ;;  %v4662_v4 = vsel %vm2444_vm11, %v4630_v47, -inf }
0x1672   : > { %v6849_v61 = vpop.f32.mrf.mxu1 }
0x1673   : > { %v4640_v39 = vadd.f32 %v8519_v19, %v6849_v61  ;;  %v4659_v23 = vsel %vm2444_vm11, %v4625_v6, -inf }
0x1674   : > { %4663 = vmax.xlane.f32.xlu0 %v4662_v4  ;;  %v4634_v9 = vpop.f32.mrf.mxu1 }
0x1675   : > { %v4668_v29 = vsel %vm2444_vm11, %v4640_v39, -inf  ;;  %v4635_v52 = vadd.f32 %v8527_v11, %v4634_v9 }
0x1676   : > { %4669 = vmax.xlane.f32.xlu1 %v4668_v29  ;;  %v6852_v44 = vpop.f32.mrf.mxu1 }
0x1677   : > { %v4650_v45 = vadd.f32 %v8533_v36, %v6852_v44  ;;  %v4665_v25 = vsel %vm2444_vm11, %v4635_v52, -inf }
0x1678   : > { %4660 = vmax.xlane.f32.xlu0 %v4659_v23  ;;  %v4644_v7 = vpop.f32.mrf.mxu1 }
0x1679   : > { %v4674_v59 = vsel %vm2466_vm12, %v4650_v45, -inf  ;;  %v4645_v19 = vadd.f32 %v8541_v54, %v4644_v7 }
0x167a   : > { %4675 = vmax.xlane.f32.xlu1 %v4674_v59 }
0x167b   : > { %v4671_v10 = vsel %vm2444_vm11, %v4645_v19, -inf }
0x167c   : > { %4666 = vmax.xlane.f32.xlu0 %v4665_v25 }
0x1680   : > { %4672 = vmax.xlane.f32.xlu0 %v4671_v10 }
0x168b   : > { %4753 = vrot.lane.b32.xlu1 %v8418_v0, %s9144_s3 }
0x168f   : > { %4751 = vrot.lane.b32.xlu1 %v8410_v34, %s9144_s3 }
0x1693   : > { %4749 = vrot.lane.b32.xlu1 %v8412_v58, %s9144_s3 }
0x1696   : > { %4755 = vrot.lane.b32.xlu0 %v8414_v41, %s9144_s3 }
0x1697   : > { %4745 = vrot.lane.b32.xlu1 %v8408_v17, %s9144_s3 }
0x169a   : > { %4747 = vrot.lane.b32.xlu0 %v8406_v38, %s9144_s3 }
0x16f7   : > { %v4658_v11 = vpop.xlane.xlu1 %4657 }
0x16f8   : > { %v4678_v36 = vsub.f32 %v4620_v30, %v4658_v11 }
0x16f9   : > { %v4655_v54 = vpop.xlane.xlu0 %4654 }
0x16fa   : > { %v4687_v15 = vmul.f32 1.442695, %v4678_v36  ;;  %v4677_v0 = vsub.f32 %v4615_v53, %v4655_v54 }
0x16fc   : > { %7169 = vpow2.f32 %v4687_v15  ;;  %v4685_v60 = vmul.f32 1.442695, %v4677_v0 }
0x16fd   : > { %v4664_v34 = vpop.xlane.xlu0 %4663 }
0x16fe   : > { %7171 = vpow2.f32 %v4685_v60  ;;  %v4680_v8 = vsub.f32 %v4630_v47, %v4664_v34 }
0x16ff   : > { %v4670_v58 = vpop.xlane.xlu1 %4669 }
0x1700   : > { %v4691_v62 = vmul.f32 1.442695, %v4680_v8  ;;  %v4682_v16 = vsub.f32 %v4640_v39, %v4670_v58 }
0x1701   : > { %v4661_v41 = vpop.xlane.xlu0 %4660 }
0x1702   : > { %7173 = vpow2.f32 %v4691_v62  ;;  %v4695_v33 = vmul.f32 1.442695, %v4682_v16  ;;  %v4679_v17 = vsub.f32 %v4625_v6, %v4661_v41 }
0x1703   : > { %v4676_v5 = vpop.xlane.xlu1 %4675 }
0x1704   : > { %7175 = vpow2.f32 %v4695_v33  ;;  %v4689_v38 = vmul.f32 1.442695, %v4679_v17  ;;  %v4684_v51 = vsub.f32 %v4650_v45, %v4676_v5 }
0x1705   : > { %v4667_v20 = vpop.xlane.xlu0 %4666 }
0x1706   : > { %7177 = vpow2.f32 %v4689_v38  ;;  %v4699_v46 = vmul.f32 1.442695, %v4684_v51  ;;  %v4681_v3 = vsub.f32 %v4635_v52, %v4667_v20  ;;  %v6103_v20 = vld [vmem:[%s9079_s16 + $0x38] sm:$0xff] }
0x1707   : > { %v4754_v21 = vpop.permute.xlu1 %4753 }
0x1708   : > { %v4693_v2 = vmul.f32 1.442695, %v4681_v3  ;;  %7179 = vpow2.f32 %v4699_v46  ;;  %v6102_v46 = vld [vmem:[%s9079_s16 + $0x30] sm:$0xff]  ;;  %v6101_v3 = vld [vmem:[%s9079_s16 + $0x28] sm:$0xff] }
0x1709   : > { %v8686_v43 = vpop.eup %7169  ;;  %v4673_v56 = vpop.xlane.xlu0 %4672 }
0x170a   : > { %7181 = vpow2.f32 %v4693_v2  ;;  %v4683_v48 = vsub.f32 %v4645_v19, %v4673_v56  ;;  %v4704_v13 = vsel %vm2444_vm11, %v8686_v43, 0.0 }
0x170b   : > { %v7172_v42 = vpop.eup %7171  ;;  %4705 = vadd.xlane.f32.xlu1 %v4704_v13  ;;  %v4752_v37 = vpop.permute.xlu1 %4751 }
0x170c   : > { %v4697_v57 = vmul.f32 1.442695, %v4683_v48  ;;  %v4701_v50 = vsel %vm2444_vm11, %v7172_v42, 0.0 }
0x170d   : > { %4702 = vadd.xlane.f32.xlu0 %v4701_v50  ;;  %v4756_v30 = vpop.permute.xlu0 %4755 }
0x170e   : > { %7183 = vpow2.f32 %v4697_v57  ;;  %6853 = vmatprep.subr.msk.mxu0 %vm865_vm0, %v4756_v30 }
0x170f   : > { %v8692_v40 = vpop.eup %7173  ;;  %6854 = vmatpush3.msk.msra.mxu0 %vm865_vm0, %v4756_v30  ;;  %v4750_v1 = vpop.permute.xlu1 %4749  ;;  %vm5699_vm0 = vcmask 261127  }
0x1710   : > { %6855 = vmatprep.subr.mxu0 %v4754_v21  ;;  %v4710_v53 = vsel %vm2444_vm11, %v8692_v40, 0.0 }
0x1711   : > { %v8697_v27 = vpop.eup %7175  ;;  %4711 = vadd.xlane.f32.xlu1 %v4710_v53  ;;  %6856 = vmatpush3.msra.mxu0 %v4754_v21  ;;  %v4748_v6 = vpop.permute.xlu0 %4747  ;;  %v6100_v21 = vld [vmem:[%s9079_s16 + $0x20] sm:$0xff] }
0x1712   : > { %6857 = vmatprep.subr.mxu0 %v4752_v37  ;;  %v4716_v31 = vsel %vm2444_vm11, %v8697_v27, 0.0 }
0x1713   : > { %v7178_v47 = vpop.eup %7177  ;;  %6858 = vmatpush3.msra.mxu0 %v4752_v37  ;;  %v4746_v4 = vpop.permute.xlu1 %4745 }
0x1714   : > { %6859 = vmatprep.subr.mxu0 %v4750_v1  ;;  %v4707_v49 = vsel %vm2444_vm11, %v7178_v47, 0.0 }
0x1715   : > { %4708 = vadd.xlane.f32.xlu0 %v4707_v49  ;;  %4717 = vadd.xlane.f32.xlu1 %v4716_v31  ;;  %v7180_v61 = vpop.eup %7179 }
0x1716   : > { %6860 = vmatpush3.msra.mxu0 %v4750_v1  ;;  %v4722_v29 = vsel %vm2466_vm12, %v7180_v61, 0.0 }
0x1717   : > { %v7182_v39 = vpop.eup %7181  ;;  %6861 = vmatprep.subr.mxu0 %v4748_v6 }
0x1718   : > { %6862 = vmatpush3.msra.mxu0 %v4748_v6  ;;  %v4713_v9 = vsel %vm2444_vm11, %v7182_v39, 0.0 }
0x1719   : > { %6863 = vmatprep.subr.mxu0 %v4746_v4  ;;  %4714 = vadd.xlane.f32.xlu0 %v4713_v9 }
0x171a   : > { %4723 = vadd.xlane.f32.xlu1 %v4722_v29  ;;  %6864 = vmatpush3.msra.mxu0 %v4746_v4 }
0x171b   : > { %v7184_v44 = vpop.eup %7183 }
0x171c   : > { %v4719_v52 = vsel %vm2444_vm11, %v7184_v44, 0.0 }
0x171d   : > { %4720 = vadd.xlane.f32.xlu0 %v4719_v52  ;;  %v6105_v52 = vld [vmem:[%s9080_s17 + $0x1] ss:$0 sm:$0xff] }
0x172b   : > { %4741 = vrot.lane.b32.xlu1 %v8402_v35, %s9144_s3 }
0x1733   : > { %4743 = vrot.lane.b32.xlu0 %v8400_v24, %s9144_s3 }
0x1794   : > { %v4706_v45 = vpop.xlane.xlu1 %4705 }
0x1796   : > { %v4703_v23 = vpop.xlane.xlu0 %4702 }
0x1797   : > { %7185 = vrcp.f32 %v4703_v23 }
0x1798   : > { %7187 = vrcp.f32 %v4706_v45 }
0x179a   : > { %v4712_v7 = vpop.xlane.xlu1 %4711 }
0x179e   : > { %v4709_v59 = vpop.xlane.xlu0 %4708  ;;  %v4718_v19 = vpop.xlane.xlu1 %4717 }
0x179f   : > { %7189 = vrcp.f32 %v4709_v59 }
0x17a0   : > { %7191 = vrcp.f32 %v4712_v7 }
0x17a2   : > { %v4715_v25 = vpop.xlane.xlu0 %4714 }
0x17a3   : > { %7193 = vrcp.f32 %v4715_v25  ;;  %v4724_v36 = vpop.xlane.xlu1 %4723 }
0x17a4   : > { %v7186_v10 = vpop.eup %7185  ;;  %7195 = vrcp.f32 %v4718_v19 }
0x17a5   : > { %v4733_v11 = vmul.f32 %v7186_v10, %v7172_v42  ;;  %v7188_v24 = vpop.eup %7187 }
0x17a6   : > { %v4721_v54 = vpop.xlane.xlu0 %4720  ;;  %v4734_v60 = vmul.f32 %v7188_v24, %v8686_v43 }
0x17a7   : > { %7197 = vrcp.f32 %v4721_v54  ;;  %6869 = vmatprep.mubr.msk.f32.mxu0 %vm2444_vm11, %v4733_v11  ;;  %v4742_v0 = vpop.permute.xlu1 %4741 }
0x17a8   : > { %7199 = vrcp.f32 %v4724_v36 }
0x17aa   : > { %v4744_v35 = vpop.permute.xlu0 %4743 }
0x17ab   : > { %6865 = vmatprep.subr.mxu0 %v4744_v35 }
0x17ac   : > { %v7190_v15 = vpop.eup %7189  ;;  %6866 = vmatpush3.msra.mxu0 %v4744_v35 }
0x17ad   : > { %6867 = vmatprep.subr.mxu0 %v4742_v0  ;;  %v4735_v34 = vmul.f32 %v7190_v15, %v7178_v47  ;;  %v7192_v8 = vpop.eup %7191 }
0x17ae   : > { %6868 = vmatpush3.msra.mxu0 %v4742_v0  ;;  %v4736_v62 = vmul.f32 %v7192_v8, %v8692_v40 }
0x17af   : > { %6870 = vmatmul.mubr.msk.f32.vlgmr.msra.gmra.mxu0 %vm2444_vm11, %v4734_v60  ;;  %6881 = vmatprep.subr.mxu0 %v6103_v20 }
0x17b0   : > { %v7194_v58 = vpop.eup %7193  ;;  %6872 = vmatprep.mubr.msk.f32.mxu0 %vm2444_vm11, %v4735_v34  ;;  %6882 = vmatpush3.msra.mxu0 %v6103_v20 }
0x17b1   : > { %v4737_v16 = vmul.f32 %v7194_v58, %v7182_v39  ;;  %v7196_v41 = vpop.eup %7195  ;;  %6883 = vmatprep.subr.mxu0 %v6102_v46 }
0x17b2   : > { %v4738_v17 = vmul.f32 %v7196_v41, %v8697_v27  ;;  %6884 = vmatpush3.msra.mxu0 %v6102_v46 }
0x17b3   : > { %6873 = vmatmul.mubr.msk.f32.gmra.mxu0 %vm2444_vm11, %v4736_v62  ;;  %6885 = vmatprep.subr.mxu0 %v6101_v3 }
0x17b4   : > { %v7198_v33 = vpop.eup %7197  ;;  %6875 = vmatprep.mubr.msk.f32.mxu0 %vm2444_vm11, %v4737_v16  ;;  %6886 = vmatpush3.msra.mxu0 %v6101_v3 }
0x17b5   : > { %v4739_v5 = vmul.f32 %v7198_v33, %v7184_v44  ;;  %v7200_v38 = vpop.eup %7199  ;;  %6887 = vmatprep.subr.mxu0 %v6100_v21 }
0x17b6   : > { %v4740_v51 = vmul.f32 %v7200_v38, %v7180_v61  ;;  %6888 = vmatpush3.msra.mxu0 %v6100_v21 }
0x17b7   : > { %6876 = vmatmul.mubr.msk.f32.gmra.mxu0 %vm2444_vm11, %v4738_v17 }
0x17b8   : > { %6878 = vmatprep.mubr.msk.f32.mxu0 %vm2444_vm11, %v4739_v5 }
0x17bb   : > { %6879 = vmatmul.mubr.msk.f32.gmra.mxu0 %vm2444_vm11, %v4740_v51 }
0x186f   : > { %v6871_v2 = vpop.f32.mrf.mxu0 }
0x1870   : > { %4905 = vrot.lane.b32.xlu1 %v6871_v2, %s9145_s11 }
0x1871   : > { %v4856_v43 = vpop.f32.mrf.mxu0 }
0x1872   : > { %4903 = vrot.lane.b32.xlu0 %v4856_v43, %s9145_s11 }
0x1873   : > { %v6874_v56 = vpop.f32.mrf.mxu0 }
0x1874   : > { %4909 = vrot.lane.b32.xlu1 %v6874_v56, %s9145_s11 }
0x1875   : > { %v4866_v48 = vpop.f32.mrf.mxu0 }
0x1876   : > { %4907 = vrot.lane.b32.xlu0 %v4866_v48, %s9145_s11 }
0x1877   : > { %v6877_v13 = vpop.f32.mrf.mxu0 }
0x1878   : > { %4913 = vrot.lane.b32.xlu1 %v6877_v13, %s9145_s11 }
0x1879   : > { %v4876_v42 = vpop.f32.mrf.mxu0 }
0x187a   : > { %4911 = vrot.lane.b32.xlu0 %v4876_v42, %s9145_s11 }
0x187b   : > { %v6880_v57 = vpop.f32.mrf.mxu0 }
0x187c   : > { %4917 = vrot.lane.b32.xlu1 %v6880_v57, %s9145_s11 }
0x187d   : > { %v4886_v37 = vpop.f32.mrf.mxu0 }
0x187e   : > { %4915 = vrot.lane.b32.xlu0 %v4886_v37, %s9145_s11 }
0x18e2   : > { %v4906_v50 = vpop.permute.xlu1 %4905 }
0x18e3   : > { %4928 = vst.msk [vmem:[#allocation4 + $0x8] sm:$0xff] %vm3140_vm14, %v4906_v50 }
0x18e4   : > { %v4904_v30 = vpop.permute.xlu0 %4903 }
0x18e5   : > { %4927 = vst.msk [vmem:[#allocation4] sm:$0xff] %vm3140_vm14, %v4904_v30 }
0x18e6   : > { %v4910_v40 = vpop.permute.xlu1 %4909 }
0x18e7   : > { %4930 = vst.msk [vmem:[#allocation4 + $0x18] sm:$0xff] %vm3140_vm14, %v4910_v40 }
0x18e8   : > { %v4908_v53 = vpop.permute.xlu0 %4907 }
0x18e9   : > { %4929 = vst.msk [vmem:[#allocation4 + $0x10] sm:$0xff] %vm3140_vm14, %v4908_v53 }
0x18ea   : > { %v4914_v27 = vpop.permute.xlu1 %4913  ;;  %v4936_v49 = vld [vmem:[#allocation4 + $0x8] sm:$0xff] }
0x18eb   : > { %4932 = vst.msk [vmem:[#allocation4 + $0x28] sm:$0xff] %vm3140_vm14, %v4914_v27 }
0x18ec   : > { %v4912_v1 = vpop.permute.xlu0 %4911  ;;  %v4935_v47 = vld [vmem:[#allocation4] sm:$0xff] }
0x18ed   : > { %4931 = vst.msk [vmem:[#allocation4 + $0x20] sm:$0xff] %vm3140_vm14, %v4912_v1  ;;  %6889 = vmatprep.mubr.msk.f32.mxu0 %vm1063_vm3, %v4935_v47 }
0x18ee   : > { %6890 = vmatmul.mubr.msk.f32.vlgmr.msra.gmra.mxu0 %vm1063_vm3, %v4936_v49  ;;  %v4918_v31 = vpop.permute.xlu1 %4917  ;;  %v4938_v39 = vld [vmem:[#allocation4 + $0x18] sm:$0xff] }
0x18ef   : > { %4934 = vst.msk [vmem:[#allocation4 + $0x38] sm:$0xf] %vm3148_vm15, %v4918_v31 }
0x18f0   : > { %v4916_v61 = vpop.permute.xlu0 %4915  ;;  %v4937_v6 = vld [vmem:[#allocation4 + $0x10] sm:$0xff] }
0x18f1   : > { %4933 = vst.msk [vmem:[#allocation4 + $0x30] sm:$0xff] %vm3140_vm14, %v4916_v61  ;;  %6892 = vmatprep.mubr.msk.f32.mxu0 %vm1063_vm3, %v4937_v6 }
0x18f2   : > { %6893 = vmatmul.mubr.msk.f32.gmra.mxu0 %vm1063_vm3, %v4938_v39  ;;  %v4940_v9 = vld [vmem:[#allocation4 + $0x28] sm:$0xff] }
0x18f4   : > { %v4939_v4 = vld [vmem:[#allocation4 + $0x20] sm:$0xff] }
0x18f5   : > { %6895 = vmatprep.mubr.msk.f32.mxu0 %vm1063_vm3, %v4939_v4 }
0x18f6   : > { %6896 = vmatmul.mubr.msk.f32.gmra.mxu0 %vm1063_vm3, %v4940_v9  ;;  %v4942_v44 = vld [vmem:[#allocation4 + $0x38] sm:$0xf] }
0x18f8   : > { %v4941_v29 = vld [vmem:[#allocation4 + $0x30] sm:$0xff] }
0x18f9   : > { %6898 = vmatprep.mubr.msk.f32.mxu0 %vm1063_vm3, %v4941_v29 }
0x18fa   : > { %6899 = vmatmul.mubr.msk.f32.gmra.mxu0 %vm1063_vm3, %v4942_v44 }
0x19ae   : > { %v6891_v45 = vpop.f32.mrf.mxu0 }
0x19af   : > { %v5052_v23 = vadd.f32 %v6891_v45, %v6105_v52 }
0x19b0   : > { %v5046_v7 = vpop.f32.mrf.mxu0 }
0x19b1   : > { %v5086_v59 = vadd.f32 %v5052_v23, %v8364_v14  ;;  %v5047_v19 = vadd.f32 %v6105_v52, %v5046_v7 }
0x19b2   : > { %v6894_v25 = vpop.f32.mrf.mxu0 }
0x19b3   : > { %v5085_v10 = vadd.f32 %v5047_v19, %v8362_v12  ;;  %v5062_v11 = vadd.f32 %v6894_v25, %v6105_v52  ;;  %v5100_v36 = vsel %vm1063_vm3, %v5086_v59, 0.0 }
0x19b4   : > { %5101 = vadd.xlane.f32.xlu1 %v5100_v36  ;;  %v5056_v54 = vpop.f32.mrf.mxu0 }
0x19b5   : > { %v5088_v24 = vadd.f32 %v5062_v11, %v8376_v32  ;;  %v5057_v35 = vadd.f32 %v6105_v52, %v5056_v54  ;;  %v5097_v15 = vsel %vm1063_vm3, %v5085_v10, 0.0  ;;  %v6121_v54 = vld [vmem:[%s9083_s20 + $0x38] sm:$0xff] }
0x19b6   : > { %v6897_v0 = vpop.f32.mrf.mxu0  ;;  %5098 = vadd.xlane.f32.xlu0 %v5097_v15  ;;  %6901 = vmatprep.subr.mxu1 %v6121_v54  ;;  %v6118_v15 = vld [vmem:[%s9083_s20 + $0x20] sm:$0xff] }
0x19b7   : > { %v5072_v60 = vadd.f32 %v6897_v0, %v6105_v52  ;;  %v5087_v14 = vadd.f32 %v5057_v35, %v8373_v28  ;;  %v5106_v12 = vsel %vm1063_vm3, %v5088_v24, 0.0  ;;  %6902 = vmatpush3.msra.mxu1 %v6121_v54  ;;  %v6119_v35 = vld [vmem:[%s9083_s20 + $0x28] sm:$0xff]  ;;  %v6138_v54 = vld [vmem:[%s9085_s22 + $0x70] sm:$0xff] }
0x19b8   : > { %v5066_v34 = vpop.f32.mrf.mxu0 }
0x19b9   : > { %v5090_v8 = vadd.f32 %v5072_v60, %v8386_v26  ;;  %v5067_v58 = vadd.f32 %v6105_v52, %v5066_v34  ;;  %v5103_v38 = vsel %vm1063_vm3, %v5087_v14, 0.0 }
0x19ba   : > { %v6900_v62 = vpop.f32.mrf.mxu0  ;;  %5107 = vadd.xlane.f32.xlu0 %v5106_v12 }
0x19bb   : > { %v5082_v16 = vadd.f32 %v6900_v62, %v6105_v52  ;;  %v5112_v41 = vsel %vm1063_vm3, %v5090_v8, 0.0  ;;  %v5089_v33 = vadd.f32 %v5067_v58, %v8383_v18 }
0x19bc   : > { %5113 = vadd.xlane.f32.xlu1 %v5112_v41  ;;  %v5076_v32 = vpop.f32.mrf.mxu0 }
0x19bd   : > { %v5092_v17 = vadd.f32 %v5082_v16, %v8394_v55  ;;  %v5077_v5 = vadd.f32 %v6105_v52, %v5076_v32  ;;  %v5109_v51 = vsel %vm1063_vm3, %v5089_v33, 0.0 }
0x19be   : > { %5104 = vadd.xlane.f32.xlu0 %v5103_v38 }
0x19bf   : > { %v5118_v28 = vsel %vm1997_vm10, %v5092_v17, 0.0  ;;  %v5091_v26 = vadd.f32 %v5077_v5, %v8392_v22 }
0x19c0   : > { %5119 = vadd.xlane.f32.xlu1 %v5118_v28 }
0x19c1   : > { %v5115_v20 = vsel %vm1063_vm3, %v5091_v26, 0.0 }
0x19c2   : > { %5110 = vadd.xlane.f32.xlu0 %v5109_v51 }
0x19c6   : > { %5116 = vadd.xlane.f32.xlu0 %v5115_v20 }
0x1a3d   : > { %v5102_v46 = vpop.xlane.xlu1 %5101 }
0x1a3e   : > { %v5122_v3 = vmul.f32 0.03125, %v5102_v46 }
0x1a3f   : > { %v5099_v18 = vpop.xlane.xlu0 %5098 }
0x1a40   : > { %v8775_v21 = vsub.f32 %v5086_v59, %v5122_v3  ;;  %v5121_v55 = vmul.f32 0.03125, %v5099_v18 }
0x1a42   : > { %v8777_v2 = vsub.f32 %v5085_v10, %v5121_v55  ;;  %v5138_v43 = vmul.f32 %v8775_v21, %v8775_v21 }
0x1a43   : > { %v5108_v56 = vpop.xlane.xlu0 %5107 }
0x1a44   : > { %v5124_v48 = vmul.f32 0.03125, %v5108_v56  ;;  %v5148_v22 = vsel %vm1063_vm3, %v5138_v43, 0.0  ;;  %v5137_v13 = vmul.f32 %v8777_v2, %v8777_v2  ;;  %v6116_v43 = vld [vmem:[%s9081_s18 + $0x1] ss:$0 sm:$0xff] }
0x1a45   : > { %v5114_v42 = vpop.xlane.xlu1 %5113  ;;  %5149 = vadd.xlane.f32.xlu1 %v5148_v22 }
0x1a46   : > { %v8784_v57 = vsub.f32 %v5088_v24, %v5124_v48  ;;  %v5126_v37 = vmul.f32 0.03125, %v5114_v42  ;;  %v5145_v50 = vsel %vm1063_vm3, %v5137_v13, 0.0  ;;  %v6120_v24 = vld [vmem:[%s9083_s20 + $0x30] sm:$0xff] }
0x1a47   : > { %5146 = vadd.xlane.f32.xlu0 %v5145_v50  ;;  %v5105_v30 = vpop.xlane.xlu0 %5104  ;;  %6903 = vmatprep.subr.mxu1 %v6120_v24  ;;  %v6117_v50 = vld [vmem:[%s9082_s19 + $0x1] ss:$0 sm:$0xff] }
0x1a48   : > { %v8787_v40 = vsub.f32 %v5090_v8, %v5126_v37  ;;  %v5123_v53 = vmul.f32 0.03125, %v5105_v30  ;;  %v5140_v27 = vmul.f32 %v8784_v57, %v8784_v57  ;;  %6904 = vmatpush3.msra.mxu1 %v6120_v24  ;;  %v6137_v24 = vld [vmem:[%s9085_s22 + $0x68] sm:$0xff] }
0x1a49   : > { %v5120_v1 = vpop.xlane.xlu1 %5119  ;;  %6905 = vmatprep.subr.mxu1 %v6119_v35 }
0x1a4a   : > { %v8791_v47 = vsub.f32 %v5087_v14, %v5123_v53  ;;  %v5128_v49 = vmul.f32 0.03125, %v5120_v1  ;;  %v5154_v31 = vsel %vm1063_vm3, %v5140_v27, 0.0  ;;  %v5142_v61 = vmul.f32 %v8787_v40, %v8787_v40  ;;  %6906 = vmatpush3.msra.mxu1 %v6119_v35  ;;  %v6136_v35 = vld [vmem:[%s9085_s22 + $0x60] sm:$0xff] }
0x1a4b   : > { %5155 = vadd.xlane.f32.xlu1 %v5154_v31  ;;  %v5111_v6 = vpop.xlane.xlu0 %5110  ;;  %6907 = vmatprep.subr.mxu1 %v6118_v15 }
0x1a4c   : > { %v8796_v39 = vsub.f32 %v5092_v17, %v5128_v49  ;;  %v5125_v4 = vmul.f32 0.03125, %v5111_v6  ;;  %v5139_v9 = vmul.f32 %v8791_v47, %v8791_v47  ;;  %v5160_v44 = vsel %vm1063_vm3, %v5142_v61, 0.0  ;;  %6908 = vmatpush3.msra.mxu1 %v6118_v15  ;;  %v6135_v15 = vld [vmem:[%s9085_s22 + $0x58] sm:$0xff] }
0x1a4d   : > { %6949 = vmatprep.subr.mxu1 %v7261_v63 }
0x1a4e   : > { %v8800_v29 = vsub.f32 %v5089_v33, %v5125_v4  ;;  %v5151_v52 = vsel %vm1063_vm3, %v5139_v9, 0.0  ;;  %v5144_v45 = vmul.f32 %v8796_v39, %v8796_v39 }
0x1a4f   : > { %5161 = vadd.xlane.f32.xlu1 %v5160_v44  ;;  %5152 = vadd.xlane.f32.xlu0 %v5151_v52  ;;  %v5117_v23 = vpop.xlane.xlu0 %5116 }
0x1a50   : > { %v5127_v7 = vmul.f32 0.03125, %v5117_v23  ;;  %v5141_v59 = vmul.f32 %v8800_v29, %v8800_v29  ;;  %v5166_v25 = vsel %vm1997_vm10, %v5144_v45, 0.0 }
0x1a52   : > { %v8808_v19 = vsub.f32 %v5091_v26, %v5127_v7  ;;  %v5157_v10 = vsel %vm1063_vm3, %v5141_v59, 0.0 }
0x1a53   : > { %5167 = vadd.xlane.f32.xlu1 %v5166_v25  ;;  %5158 = vadd.xlane.f32.xlu0 %v5157_v10 }
0x1a54   : > { %v5143_v11 = vmul.f32 %v8808_v19, %v8808_v19 }
0x1a56   : > { %v5163_v36 = vsel %vm1063_vm3, %v5143_v11, 0.0 }
0x1a57   : > { %5164 = vadd.xlane.f32.xlu0 %v5163_v36 }
0x1ace   : > { %v5150_v0 = vpop.xlane.xlu1 %5149 }
0x1acf   : > { %v5170_v60 = vmul.f32 0.03125, %v5150_v0  ;;  %v6134_v0 = vld [vmem:[%s9085_s22 + $0x50] sm:$0xff] }
0x1ad0   : > { %v5147_v34 = vpop.xlane.xlu0 %5146 }
0x1ad1   : > { %v5178_v14 = vadd.f32 1e-06, %v5170_v60  ;;  %v5169_v8 = vmul.f32 0.03125, %v5147_v34  ;;  %v6133_v60 = vld [vmem:[%s9085_s22 + $0x48] sm:$0xff]  ;;  %v6132_v34 = vld [vmem:[%s9085_s22 + $0x40] sm:$0xff] }
0x1ad3   : > { %7201 = vrsqrt.f32 %v5178_v14  ;;  %v5177_v58 = vadd.f32 1e-06, %v5169_v8  ;;  %v6123_v14 = vld [vmem:[%s9084_s21 + $0x1] ss:$0 sm:$0xff] }
0x1ad4   : > { %v5156_v12 = vpop.xlane.xlu1 %5155 }
0x1ad5   : > { %7203 = vrsqrt.f32 %v5177_v58  ;;  %v5172_v62 = vmul.f32 0.03125, %v5156_v12 }
0x1ad7   : > { %v5180_v16 = vadd.f32 1e-06, %v5172_v62 }
0x1ad8   : > { %v5162_v41 = vpop.xlane.xlu1 %5161  ;;  %v5153_v32 = vpop.xlane.xlu0 %5152 }
0x1ad9   : > { %7205 = vrsqrt.f32 %v5180_v16  ;;  %v5174_v33 = vmul.f32 0.03125, %v5162_v41  ;;  %v5171_v17 = vmul.f32 0.03125, %v5153_v32 }
0x1adb   : > { %v5182_v5 = vadd.f32 1e-06, %v5174_v33  ;;  %v5179_v38 = vadd.f32 1e-06, %v5171_v17 }
0x1adc   : > { %v5168_v28 = vpop.xlane.xlu1 %5167  ;;  %v5159_v26 = vpop.xlane.xlu0 %5158 }
0x1add   : > { %7207 = vrsqrt.f32 %v5182_v5  ;;  %v5176_v51 = vmul.f32 0.03125, %v5168_v28  ;;  %v5173_v20 = vmul.f32 0.03125, %v5159_v26 }
0x1ade   : > { %7209 = vrsqrt.f32 %v5179_v38 }
0x1adf   : > { %v5184_v46 = vadd.f32 1e-06, %v5176_v51  ;;  %v5181_v3 = vadd.f32 1e-06, %v5173_v20 }
0x1ae0   : > { %v7202_v18 = vpop.eup %7201  ;;  %v5165_v55 = vpop.xlane.xlu0 %5164 }
0x1ae1   : > { %v5194_v56 = vmul.f32 %v7202_v18, %v8775_v21  ;;  %7211 = vrsqrt.f32 %v5184_v46  ;;  %v5175_v48 = vmul.f32 0.03125, %v5165_v55 }
0x1ae2   : > { %v7204_v22 = vpop.eup %7203  ;;  %7213 = vrsqrt.f32 %v5181_v3 }
0x1ae3   : > { %v5183_v13 = vadd.f32 1e-06, %v5175_v48  ;;  %v5193_v42 = vmul.f32 %v7204_v22, %v8777_v2  ;;  %v5208_v37 = vmul.f32 %v6116_v43, %v5194_v56 }
0x1ae5   : > { %7215 = vrsqrt.f32 %v5183_v13  ;;  %v5207_v30 = vmul.f32 %v6116_v43, %v5193_v42  ;;  %v8836_v1 = vadd.f32 %v6117_v50, %v5208_v37 }
0x1ae6   : > { %v7206_v53 = vpop.eup %7205 }
0x1ae7   : > { %v5221_v27 = vadd.f32 %v6117_v50, %v5207_v30  ;;  %v5196_v21 = vmul.f32 %v7206_v53, %v8784_v57 }
0x1ae9   : > { %6909 = vmatprep.mubr.msk.f32.mxu1 %vm1063_vm3, %v5221_v27  ;;  %v5210_v61 = vmul.f32 %v6116_v43, %v5196_v21 }
0x1aea   : > { %v7208_v49 = vpop.eup %7207  ;;  %6910 = vmatmul.mubr.msk.f32.vlgmr.msra.gmra.mxu1 %vm1063_vm3, %v8836_v1 }
0x1aeb   : > { %v7210_v2 = vpop.eup %7209  ;;  %v5198_v6 = vmul.f32 %v7208_v49, %v8787_v40  ;;  %v8845_v23 = vadd.f32 %v6117_v50, %v5210_v61 }
0x1aec   : > { %v5195_v31 = vmul.f32 %v7210_v2, %v8791_v47 }
0x1aed   : > { %v5212_v7 = vmul.f32 %v6116_v43, %v5198_v6 }
0x1aee   : > { %v7212_v4 = vpop.eup %7211  ;;  %v5209_v9 = vmul.f32 %v6116_v43, %v5195_v31 }
0x1aef   : > { %v7214_v44 = vpop.eup %7213  ;;  %v5200_v57 = vmul.f32 %v7212_v4, %v8796_v39  ;;  %v8854_v10 = vadd.f32 %v6117_v50, %v5212_v7 }
0x1af0   : > { %v5223_v52 = vadd.f32 %v6117_v50, %v5209_v9  ;;  %v5197_v45 = vmul.f32 %v7214_v44, %v8800_v29 }
0x1af1   : > { %v5214_v29 = vmul.f32 %v6116_v43, %v5200_v57 }
0x1af2   : > { %v7216_v59 = vpop.eup %7215  ;;  %6912 = vmatprep.mubr.msk.f32.mxu1 %vm1063_vm3, %v5223_v52  ;;  %v5211_v25 = vmul.f32 %v6116_v43, %v5197_v45 }
0x1af3   : > { %6913 = vmatmul.mubr.msk.f32.gmra.mxu1 %vm1063_vm3, %v8845_v23  ;;  %v5199_v40 = vmul.f32 %v7216_v59, %v8808_v19  ;;  %v8864_v36 = vadd.f32 %v6117_v50, %v5214_v29  ;;  %v6139_v19 = vld [vmem:[%s9085_s22 + $0x78] sm:$0xff] }
0x1af4   : > { %v8852_v47 = vadd.f32 %v6117_v50, %v5211_v25  ;;  %6921 = vmatprep.subr.mxu0 %v6139_v19 }
0x1af5   : > { %v5213_v11 = vmul.f32 %v6116_v43, %v5199_v40  ;;  %6922 = vmatpush3.msra.mxu0 %v6139_v19 }
0x1af6   : > { %6915 = vmatprep.mubr.msk.f32.mxu1 %vm1063_vm3, %v8852_v47  ;;  %6923 = vmatprep.subr.mxu0 %v6138_v54 }
0x1af7   : > { %6916 = vmatmul.mubr.msk.f32.gmra.mxu1 %vm1063_vm3, %v8854_v10  ;;  %v8860_v39 = vadd.f32 %v6117_v50, %v5213_v11  ;;  %6924 = vmatpush3.msra.mxu0 %v6138_v54 }
0x1af8   : > { %6925 = vmatprep.subr.mxu0 %v6137_v24 }
0x1af9   : > { %6918 = vmatprep.mubr.msk.f32.mxu1 %vm1063_vm3, %v8860_v39  ;;  %6926 = vmatpush3.msra.mxu0 %v6137_v24 }
0x1afa   : > { %6927 = vmatprep.subr.mxu0 %v6136_v35 }
0x1afb   : > { %6919 = vmatmul.mubr.msk.f32.gmra.mxu1 %vm1063_vm3, %v8864_v36  ;;  %6928 = vmatpush3.msra.mxu0 %v6136_v35 }
0x1afc   : > { %6981 = vmatprep.mubr.msk.f32.mxu1 %vm7262_vm5, %v7261_v63  ;;  %6929 = vmatprep.subr.mxu0 %v6135_v15  ;;  %vm5717_vm5 = vcmask 1042177  }
0x1afd   : > { %6930 = vmatpush3.msra.mxu0 %v6135_v15 }
0x1afe   : > { %6931 = vmatprep.subr.mxu0 %v6134_v0 }
0x1aff   : > { %6932 = vmatpush3.msra.mxu0 %v6134_v0 }
0x1b00   : > { %6933 = vmatprep.subr.mxu0 %v6133_v60 }
0x1b01   : > { %6934 = vmatpush3.msra.mxu0 %v6133_v60 }
0x1b02   : > { %6935 = vmatprep.subr.mxu0 %v6132_v34 }
0x1b03   : > { %6936 = vmatpush3.msra.mxu0 %v6132_v34 }
0x1baa   : > { %v6911_v8 = vpop.f32.mrf.mxu1 }
0x1bab   : > { %v8897_v58 = vadd.f32 %v6911_v8, %v6123_v14 }
0x1bac   : > { %v5332_v12 = vpop.f32.mrf.mxu1 }
0x1bad   : > { %v5380_v62 = vmul.f32 0.044715, %v8897_v58  ;;  %v5333_v16 = vadd.f32 %v6123_v14, %v5332_v12 }
0x1baf   : > { %v5388_v41 = vmul.f32 %v5380_v62, %v8897_v58  ;;  %v5379_v32 = vmul.f32 0.044715, %v5333_v16  ;;  %v5371_v8 = vmul.f32 0.5, %v5333_v16 }
0x1bb1   : > { %v5396_v33 = vmul.f32 %v5388_v41, %v8897_v58  ;;  %v5387_v17 = vmul.f32 %v5379_v32, %v5333_v16  ;;  %v5372_v41 = vmul.f32 0.5, %v8897_v58 }
0x1bb3   : > { %v5404_v5 = vadd.f32 %v5396_v33, %v8897_v58  ;;  %v5395_v38 = vmul.f32 %v5387_v17, %v5333_v16  ;;  %v6914_v28 = vpop.f32.mrf.mxu1 }
0x1bb4   : > { %v8903_v26 = vadd.f32 %v6914_v28, %v6123_v14 }
0x1bb5   : > { %v5412_v51 = vmul.f32 0.7978846, %v5404_v5  ;;  %v5403_v20 = vadd.f32 %v5395_v38, %v5333_v16  ;;  %v5342_v46 = vpop.f32.mrf.mxu1 }
0x1bb6   : > { %v5382_v3 = vmul.f32 0.044715, %v8903_v26  ;;  %v5343_v18 = vadd.f32 %v6123_v14, %v5342_v46  ;;  %v5374_v16 = vmul.f32 0.5, %v8903_v26 }
0x1bb7   : > { %7217 = vtanh.f32 %v5412_v51  ;;  %v6917_v55 = vpop.f32.mrf.mxu1  ;;  %v5411_v43 = vmul.f32 0.7978846, %v5403_v20 }
0x1bb8   : > { %v5390_v56 = vmul.f32 %v5382_v3, %v8903_v26  ;;  %v5381_v48 = vmul.f32 0.044715, %v5343_v18  ;;  %v8907_v22 = vadd.f32 %v6917_v55, %v6123_v14  ;;  %v5373_v51 = vmul.f32 0.5, %v5343_v18 }
0x1bb9   : > { %v5352_v13 = vpop.f32.mrf.mxu1  ;;  %7219 = vtanh.f32 %v5411_v43 }
0x1bba   : > { %v5398_v42 = vmul.f32 %v5390_v56, %v8903_v26  ;;  %v5389_v37 = vmul.f32 %v5381_v48, %v5343_v18  ;;  %v5384_v50 = vmul.f32 0.044715, %v8907_v22  ;;  %v5353_v30 = vadd.f32 %v6123_v14, %v5352_v13 }
0x1bbb   : > { %v6920_v53 = vpop.f32.mrf.mxu1  ;;  %v5376_v13 = vmul.f32 0.5, %v8907_v22 }
0x1bbc   : > { %v5406_v27 = vadd.f32 %v5398_v42, %v8903_v26  ;;  %v5397_v21 = vmul.f32 %v5389_v37, %v5343_v18  ;;  %v5392_v49 = vmul.f32 %v5384_v50, %v8907_v22  ;;  %v5383_v2 = vmul.f32 0.044715, %v5353_v30 }
0x1bbd   : > { %v8913_v31 = vadd.f32 %v6920_v53, %v6123_v14  ;;  %v5362_v61 = vpop.f32.mrf.mxu1  ;;  %v5375_v56 = vmul.f32 0.5, %v5353_v30 }
0x1bbe   : > { %v5405_v6 = vadd.f32 %v5397_v21, %v5343_v18  ;;  %v5400_v4 = vmul.f32 %v5392_v49, %v8907_v22  ;;  %v5391_v9 = vmul.f32 %v5383_v2, %v5353_v30  ;;  %v5363_v44 = vadd.f32 %v6123_v14, %v5362_v61 }
0x1bbf   : > { %v5386_v52 = vmul.f32 0.044715, %v8913_v31  ;;  %v5414_v45 = vmul.f32 0.7978846, %v5406_v27  ;;  %v5378_v21 = vmul.f32 0.5, %v8913_v31 }
0x1bc0   : > { %v5408_v7 = vadd.f32 %v5400_v4, %v8907_v22  ;;  %v5399_v57 = vmul.f32 %v5391_v9, %v5353_v30  ;;  %v5385_v59 = vmul.f32 0.044715, %v5363_v44  ;;  %v5413_v25 = vmul.f32 0.7978846, %v5405_v6  ;;  %v6141_v4 = vld [vmem:[%s9086_s23 + $0x1] ss:$0 sm:$0xff] }
0x1bc1   : > { %v5394_v40 = vmul.f32 %v5386_v52, %v8913_v31  ;;  %7221 = vtanh.f32 %v5414_v45  ;;  %v5377_v26 = vmul.f32 0.5, %v5363_v44 }
0x1bc2   : > { %v5407_v11 = vadd.f32 %v5399_v57, %v5353_v30  ;;  %v5393_v29 = vmul.f32 %v5385_v59, %v5363_v44  ;;  %7223 = vtanh.f32 %v5413_v25  ;;  %v5416_v19 = vmul.f32 0.7978846, %v5408_v7 }
0x1bc3   : > { %v5402_v54 = vmul.f32 %v5394_v40, %v8913_v31 }
0x1bc4   : > { %v7218_v24 = vpop.eup %7217  ;;  %v5401_v35 = vmul.f32 %v5393_v29, %v5363_v44  ;;  %v5415_v15 = vmul.f32 0.7978846, %v5407_v11  ;;  %7225 = vtanh.f32 %v5416_v19 }
0x1bc5   : > { %v5410_v0 = vadd.f32 %v5402_v54, %v8913_v31  ;;  %v5428_v34 = vadd.f32 1.0, %v7218_v24 }
0x1bc6   : > { %v7220_v60 = vpop.eup %7219  ;;  %v5409_v14 = vadd.f32 %v5401_v35, %v5363_v44  ;;  %7227 = vtanh.f32 %v5415_v15 }
0x1bc7   : > { %v5427_v12 = vadd.f32 1.0, %v7220_v60  ;;  %v5418_v62 = vmul.f32 0.7978846, %v5410_v0  ;;  %v5436_v17 = vmul.f32 %v5428_v34, %v5372_v41 }
0x1bc8   : > { %v5417_v32 = vmul.f32 0.7978846, %v5409_v14 }
0x1bc9   : > { %v5435_v33 = vmul.f32 %v5427_v12, %v5371_v8  ;;  %7229 = vtanh.f32 %v5418_v62 }
0x1bca   : > { %7231 = vtanh.f32 %v5417_v32 }
0x1bcb   : > { %6937 = vmatprep.mubr.msk.f32.mxu0 %vm3667_vm1, %v5435_v33 }
0x1bcc   : > { %6938 = vmatmul.mubr.msk.f32.vlgmr.msra.gmra.mxu0 %vm3667_vm1, %v5436_v17 }
0x1bce   : > { %v7222_v5 = vpop.eup %7221 }
0x1bcf   : > { %v7224_v38 = vpop.eup %7223  ;;  %v5430_v28 = vadd.f32 1.0, %v7222_v5 }
0x1bd0   : > { %v5429_v20 = vadd.f32 1.0, %v7224_v38 }
0x1bd1   : > { %v7226_v46 = vpop.eup %7225  ;;  %v5438_v58 = vmul.f32 %v5430_v28, %v5374_v16 }
0x1bd2   : > { %v5437_v3 = vmul.f32 %v5429_v20, %v5373_v51  ;;  %v5432_v43 = vadd.f32 1.0, %v7226_v46 }
0x1bd3   : > { %v7228_v55 = vpop.eup %7227 }
0x1bd4   : > { %6940 = vmatprep.mubr.msk.f32.mxu0 %vm3667_vm1, %v5437_v3  ;;  %v5431_v48 = vadd.f32 1.0, %v7228_v55  ;;  %v5440_v18 = vmul.f32 %v5432_v43, %v5376_v13 }
0x1bd5   : > { %6941 = vmatmul.mubr.msk.f32.gmra.mxu0 %vm3667_vm1, %v5438_v58 }
0x1bd6   : > { %v7230_v42 = vpop.eup %7229  ;;  %v5439_v37 = vmul.f32 %v5431_v48, %v5375_v56 }
0x1bd7   : > { %v7232_v50 = vpop.eup %7231  ;;  %v5434_v53 = vadd.f32 1.0, %v7230_v42 }
0x1bd8   : > { %6943 = vmatprep.mubr.msk.f32.mxu0 %vm3667_vm1, %v5439_v37  ;;  %v5433_v27 = vadd.f32 1.0, %v7232_v50 }
0x1bd9   : > { %6944 = vmatmul.mubr.msk.f32.gmra.mxu0 %vm3667_vm1, %v5440_v18  ;;  %v5442_v30 = vmul.f32 %v5434_v53, %v5378_v21  ;;  %v5745_v53 = vld [vmem:[%s9089_s26 + $0x78] sm:$0xff]  ;;  %v5742_v21 = vld [vmem:[%s9089_s26 + $0x60] sm:$0xff] }
0x1bda   : > { %v5441_v49 = vmul.f32 %v5433_v27, %v5377_v26  ;;  %v5744_v26 = vld [vmem:[%s9089_s26 + $0x70] sm:$0xff]  ;;  %6950 = vmatpush3.msra.mxu1 %v5745_v53  ;;  %v5743_v27 = vld [vmem:[%s9089_s26 + $0x68] sm:$0xff] }
0x1bdb   : > { %6951 = vmatprep.subr.mxu1 %v7261_v63 }
0x1bdc   : > { %6946 = vmatprep.mubr.msk.f32.mxu0 %vm3667_vm1, %v5441_v49  ;;  %6952 = vmatpush3.msra.mxu1 %v5744_v26  ;;  %v5741_v49 = vld [vmem:[%s9089_s26 + $0x58] sm:$0xff] }
0x1bdd   : > { %6947 = vmatmul.mubr.msk.f32.gmra.mxu0 %vm3667_vm1, %v5442_v30  ;;  %6953 = vmatprep.subr.mxu1 %v7261_v63  ;;  %v5740_v30 = vld [vmem:[%s9089_s26 + $0x50] sm:$0xff] }
0x1bde   : > { %6954 = vmatpush3.msra.mxu1 %v5743_v27 }
0x1bdf   : > { %6955 = vmatprep.subr.mxu1 %v7261_v63 }
0x1be0   : > { %6956 = vmatpush3.msra.mxu1 %v5742_v21 }
0x1be1   : > { %6957 = vmatprep.subr.mxu1 %v7261_v63 }
0x1be2   : > { %6958 = vmatpush3.msra.mxu1 %v5741_v49 }
0x1be3   : > { %6959 = vmatprep.subr.mxu1 %v7261_v63 }
0x1be4   : > { %6960 = vmatpush3.msra.mxu1 %v5740_v30 }
0x1be5   : > { %6961 = vmatprep.subr.mxu1 %v7261_v63 }
0x1c8c   : > { %v6939_v22 = vpop.f32.mrf.mxu0 }
0x1c8d   : > { %v5555_v29 = vadd.f32 %v6939_v22, %v6141_v4  ;;  %v5739_v22 = vld [vmem:[%s9089_s26 + $0x48] sm:$0xff] }
0x1c8e   : > { %v5550_v2 = vpop.f32.mrf.mxu0  ;;  %6962 = vmatpush3.msra.mxu1 %v5739_v22 }
0x1c8f   : > { %6963 = vmatprep.subr.mxu1 %v7261_v63 }
0x1c95   : > { %v6942_v61 = vpop.f32.mrf.mxu0 }
0x1c96   : > { %v5564_v57 = vadd.f32 %v6942_v61, %v6141_v4 }
0x1c97   : > { %v5559_v6 = vpop.f32.mrf.mxu0 }
0x1c98   : > { %v5588_v35 = vadd.f32 %v5564_v57, %v8845_v23 }
0x1c99   : > { %v6945_v9 = vpop.f32.mrf.mxu0 }
0x1c9a   : > { %v5574_v44 = vadd.f32 %v6945_v9, %v6141_v4  ;;  %v5600_v60 = vsel %vm1063_vm3, %v5588_v35, 0.0 }
0x1c9b   : > { %v5568_v52 = vpop.f32.mrf.mxu0 }
0x1c9c   : > { %v5590_v45 = vadd.f32 %v5574_v44, %v8854_v10  ;;  %v5569_v31 = vadd.f32 %v6141_v4, %v5568_v52 }
0x1c9d   : > { %v6948_v7 = vpop.f32.mrf.mxu0 }
0x1c9e   : > { %v5589_v59 = vadd.f32 %v5569_v31, %v8852_v47  ;;  %v5584_v25 = vadd.f32 %v6948_v7, %v6141_v4  ;;  %v5606_v40 = vsel %vm1063_vm3, %v5590_v45, 0.0  ;;  %v5587_v47 = vadd.f32 %v5555_v29, %v8836_v1 }
0x1c9f   : > { %5607 = vadd.xlane.f32.xlu1 %v5606_v40  ;;  %v5578_v11 = vpop.f32.mrf.mxu0 }
0x1ca0   : > { %v5592_v19 = vadd.f32 %v5584_v25, %v8864_v36  ;;  %v5579_v54 = vadd.f32 %v6141_v4, %v5578_v11  ;;  %v5603_v24 = vsel %vm1063_vm3, %v5589_v59, 0.0  ;;  %v5597_v36 = vsel %vm1063_vm3, %v5587_v47, 0.0 }
0x1ca1   : > { %5604 = vadd.xlane.f32.xlu0 %v5603_v24 }
0x1ca2   : > { %v5591_v10 = vadd.f32 %v5579_v54, %v8860_v39  ;;  %v5612_v15 = vsel %vm1997_vm10, %v5592_v19, 0.0  ;;  %v5738_v54 = vld [vmem:[%s9089_s26 + $0x40] sm:$0xff] }
0x1ca3   : > { %5613 = vadd.xlane.f32.xlu1 %v5612_v15  ;;  %6964 = vmatpush3.msra.mxu1 %v5738_v54 }
0x1ca4   : > { %v5609_v0 = vsel %vm1063_vm3, %v5591_v10, 0.0  ;;  %6965 = vmatprep.subr.mxu1 %v7261_v63 }
0x1ca5   : > { %5610 = vadd.xlane.f32.xlu0 %v5609_v0  ;;  %v5735_v0 = vld [vmem:[%s9089_s26 + $0x28] sm:$0xff] }
0x1ca7   : > { %5601 = vadd.xlane.f32.xlu1 %v5600_v60  ;;  %v5734_v60 = vld [vmem:[%s9089_s26 + $0x20] sm:$0xff] }
0x1ca9   : > { %5598 = vadd.xlane.f32.xlu0 %v5597_v36 }
0x1d28   : > { %v5608_v34 = vpop.xlane.xlu1 %5607 }
0x1d29   : > { %v5618_v14 = vmul.f32 0.03125, %v5608_v34 }
0x1d2a   : > { %v5605_v8 = vpop.xlane.xlu0 %5604 }
0x1d2b   : > { %v8948_v23 = vsub.f32 %v5590_v45, %v5618_v14  ;;  %v5617_v39 = vmul.f32 0.03125, %v5605_v8  ;;  %v6153_v14 = vld [vmem:[%s9088_s25 + $0x1] ss:$0 sm:$0xff] }
0x1d2c   : > { %v5614_v12 = vpop.xlane.xlu1 %5613 }
0x1d2d   : > { %v8950_v62 = vsub.f32 %v5589_v59, %v5617_v39  ;;  %v5620_v41 = vmul.f32 0.03125, %v5614_v12  ;;  %v5630_v1 = vmul.f32 %v8948_v23, %v8948_v23 }
0x1d2e   : > { %v5611_v32 = vpop.xlane.xlu0 %5610 }
0x1d2f   : > { %v8954_v33 = vsub.f32 %v5592_v19, %v5620_v41  ;;  %v5619_v17 = vmul.f32 0.03125, %v5611_v32  ;;  %v5642_v5 = vsel %vm1063_vm3, %v5630_v1, 0.0  ;;  %v5629_v38 = vmul.f32 %v8950_v62, %v8950_v62  ;;  %v5733_v41 = vld [vmem:[%s9089_s26 + $0x18] sm:$0xff] }
0x1d30   : > { %5643 = vadd.xlane.f32.xlu1 %v5642_v5  ;;  %v5602_v28 = vpop.xlane.xlu1 %5601 }
0x1d31   : > { %v8959_v51 = vsub.f32 %v5591_v10, %v5619_v17  ;;  %v5616_v20 = vmul.f32 0.03125, %v5602_v28  ;;  %v5639_v46 = vsel %vm1063_vm3, %v5629_v38, 0.0  ;;  %v5632_v16 = vmul.f32 %v8954_v33, %v8954_v33  ;;  %v5736_v10 = vld [vmem:[%s9089_s26 + $0x30] sm:$0xff] }
0x1d32   : > { %5640 = vadd.xlane.f32.xlu0 %v5639_v46  ;;  %v5599_v3 = vpop.xlane.xlu0 %5598  ;;  %v5730_v46 = vld [vmem:[%s9089_s26] sm:$0xff] }
0x1d33   : > { %v8964_v55 = vsub.f32 %v5588_v35, %v5616_v20  ;;  %v5615_v58 = vmul.f32 0.03125, %v5599_v3  ;;  %v5648_v43 = vsel %vm1997_vm10, %v5632_v16, 0.0  ;;  %v5631_v56 = vmul.f32 %v8959_v51, %v8959_v51  ;;  %v5737_v35 = vld [vmem:[%s9089_s26 + $0x38] sm:$0xff] }
0x1d34   : > { %5649 = vadd.xlane.f32.xlu1 %v5648_v43  ;;  %6966 = vmatpush3.msra.mxu1 %v5737_v35 }
0x1d35   : > { %v8969_v48 = vsub.f32 %v5587_v47, %v5615_v58  ;;  %v5645_v13 = vsel %vm1063_vm3, %v5631_v56, 0.0  ;;  %v5628_v42 = vmul.f32 %v8964_v55, %v8964_v55  ;;  %6967 = vmatprep.subr.mxu1 %v7261_v63  ;;  %v6152_v47 = vld [vmem:[%s9087_s24 + $0x1] ss:$0 sm:$0xff] }
0x1d36   : > { %5646 = vadd.xlane.f32.xlu0 %v5645_v13  ;;  %6968 = vmatpush3.msra.mxu1 %v5736_v10 }
0x1d37   : > { %v5636_v37 = vsel %vm1063_vm3, %v5628_v42, 0.0  ;;  %v5627_v50 = vmul.f32 %v8969_v48, %v8969_v48  ;;  %6969 = vmatprep.subr.mxu1 %v7261_v63 }
0x1d38   : > { %5637 = vadd.xlane.f32.xlu1 %v5636_v37  ;;  %6970 = vmatpush3.msra.mxu1 %v5735_v0 }
0x1d39   : > { %v5633_v18 = vsel %vm1063_vm3, %v5627_v50, 0.0  ;;  %6971 = vmatprep.subr.mxu1 %v7261_v63  ;;  %vm5711_vm3 = vcmask 781827  }
0x1d3a   : > { %5634 = vadd.xlane.f32.xlu0 %v5633_v18  ;;  %6972 = vmatpush3.msra.mxu1 %v5734_v60 }
0x1d3b   : > { %6973 = vmatprep.subr.mxu1 %v7261_v63 }
0x1d3c   : > { %6974 = vmatpush3.msra.mxu1 %v5733_v41 }
0x1d3d   : > { %6975 = vmatprep.subr.mxu1 %v7261_v63 }
0x1db9   : > { %v5644_v2 = vpop.xlane.xlu1 %5643 }
0x1dba   : > { %v5654_v61 = vmul.f32 0.03125, %v5644_v2 }
0x1dbb   : > { %v5641_v6 = vpop.xlane.xlu0 %5640 }
0x1dbc   : > { %v5660_v4 = vadd.f32 1e-06, %v5654_v61  ;;  %v5653_v9 = vmul.f32 0.03125, %v5641_v6 }
0x1dbd   : > { %v5650_v44 = vpop.xlane.xlu1 %5649 }
0x1dbe   : > { %7233 = vrsqrt.f32 %v5660_v4  ;;  %v5659_v52 = vadd.f32 1e-06, %v5653_v9  ;;  %v5656_v45 = vmul.f32 0.03125, %v5650_v44 }
0x1dbf   : > { %v5647_v31 = vpop.xlane.xlu0 %5646 }
0x1dc0   : > { %7235 = vrsqrt.f32 %v5659_v52  ;;  %v5662_v7 = vadd.f32 1e-06, %v5656_v45  ;;  %v5655_v57 = vmul.f32 0.03125, %v5647_v31 }
0x1dc1   : > { %v5638_v59 = vpop.xlane.xlu1 %5637 }
0x1dc2   : > { %7237 = vrsqrt.f32 %v5662_v7  ;;  %v5661_v25 = vadd.f32 1e-06, %v5655_v57  ;;  %v5652_v40 = vmul.f32 0.03125, %v5638_v59 }
0x1dc3   : > { %v5635_v11 = vpop.xlane.xlu0 %5634 }
0x1dc4   : > { %7239 = vrsqrt.f32 %v5661_v25  ;;  %v5658_v29 = vadd.f32 1e-06, %v5652_v40  ;;  %v5651_v19 = vmul.f32 0.03125, %v5635_v11 }
0x1dc6   : > { %7241 = vrsqrt.f32 %v5658_v29  ;;  %v5657_v24 = vadd.f32 1e-06, %v5651_v19 }
0x1dc8   : > { %7243 = vrsqrt.f32 %v5657_v24 }
0x1dcb   : > { %v7234_v15 = vpop.eup %7233 }
0x1dcc   : > { %v5672_v36 = vmul.f32 %v7234_v15, %v8948_v23  ;;  %v5732_v23 = vld [vmem:[%s9089_s26 + $0x10] sm:$0xff] }
0x1dcd   : > { %v7236_v34 = vpop.eup %7235  ;;  %6976 = vmatpush3.msra.mxu1 %v5732_v23 }
0x1dce   : > { %v5684_v8 = vmul.f32 %v6152_v47, %v5672_v36  ;;  %v5671_v39 = vmul.f32 %v7236_v34, %v8950_v62  ;;  %v5731_v62 = vld [vmem:[%s9089_s26 + $0x8] sm:$0xff]  ;;  %6977 = vmatprep.subr.mxu1 %v7261_v63 }
0x1dcf   : > { %v7238_v12 = vpop.eup %7237  ;;  %6978 = vmatpush3.msra.mxu1 %v5731_v62 }
0x1dd0   : > { %v5696_v1 = vadd.f32 %v6153_v14, %v5684_v8  ;;  %v5683_v32 = vmul.f32 %v6152_v47, %v5671_v39  ;;  %v5674_v28 = vmul.f32 %v7238_v12, %v8954_v33  ;;  %6979 = vmatprep.subr.mxu1 %v7261_v63 }
0x1dd1   : > { %v7240_v17 = vpop.eup %7239  ;;  %6980 = vmatpush3.msra.mxu1 %v5730_v46 }
0x1dd2   : > { %5721 = vrot.lane.b32.xlu1 %v5696_v1, %s7269_s30  ;;  %v5695_v5 = vadd.f32 %v6153_v14, %v5683_v32  ;;  %v5673_v38 = vmul.f32 %v7240_v17, %v8959_v51  ;;  %v5686_v51 = vmul.f32 %v6152_v47, %v5674_v28 }
0x1dd3   : > { %v7242_v20 = vpop.eup %7241 }
0x1dd4   : > { %5702 = vrot.lane.b32.xlu0 %v5695_v5, %s7269_s30  ;;  %v5685_v16 = vmul.f32 %v6152_v47, %v5673_v38  ;;  %v5670_v3 = vmul.f32 %v7242_v20, %v8964_v55  ;;  %v5698_v37 = vadd.f32 %v6153_v14, %v5686_v51 }
0x1dd5   : > { %v7244_v58 = vpop.eup %7243 }
0x1dd6   : > { %v5697_v43 = vadd.f32 %v6153_v14, %v5685_v16  ;;  %v5682_v56 = vmul.f32 %v6152_v47, %v5670_v3  ;;  %v5669_v33 = vmul.f32 %v7244_v58, %v8969_v48 }
0x1dd8   : > { %5708 = vrot.lane.b32.xlu1 %v5697_v43, %s9141_s0  ;;  %v5694_v13 = vadd.f32 %v6153_v14, %v5682_v56  ;;  %v5681_v42 = vmul.f32 %v6152_v47, %v5669_v33 }
0x1dda   : > { %5719 = vst.msk [vmem:[#allocation5 - $0x6] sm:$0x80] %vm5699_vm0, %v5694_v13  ;;  %v5693_v50 = vadd.f32 %v6153_v14, %v5681_v42 }
0x1ddc   : > { %5714 = vrot.lane.b32.xlu1 %v5698_v37, %s9140_s1  ;;  %5700 = vst.msk [vmem:[#allocation5 - $0x7] sm:$0x80] %vm5699_vm0, %v5693_v50  ;;  %s5892_s1 = sshll.u32 %s9149_s4, 1 }
0x1ddd   : > { %s840_s2 = scalar_lea.vmem %s9090_s27, %s5892_s1 }
0x1e44   : > { %v5722_v55 = vpop.permute.xlu1 %5721 }
0x1e45   : > { %5724 = vst.msk [vmem:[#allocation5 - $0x6] sm:$0x80] %vm5705_vm2, %v5722_v55 }
0x1e46   : > { %v5703_v63 = vpop.permute.xlu0 %5702 }
0x1e47   : > { %5706 = vst.msk [vmem:[#allocation5 - $0x7] sm:$0x80] %vm5705_vm2, %v5703_v63 }
0x1e4a   : > { %v5709_v48 = vpop.permute.xlu1 %5708 }
0x1e4b   : > { %5712 = vst.msk [vmem:[#allocation5 - $0x3] sm:$0x8] %vm5711_vm3, %v5709_v48 }
0x1e4c   : > { %5726 = vst.msk [vmem:[#allocation5 - $0x6] sm:$0x80] %vm5725_vm4, %v5709_v48 }
0x1e4e   : > { %v5715_v18 = vpop.permute.xlu1 %5714 }
0x1e4f   : > { %5718 = vst.msk [vmem:[#allocation5 - $0x1] sm:$0x2] %vm5717_vm5, %v5715_v18 }
0x1e50   : > { %5728 = vst.msk [vmem:[#allocation5 - $0x2] sm:$0x8] %vm5727_vm6, %v5715_v18 }
0x1e57   : > { %v5729_v53 = vld [vmem:[#allocation5] sm:$0x3] }
0x1e58   : > { %6982 = vmatmul.mubr.f32.vlgmr.msra.gmra.mxu1 %v5729_v53 }
0x1f18   : > { %v5812_v26 = vpop.f32.mrf.mxu1 }
0x1f19   : > { %5817 = vst.msk [vmem:[%s840_s2] sm:$0x3] %vm5816_vm7, %v5812_v26 }
0x1f1a   : > { %v6983_v27 = vpop.f32.mrf.mxu1 }
0x1f1b PF: > { %s37_s7 = sadd.s32 1, %s7259_s7  }
0x1f1c   : > { %p34_p5 = scmp.ge.s32.totalorder %s37_s7, 4  }
0x1f1e   :  { %36 = sbr.rel (!%p34_p5) target bundleno = 13 (0xd), region = 184 }

</bundles_post_ra>
